<compile_context>
chip_gen: v7x
topology: tpu7x:2x2x1
jax: 0.10.0
libtpu: 0.0.40
codegen_flags: <defaults>
</compile_context>

<pallas_src>
import functools

import jax
import jax.numpy as jnp
from jax.experimental import pallas as pl
from jax.experimental.pallas import tpu as pltpu

_LANE = 128   # TPU lane width; channels padded to a multiple of this.
_WL = 8       # left offset of the activation inside the scratch (sublane aligned)


def _resblock_kernel(xpad_ref, w1_ref, b1_ref, w2_ref, b2_ref, o_ref,
                     act_scr, *, H, W, Cp, K):
    """One image per grid step.

    xpad_ref : (1, H+2p, W+2p, Cp)  spatially padded, channel-padded input
    w1/w2    : (K*K*Cp, Cp)         im2col-flattened HWIO weights
    b1/b2    : (1, Cp)              biases (channel-padded)
    o_ref    : (1, H, W, Cp)        output tile (lane-dense, Cp % 128 == 0)
    act_scr  : (H+2p, _WL+W+p, Cp)  conv1 activation staged with zero halo
    """
    p = K // 2
    Hp = H + 2 * p
    HW = H * W
    Wscr = _WL + W + p

    xpad = xpad_ref[0]                                     # (Hp, Wp, Cp)

    # ---- conv1 via im2col: one big-contraction MXU matmul ----
    taps = []
    for kh in range(K):
        for kw in range(K):
            taps.append(xpad[kh:kh + H, kw:kw + W, :].reshape(HW, Cp))
    cols = jnp.concatenate(taps, axis=1)                   # (HW, K*K*Cp), lane-aligned
    y1 = jnp.dot(cols, w1_ref[...], preferred_element_type=jnp.float32)
    act = jnp.maximum(y1 + b1_ref[...], 0.0)               # (HW, Cp) f32

    # ---- stage activation for conv2: aligned interior store + thin halo ----
    # Interior lands at sublane offset _WL (multiple of 8) -> unmasked stores.
    # Only the p-wide ring the taps actually read is zeroed, every step (cheap,
    # and correct regardless of how the grid is split across TensorCores).
    act_scr[0:p, :, :] = jnp.zeros((p, Wscr, Cp), jnp.float32)
    act_scr[p + H:Hp, :, :] = jnp.zeros((p, Wscr, Cp), jnp.float32)
    act_scr[:, _WL - p:_WL, :] = jnp.zeros((Hp, p, Cp), jnp.float32)
    act_scr[:, _WL + W:Wscr, :] = jnp.zeros((Hp, p, Cp), jnp.float32)
    act_scr[p:p + H, _WL:_WL + W, :] = act.reshape(H, W, Cp)

    # ---- conv2 via im2col ----
    taps2 = []
    for kh in range(K):
        for kw in range(K):
            c0 = _WL - p + kw
            taps2.append(act_scr[kh:kh + H, c0:c0 + W, :].reshape(HW, Cp))
    cols2 = jnp.concatenate(taps2, axis=1)
    y2 = jnp.dot(cols2, w2_ref[...], preferred_element_type=jnp.float32)
    y2 = y2 + b2_ref[...]

    # ---- residual add, lane-dense store ----
    x_center = xpad[p:p + H, p:p + W, :].reshape(HW, Cp)
    o_ref[0] = (x_center + y2).reshape(H, W, Cp)


def resblock_pallas(x_nchw, w1_hwio, b1, w2_hwio, b2, *, kernel_size=3):
    """x_nchw: (N, C, H, W) float32.  Weights HWIO (K, K, C, C).  Returns NCHW.
    (PyTorch nn.Conv2d weights are OIHW: pass w.permute(2, 3, 1, 0).)"""
    K = kernel_size
    assert K % 2 == 1, "odd kernel only (SAME padding)"
    p = K // 2
    N, C, H, W = x_nchw.shape
    Cp = ((C + _LANE - 1) // _LANE) * _LANE        # lane-dense channel count
    Hp, Wp = H + 2 * p, W + 2 * p

    # NCHW -> NHWC; single fused pad (spatial halo + channel pad to Cp).
    x_nhwc = jnp.transpose(x_nchw, (0, 2, 3, 1)).astype(jnp.float32)
    xpad = jnp.pad(x_nhwc, ((0, 0), (p, p), (p, p), (0, Cp - C)))

    def prep_w(w):
        w = jnp.pad(w.astype(jnp.float32),
                    ((0, 0), (0, 0), (0, Cp - C), (0, Cp - C)))
        return w.reshape(K * K * Cp, Cp)           # row = (kh*K + kw)*Cp + cin

    def prep_b(b):
        return jnp.pad(b.astype(jnp.float32), (0, Cp - C)).reshape(1, Cp)

    kernel = functools.partial(_resblock_kernel, H=H, W=W, Cp=Cp, K=K)

    out = pl.pallas_call(
        kernel,
        out_shape=jax.ShapeDtypeStruct((N, H, W, Cp), jnp.float32),
        grid_spec=pltpu.PrefetchScalarGridSpec(
            num_scalar_prefetch=0,
            grid=(N,),
            in_specs=[
                pl.BlockSpec((1, Hp, Wp, Cp), lambda n: (n, 0, 0, 0)),
                pl.BlockSpec((K * K * Cp, Cp), lambda n: (0, 0)),
                pl.BlockSpec((1, Cp), lambda n: (0, 0)),
                pl.BlockSpec((K * K * Cp, Cp), lambda n: (0, 0)),
                pl.BlockSpec((1, Cp), lambda n: (0, 0)),
            ],
            out_specs=pl.BlockSpec((1, H, W, Cp), lambda n: (n, 0, 0, 0)),
            scratch_shapes=[pltpu.VMEM((Hp, _WL + W + p, Cp), jnp.float32)],
        ),
        compiler_params=pltpu.CompilerParams(
            dimension_semantics=("parallel",),
            vmem_limit_bytes=32 * 1024 * 1024,
        ),
    )(xpad, prep_w(w1_hwio), prep_b(b1), prep_w(w2_hwio), prep_b(b2))

    # Drop channel padding, back to NCHW to match the PyTorch module.
    return jnp.transpose(out[..., :C], (0, 3, 1, 2))


def resblock_reference(x_nchw, w1, b1, w2, b2):
    """Pure-JAX reference (same math as the PyTorch module)."""
    x = jnp.transpose(x_nchw, (0, 2, 3, 1))
    dn = ("NHWC", "HWIO", "NHWC")
    hp = jax.lax.Precision.HIGHEST
    y = jax.lax.conv_general_dilated(x, w1, (1, 1), "SAME",
                                     dimension_numbers=dn, precision=hp) + b1
    y = jnp.maximum(y, 0.0)
    y = jax.lax.conv_general_dilated(y, w2, (1, 1), "SAME",
                                     dimension_numbers=dn, precision=hp) + b2
    return jnp.transpose(x + y, (0, 3, 1, 2))


if __name__ == "__main__":
    # Small shapes consistent with ResBlock(in_channels == out_channels)
    N, C, H, W, K = 2, 4, 16, 16, 3

    key = jax.random.PRNGKey(0)
    k_x, k_w1, k_b1, k_w2, k_b2 = jax.random.split(key, 5)

    x = jax.random.normal(k_x, (N, C, H, W), dtype=jnp.float32)
    # Deterministic synthetic parameters (shapes from nn.Conv2d(C, C, 3, bias=True))
    fan_in = C * K * K
    scale = 1.0 / jnp.sqrt(fan_in)
    w1 = jax.random.uniform(k_w1, (K, K, C, C), jnp.float32, -scale, scale)
    b1 = jax.random.uniform(k_b1, (C,), jnp.float32, -scale, scale)
    w2 = jax.random.uniform(k_w2, (K, K, C, C), jnp.float32, -scale, scale)
    b2 = jax.random.uniform(k_b2, (C,), jnp.float32, -scale, scale)

    out = jax.block_until_ready(resblock_pallas(x, w1, b1, w2, b2, kernel_size=K))
    ref = jax.block_until_ready(resblock_reference(x, w1, b1, w2, b2))

    assert out.shape == (N, C, H, W)
    assert jnp.allclose(out, ref, atol=2e-4, rtol=2e-4), "mismatch vs reference"
    print("KERNEL_OK")
</pallas_src>

<mosaic_0001>
module attributes {stable_mosaic.version = 11 : i64} {
  func.func @_resblock_kernel(%arg0: i32, %arg1: memref<1x18x18x128xf32, #tpu.memory_space<vmem>>, %arg2: memref<1152x128xf32, #tpu.memory_space<vmem>>, %arg3: memref<1x128xf32, #tpu.memory_space<vmem>>, %arg4: memref<1152x128xf32, #tpu.memory_space<vmem>>, %arg5: memref<1x128xf32, #tpu.memory_space<vmem>>, %arg6: memref<1x16x16x128xf32, #tpu.memory_space<vmem>>, %arg7: memref<18x25x128xf32, #tpu.memory_space<vmem>>) attributes {dimension_semantics = [#tpu.dimension_semantics<parallel>], iteration_bounds = array<i64: 2>, scalar_prefetch = 0 : i64, scratch_operands = 1 : i64, tpu.core_type = #tpu.core_type<tc>, window_params = [{transform_indices = @transform_0, window_bounds = array<i64: 1, 18, 18, 128>}, {pipeline_mode = #tpu.pipeline_mode<synchronous>, transform_indices = @transform_1, window_bounds = array<i64: 1152, 128>}, {pipeline_mode = #tpu.pipeline_mode<synchronous>, transform_indices = @transform_2, window_bounds = array<i64: 1, 128>}, {pipeline_mode = #tpu.pipeline_mode<synchronous>, transform_indices = @transform_3, window_bounds = array<i64: 1152, 128>}, {pipeline_mode = #tpu.pipeline_mode<synchronous>, transform_indices = @transform_4, window_bounds = array<i64: 1, 128>}, {transform_indices = @transform_5, window_bounds = array<i64: 1, 16, 16, 128>}]} {
    %c0 = arith.constant 0 : index
    %c0_0 = arith.constant 0 : index
    %c0_1 = arith.constant 0 : index
    %c0_2 = arith.constant 0 : index
    %0 = vector.load %arg1[%c0, %c0_0, %c0_1, %c0_2] : memref<1x18x18x128xf32, #tpu.memory_space<vmem>>, vector<1x18x18x128xf32>
    %1 = vector.shape_cast %0 : vector<1x18x18x128xf32> to vector<18x18x128xf32>
    %2 = vector.extract_strided_slice %1 {offsets = [0, 0, 0], sizes = [16, 16, 128], strides = [1, 1, 1]} : vector<18x18x128xf32> to vector<16x16x128xf32>
    %3 = vector.shape_cast %2 : vector<16x16x128xf32> to vector<256x128xf32>
    %4 = vector.extract_strided_slice %1 {offsets = [0, 1, 0], sizes = [16, 16, 128], strides = [1, 1, 1]} : vector<18x18x128xf32> to vector<16x16x128xf32>
    %5 = vector.shape_cast %4 : vector<16x16x128xf32> to vector<256x128xf32>
    %6 = vector.extract_strided_slice %1 {offsets = [0, 2, 0], sizes = [16, 16, 128], strides = [1, 1, 1]} : vector<18x18x128xf32> to vector<16x16x128xf32>
    %7 = vector.shape_cast %6 : vector<16x16x128xf32> to vector<256x128xf32>
    %8 = vector.extract_strided_slice %1 {offsets = [1, 0, 0], sizes = [16, 16, 128], strides = [1, 1, 1]} : vector<18x18x128xf32> to vector<16x16x128xf32>
    %9 = vector.shape_cast %8 : vector<16x16x128xf32> to vector<256x128xf32>
    %10 = vector.extract_strided_slice %1 {offsets = [1, 1, 0], sizes = [16, 16, 128], strides = [1, 1, 1]} : vector<18x18x128xf32> to vector<16x16x128xf32>
    %11 = vector.shape_cast %10 : vector<16x16x128xf32> to vector<256x128xf32>
    %12 = vector.extract_strided_slice %1 {offsets = [1, 2, 0], sizes = [16, 16, 128], strides = [1, 1, 1]} : vector<18x18x128xf32> to vector<16x16x128xf32>
    %13 = vector.shape_cast %12 : vector<16x16x128xf32> to vector<256x128xf32>
    %14 = vector.extract_strided_slice %1 {offsets = [2, 0, 0], sizes = [16, 16, 128], strides = [1, 1, 1]} : vector<18x18x128xf32> to vector<16x16x128xf32>
    %15 = vector.shape_cast %14 : vector<16x16x128xf32> to vector<256x128xf32>
    %16 = vector.extract_strided_slice %1 {offsets = [2, 1, 0], sizes = [16, 16, 128], strides = [1, 1, 1]} : vector<18x18x128xf32> to vector<16x16x128xf32>
    %17 = vector.shape_cast %16 : vector<16x16x128xf32> to vector<256x128xf32>
    %18 = vector.extract_strided_slice %1 {offsets = [2, 2, 0], sizes = [16, 16, 128], strides = [1, 1, 1]} : vector<18x18x128xf32> to vector<16x16x128xf32>
    %19 = vector.shape_cast %18 : vector<16x16x128xf32> to vector<256x128xf32>
    %20 = tpu.concatenate %3, %5, %7, %9, %11, %13, %15, %17, %19 in 1 : vector<256x128xf32>, vector<256x128xf32>, vector<256x128xf32>, vector<256x128xf32>, vector<256x128xf32>, vector<256x128xf32>, vector<256x128xf32>, vector<256x128xf32>, vector<256x128xf32> -> vector<256x1152xf32>
    %c0_3 = arith.constant 0 : index
    %c0_4 = arith.constant 0 : index
    %21 = vector.load %arg2[%c0_3, %c0_4] : memref<1152x128xf32, #tpu.memory_space<vmem>>, vector<1152x128xf32>
    %cst = arith.constant dense<0.000000e+00> : vector<256x128xf32>
    %22 = tpu.matmul %20, %21, %cst {dimension_numbers = #tpu.dot_dimension_numbers<[1], [0], [0], [1], [0, 0, 1, 1], [], []>} : vector<256x1152xf32>, vector<1152x128xf32>, vector<256x128xf32> -> vector<256x128xf32>
    %c0_5 = arith.constant 0 : index
    %c0_6 = arith.constant 0 : index
    %23 = vector.load %arg3[%c0_5, %c0_6] : memref<1x128xf32, #tpu.memory_space<vmem>>, vector<1x128xf32>
    %24 = vector.broadcast %23 : vector<1x128xf32> to vector<256x128xf32>
    %25 = arith.addf %22, %24 : vector<256x128xf32>
    %cst_7 = arith.constant 0.000000e+00 : f32
    %26 = vector.broadcast %cst_7 : f32 to vector<256x128xf32>
    %27 = arith.maximumf %25, %26 : vector<256x128xf32>
    %cst_8 = arith.constant 0.000000e+00 : f32
    %28 = vector.broadcast %cst_8 : f32 to vector<1x25x128xf32>
    %c0_9 = arith.constant 0 : index
    %c0_10 = arith.constant 0 : index
    %c0_11 = arith.constant 0 : index
    %29 = vector.load %arg7[%c0_9, %c0_10, %c0_11] : memref<18x25x128xf32, #tpu.memory_space<vmem>>, vector<1x25x128xf32>
    tpu.vector_store %arg7[%c0_9, %c0_10, %c0_11], %28 {strides = array<i32>} : memref<18x25x128xf32, #tpu.memory_space<vmem>>, vector<1x25x128xf32>,
    %cst_12 = arith.constant 0.000000e+00 : f32
    %30 = vector.broadcast %cst_12 : f32 to vector<1x25x128xf32>
    %c17 = arith.constant 17 : index
    %c0_13 = arith.constant 0 : index
    %c0_14 = arith.constant 0 : index
    %31 = vector.load %arg7[%c17, %c0_13, %c0_14] : memref<18x25x128xf32, #tpu.memory_space<vmem>>, vector<1x25x128xf32>
    tpu.vector_store %arg7[%c17, %c0_13, %c0_14], %30 {strides = array<i32>} : memref<18x25x128xf32, #tpu.memory_space<vmem>>, vector<1x25x128xf32>,
    %cst_15 = arith.constant 0.000000e+00 : f32
    %32 = vector.broadcast %cst_15 : f32 to vector<18x1x128xf32>
    %c0_16 = arith.constant 0 : index
    %c7 = arith.constant 7 : index
    %c0_17 = arith.constant 0 : index
    %33 = vector.load %arg7[%c0_16, %c7, %c0_17] : memref<18x25x128xf32, #tpu.memory_space<vmem>>, vector<18x1x128xf32>
    tpu.vector_store %arg7[%c0_16, %c7, %c0_17], %32 {strides = array<i32>} : memref<18x25x128xf32, #tpu.memory_space<vmem>>, vector<18x1x128xf32>,
    %cst_18 = arith.constant 0.000000e+00 : f32
    %34 = vector.broadcast %cst_18 : f32 to vector<18x1x128xf32>
    %c0_19 = arith.constant 0 : index
    %c24 = arith.constant 24 : index
    %c0_20 = arith.constant 0 : index
    %35 = vector.load %arg7[%c0_19, %c24, %c0_20] : memref<18x25x128xf32, #tpu.memory_space<vmem>>, vector<18x1x128xf32>
    tpu.vector_store %arg7[%c0_19, %c24, %c0_20], %34 {strides = array<i32>} : memref<18x25x128xf32, #tpu.memory_space<vmem>>, vector<18x1x128xf32>,
    %36 = vector.shape_cast %27 : vector<256x128xf32> to vector<16x16x128xf32>
    %c1 = arith.constant 1 : index
    %c8 = arith.constant 8 : index
    %c0_21 = arith.constant 0 : index
    %37 = vector.load %arg7[%c1, %c8, %c0_21] : memref<18x25x128xf32, #tpu.memory_space<vmem>>, vector<16x16x128xf32>
    tpu.vector_store %arg7[%c1, %c8, %c0_21], %36 {strides = array<i32>} : memref<18x25x128xf32, #tpu.memory_space<vmem>>, vector<16x16x128xf32>,
    %c0_22 = arith.constant 0 : index
    %c7_23 = arith.constant 7 : index
    %c0_24 = arith.constant 0 : index
    %38 = vector.load %arg7[%c0_22, %c7_23, %c0_24] : memref<18x25x128xf32, #tpu.memory_space<vmem>>, vector<16x16x128xf32>
    %39 = vector.shape_cast %38 : vector<16x16x128xf32> to vector<256x128xf32>
    %c0_25 = arith.constant 0 : index
    %c8_26 = arith.constant 8 : index
    %c0_27 = arith.constant 0 : index
    %40 = vector.load %arg7[%c0_25, %c8_26, %c0_27] : memref<18x25x128xf32, #tpu.memory_space<vmem>>, vector<16x16x128xf32>
    %41 = vector.shape_cast %40 : vector<16x16x128xf32> to vector<256x128xf32>
    %c0_28 = arith.constant 0 : index
    %c9 = arith.constant 9 : index
    %c0_29 = arith.constant 0 : index
    %42 = vector.load %arg7[%c0_28, %c9, %c0_29] : memref<18x25x128xf32, #tpu.memory_space<vmem>>, vector<16x16x128xf32>
    %43 = vector.shape_cast %42 : vector<16x16x128xf32> to vector<256x128xf32>
    %c1_30 = arith.constant 1 : index
    %c7_31 = arith.constant 7 : index
    %c0_32 = arith.constant 0 : index
    %44 = vector.load %arg7[%c1_30, %c7_31, %c0_32] : memref<18x25x128xf32, #tpu.memory_space<vmem>>, vector<16x16x128xf32>
    %45 = vector.shape_cast %44 : vector<16x16x128xf32> to vector<256x128xf32>
    %c1_33 = arith.constant 1 : index
    %c8_34 = arith.constant 8 : index
    %c0_35 = arith.constant 0 : index
    %46 = vector.load %arg7[%c1_33, %c8_34, %c0_35] : memref<18x25x128xf32, #tpu.memory_space<vmem>>, vector<16x16x128xf32>
    %47 = vector.shape_cast %46 : vector<16x16x128xf32> to vector<256x128xf32>
    %c1_36 = arith.constant 1 : index
    %c9_37 = arith.constant 9 : index
    %c0_38 = arith.constant 0 : index
    %48 = vector.load %arg7[%c1_36, %c9_37, %c0_38] : memref<18x25x128xf32, #tpu.memory_space<vmem>>, vector<16x16x128xf32>
    %49 = vector.shape_cast %48 : vector<16x16x128xf32> to vector<256x128xf32>
    %c2 = arith.constant 2 : index
    %c7_39 = arith.constant 7 : index
    %c0_40 = arith.constant 0 : index
    %50 = vector.load %arg7[%c2, %c7_39, %c0_40] : memref<18x25x128xf32, #tpu.memory_space<vmem>>, vector<16x16x128xf32>
    %51 = vector.shape_cast %50 : vector<16x16x128xf32> to vector<256x128xf32>
    %c2_41 = arith.constant 2 : index
    %c8_42 = arith.constant 8 : index
    %c0_43 = arith.constant 0 : index
    %52 = vector.load %arg7[%c2_41, %c8_42, %c0_43] : memref<18x25x128xf32, #tpu.memory_space<vmem>>, vector<16x16x128xf32>
    %53 = vector.shape_cast %52 : vector<16x16x128xf32> to vector<256x128xf32>
    %c2_44 = arith.constant 2 : index
    %c9_45 = arith.constant 9 : index
    %c0_46 = arith.constant 0 : index
    %54 = vector.load %arg7[%c2_44, %c9_45, %c0_46] : memref<18x25x128xf32, #tpu.memory_space<vmem>>, vector<16x16x128xf32>
    %55 = vector.shape_cast %54 : vector<16x16x128xf32> to vector<256x128xf32>
    %56 = tpu.concatenate %39, %41, %43, %45, %47, %49, %51, %53, %55 in 1 : vector<256x128xf32>, vector<256x128xf32>, vector<256x128xf32>, vector<256x128xf32>, vector<256x128xf32>, vector<256x128xf32>, vector<256x128xf32>, vector<256x128xf32>, vector<256x128xf32> -> vector<256x1152xf32>
    %c0_47 = arith.constant 0 : index
    %c0_48 = arith.constant 0 : index
    %57 = vector.load %arg4[%c0_47, %c0_48] : memref<1152x128xf32, #tpu.memory_space<vmem>>, vector<1152x128xf32>
    %cst_49 = arith.constant dense<0.000000e+00> : vector<256x128xf32>
    %58 = tpu.matmul %56, %57, %cst_49 {dimension_numbers = #tpu.dot_dimension_numbers<[1], [0], [0], [1], [0, 0, 1, 1], [], []>} : vector<256x1152xf32>, vector<1152x128xf32>, vector<256x128xf32> -> vector<256x128xf32>
    %c0_50 = arith.constant 0 : index
    %c0_51 = arith.constant 0 : index
    %59 = vector.load %arg5[%c0_50, %c0_51] : memref<1x128xf32, #tpu.memory_space<vmem>>, vector<1x128xf32>
    %60 = vector.broadcast %59 : vector<1x128xf32> to vector<256x128xf32>
    %61 = arith.addf %58, %60 : vector<256x128xf32>
    %62 = vector.extract_strided_slice %1 {offsets = [1, 1, 0], sizes = [16, 16, 128], strides = [1, 1, 1]} : vector<18x18x128xf32> to vector<16x16x128xf32>
    %63 = vector.shape_cast %62 : vector<16x16x128xf32> to vector<256x128xf32>
    %64 = arith.addf %63, %61 : vector<256x128xf32>
    %65 = vector.shape_cast %64 : vector<256x128xf32> to vector<16x16x128xf32>
    %c0_52 = arith.constant 0 : index
    %c0_53 = arith.constant 0 : index
    %c0_54 = arith.constant 0 : index
    %c0_55 = arith.constant 0 : index
    %66 = vector.load %arg6[%c0_52, %c0_53, %c0_54, %c0_55] : memref<1x16x16x128xf32, #tpu.memory_space<vmem>>, vector<1x16x16x128xf32>
    %67 = vector.shape_cast %66 : vector<1x16x16x128xf32> to vector<16x16x128xf32>
    %68 = vector.shape_cast %65 : vector<16x16x128xf32> to vector<1x16x16x128xf32>
    tpu.vector_store %arg6[%c0_52, %c0_53, %c0_54, %c0_55], %68 {strides = array<i32>} : memref<1x16x16x128xf32, #tpu.memory_space<vmem>>, vector<1x16x16x128xf32>,
    return
  }
  func.func @transform_0(%arg0: i32) -> (i32, i32, i32, i32) {
    %c0_i32 = arith.constant 0 : i32
    %c0_i32_0 = arith.constant 0 : i32
    %c0_i32_1 = arith.constant 0 : i32
    %c0_i32_2 = arith.constant 0 : i32
    return %arg0, %c0_i32, %c0_i32_0, %c0_i32_1 : i32, i32, i32, i32
  }
  func.func @transform_1(%arg0: i32) -> (i32, i32) {
    %c0_i32 = arith.constant 0 : i32
    %c0_i32_0 = arith.constant 0 : i32
    %c0_i32_1 = arith.constant 0 : i32
    return %c0_i32, %c0_i32_0 : i32, i32
  }
  func.func @transform_2(%arg0: i32) -> (i32, i32) {
    %c0_i32 = arith.constant 0 : i32
    %c0_i32_0 = arith.constant 0 : i32
    %c0_i32_1 = arith.constant 0 : i32
    return %c0_i32, %c0_i32_0 : i32, i32
  }
  func.func @transform_3(%arg0: i32) -> (i32, i32) {
    %c0_i32 = arith.constant 0 : i32
    %c0_i32_0 = arith.constant 0 : i32
    %c0_i32_1 = arith.constant 0 : i32
    return %c0_i32, %c0_i32_0 : i32, i32
  }
  func.func @transform_4(%arg0: i32) -> (i32, i32) {
    %c0_i32 = arith.constant 0 : i32
    %c0_i32_0 = arith.constant 0 : i32
    %c0_i32_1 = arith.constant 0 : i32
    return %c0_i32, %c0_i32_0 : i32, i32
  }
  func.func @transform_5(%arg0: i32) -> (i32, i32, i32, i32) {
    %c0_i32 = arith.constant 0 : i32
    %c0_i32_0 = arith.constant 0 : i32
    %c0_i32_1 = arith.constant 0 : i32
    %c0_i32_2 = arith.constant 0 : i32
    return %arg0, %c0_i32, %c0_i32_0, %c0_i32_1 : i32, i32, i32, i32
  }
}

</mosaic_0001>

<bundles_post_ra>
// kernel: tpu_custom_call.1
= control target key start
LH: loop header
LB: loop body
LE: loop exit
PB: predicated region body
PF: predicated region fallthrough
CT: control target
= control target key end

     0   :  { %10 = vsyncpa [#allocation4], 0  ;;  %s7368_s0 = inlined_call_operand.vmem [shape: f32[2,18,18,128], index: 0, kind: input, shape index: {}]   ;;  %s7369_s1 = inlined_call_operand.vmem [shape: f32[1152,128], index: 1, kind: input, shape index: {}]   ;;  %s7370_s2 = inlined_call_operand.vmem [shape: f32[1,128], index: 2, kind: input, shape index: {}]   ;;  %s7371_s3 = inlined_call_operand.hbm [shape: f32[1152,128], index: 3, kind: input, shape index: {}]   ;;  %s7372_s4 = inlined_call_operand.vmem [shape: f32[1,128], index: 4, kind: input, shape index: {}]   ;;  %s7373_s5 = inlined_call_operand.hbm [shape: f32[2,16,16,128], index: 5, kind: output, shape index: {}]  }
   0x1   :  { %11 = vsyncpa [#allocation5], 0 }
   0x2   :  { %13 = vsyncpa [#allocation5 + $0x1], 0  ;;  %s5107_s18 = smov 0   ;;  %s5109_s19 = smov 0  }
   0x3   :  { %s5111_s20 = smov 0   ;;  %s5113_s21 = smov 0  }
   0x4 LB: > { %s5128_s22 = sadd.s32 4294967295, %s5067_s21   ;;  %s3703_s23 = sadd.s32 4294967294, %s5067_s21   ;;  %s5067_s21 = sphi %s5113_s21, %s7628_s21   ;;  %s5063_s20 = sphi %s5111_s20, %s7627_s20   ;;  %s5059_s19 = sphi %s5109_s19, %s7626_s19   ;;  %s5055_s18 = sphi %s5107_s18, %s7625_s18  }
   0x5   : > { %s5132_s24 = sadd.s32 1, %s5067_s21   ;;  %s136_s25 = sadd.s32 1, %s5063_s20 }
   0x6   : > { %s133_s26 = ssub.s32 %s5067_s21, %s5132_s24  ;;  %p146_p0 = scmp.ne.s32.totalorder %s5063_s20, %s5059_s19 }
   0x7   : > { %p134_p1 = scmp.eq.s32.totalorder %s133_s26, 0  ;;  %p147_p2 = scmp.eq.s32.totalorder %s5128_s22, 1 }
   0x8   : > { %p152_p3 = scmp.ne.s32.totalorder %s5059_s19, %s5055_s18  ;;  %p153_p4 = scmp.eq.s32.totalorder %s3703_s23, 1 }
   0x9   : > { %s5143_s27 = scalar_select %p134_p1, %s5063_s20, %s136_s25  }
   0xa   : > { %p5145_p5 = por %p147_p2, %p146_p0  ;;  %p5149_p6 = por %p153_p4, %p152_p3 }
   0xb   : > { %p3704_p7 = scmp.ge.s32.totalorder %s5067_s21, 1  ;;  %p160_p8 = scmp.lt.s32.totalorder %s5067_s21, 3 }
   0xc   : > { %s7489_s28 = scalar_select %p5145_p5, 1, 0 }
   0xd   : > { %s7490_s29 = scalar_select %p5149_p6, 1, 0 }
   0xe   : > { %p7374_p9 = scmp.eq.s32.totalorder %s5128_s22, 0  ;;  %p5156_p10 = pnand %p3704_p7, %p160_p8 }
   0xf   : > { %s5069_s6 = smov [#allocation3]   ;;  %s4973_s11 = scalar_lea.hbm %s7371_s3, 18432 }
  0x10   : > { %s7491_s30 = scalar_select %p5156_p10, 1, 0 }
  0x11   : > { %s178_s7 = sshll.u32 %s5069_s6, 4  ;;  %p4894_p11 = pneg %p5156_p10  ;;  %s179_s7 = int_to_ptr.vmem [resolvable:$true] %s178_s7 }
  0x12   : > { %p4974_p13 = scmp.ne.s32.totalorder %s7371_s3, %s4973_s11  ;;  %p4980_p3 = scmp.lt.u32.totalorder %s4973_s11, %s7371_s3 }
  0x13   : > { %p5164_p12 = pnand %p7374_p9, %p4894_p11 }
  0x15   : > { %p4975_p0 = pneg %p5164_p12 }
  0x17   : > { %p4976_p1 = pnand %p4975_p0, %p4974_p13 }
  0x19   : > { %p4977_p2 = pneg %p4976_p1 }
  0x1b   : > { %p4982_p4 = pnand %p4980_p3, %p4977_p2 }
  0x1d   : > { %4985 = shalt.err (!%p4982_p4)
}
  0x1e   : > { %s4986_s16 = scalar_lea.vmem %s179_s7, 18432  ;;  %p4994_p9 = scmp.lt.s32.totalorder %s179_s7, %s179_s7 }
  0x1f   : > { %p4987_p7 = scmp.ne.s32.totalorder %s179_s7, %s4986_s16  ;;  %p4995_p6 = scmp.lt.s32.totalorder %s4986_s16, %s4986_s16 }
  0x21   : > { %p4989_p8 = pnand %p4987_p7, %p4975_p0  ;;  %p4996_p5 = por %p4995_p6, %p4994_p9 }
  0x23   : > { %p4990_p11 = pneg %p4989_p8 }
  0x25   : > { %p4997_p10 = pnand %p4996_p5, %p4990_p11 }
  0x27   : > { %5000 = shalt.err (!%p4997_p10)
}
  0x28   : > { %s5070_s17 = smov 128   ;;  %s5071_s23 = smov 8  }
  0x29   : > { %4897 = dma.hbm_to_vmem [thread:$0]  (!%p5164_p12), %s7371_s3, 18432, %s179_s7, [#allocation4], %s5070_s17, %s5070_s17, %s5071_s23  }
  0x2a   : > { %p7493_p13 = scmp.ne.s32.totalorder %s7491_s30, 0 }
  0x2c   : > { %205 = sbr.rel (%p7493_p13) target bundleno = 1480 (0x5c8), region = 40 }
  0x33   : > { %p7494_p1 = scmp.eq.s32.totalorder %s5128_s22, 0 }
  0x35   : > { %5046 = dma.done.wait (%p7494_p1), [#allocation4], 18432   ;;  %p7495_p0 = pmov %p7494_p1 }
  0x36   : > { %v7378_v0 = vmov 0.0|0.0   ;;  %p233_p5 = scmp.lt.s32.totalorder %s5128_s22, 1  ;;  %v600_v1 = vld [vmem:[%s7369_s1] sm:$0xff]  ;;  %v601_v2 = vld [vmem:[%s7369_s1 + $0x8] sm:$0xff]  ;;  %v602_v3 = vld [vmem:[%s7369_s1 + $0x10] sm:$0xff]  ;;  %vm340_vm0 = vcmask 1046528  }
  0x37   : > { %5048 = vsyncadd (%p7495_p0), [#allocation4], 4294948864  ;;  %3975 = vmatprep.subr.bf16.mxu0 %v7378_v0  ;;  %v3976_v4 = vpack.c.bf16 %v601_v2, %v600_v1  ;;  %v603_v5 = vld [vmem:[%s7369_s1 + $0x18] sm:$0xff]  ;;  %v604_v7 = vld [vmem:[%s7369_s1 + $0x20] sm:$0xff]  ;;  %vm453_vm1 = vcmask 1045504   ;;  %s230_s13 = sand.u32 1, %s5059_s19  }
  0x38   : > { %s234_s6 = scalar_select %p233_p5, %s5128_s22, 1  ;;  %v3979_v6 = vpack.c.bf16 %v603_v5, %v602_v3  ;;  %v605_v8 = vld [vmem:[%s7369_s1 + $0x28] sm:$0xff]  ;;  %v606_v10 = vld [vmem:[%s7369_s1 + $0x30] sm:$0xff]  ;;  %v607_v11 = vld [vmem:[%s7369_s1 + $0x38] sm:$0xff] }
  0x39   : > { %3977 = vmatpush1.bf16.msra.mxu0 %v3976_v4  ;;  %v3982_v9 = vpack.c.bf16 %v605_v8, %v604_v7  ;;  %v3985_v13 = vpack.c.bf16 %v607_v11, %v606_v10  ;;  %v608_v16 = vld [vmem:[%s7369_s1 + $0x40] sm:$0xff]  ;;  %v609_v17 = vld [vmem:[%s7369_s1 + $0x48] sm:$0xff]  ;;  %v610_v21 = vld [vmem:[%s7369_s1 + $0x50] sm:$0xff]  ;;  %s3709_s16 = sshll.u32 %s230_s13, 8  ;;  %s3718_s23 = sshll.u32 %s5128_s22, 12 }
  0x3a   : > { %s4887_s14 = smul.u32 432, %s234_s6  ;;  %3978 = vmatprep.subr.bf16.mxu0 %v7378_v0  ;;  %v3988_v20 = vpack.c.bf16 %v609_v17, %v608_v16  ;;  %v611_v22 = vld [vmem:[%s7369_s1 + $0x58] sm:$0xff]  ;;  %v612_v24 = vld [vmem:[%s7369_s1 + $0x60] sm:$0xff]  ;;  %v613_v25 = vld [vmem:[%s7369_s1 + $0x68] sm:$0xff]  ;;  %s7198_s17 = scalar_lea.vmem [#allocation6], %s3709_s16 }
  0x3b   : > { %v3991_v23 = vpack.c.bf16 %v611_v22, %v610_v21  ;;  %v3994_v26 = vpack.c.bf16 %v613_v25, %v612_v24  ;;  %v614_v27 = vld [vmem:[%s7369_s1 + $0x70] sm:$0xff]  ;;  %v615_v28 = vld [vmem:[%s7369_s1 + $0x78] sm:$0xff]  ;;  %v616_v30 = vld [vmem:[%s7369_s1 + $0x80] sm:$0xff]  ;;  %s3629_s25 = sshll.u32 %s7198_s17, 4  ;;  %s7318_s9 = scalar_lea.hbm %s7373_s5, %s3718_s23  ;;  %s7320_s25 = int_to_ptr.vmem [resolvable:$true] %s3629_s25 }
  0x3c   : > { %s5215_s8 = scalar_lea.vmem %s7368_s0, %s4887_s14  ;;  %v3997_v29 = vpack.c.bf16 %v615_v28, %v614_v27  ;;  %v617_v31 = vld [vmem:[%s7369_s1 + $0x88] sm:$0xff]  ;;  %v618_v33 = vld [vmem:[%s7369_s1 + $0x90] sm:$0xff]  ;;  %v619_v34 = vld [vmem:[%s7369_s1 + $0x98] sm:$0xff]  ;;  %s7327_s22 = scalar_lea.sflag [#allocation5], %s230_s13 }
  0x3d   : > { %3980 = vmatpush1.bf16.msra.mxu0 %v3979_v6  ;;  %v5225_v12 = vld [vmem:[%s5215_s8] sm:$0xff]  ;;  %v5228_v14 = vld [vmem:[%s5215_s8 + $0x8] sm:$0xff]  ;;  %v4000_v32 = vpack.c.bf16 %v617_v31, %v616_v30  ;;  %v4003_v35 = vpack.c.bf16 %v619_v34, %v618_v33  ;;  %v622_v39 = vld [vmem:[%s7369_s1 + $0xb0] sm:$0xff]  ;;  %s5001_s7 = scalar_lea.vmem %s7320_s25, 4096  ;;  %p7623_p9 = scmp.ne.s32.totalorder %s7489_s28, 0 }
  0x3e   : > { %3981 = vmatprep.subr.bf16.mxu0 %v7378_v0  ;;  %v341_v15 = vrot.slane %v5225_v12, 1  ;;  %v342_v18 = vrot.slane %v5228_v14, 1  ;;  %v620_v36 = vld [vmem:[%s7369_s1 + $0xa0] sm:$0xff]  ;;  %v621_v37 = vld [vmem:[%s7369_s1 + $0xa8] sm:$0xff]  ;;  %v623_v40 = vld [vmem:[%s7369_s1 + $0xb8] sm:$0xff]  ;;  %v454_v55 = vrot.slane %v5225_v12, 2  ;;  %p5002_p6 = scmp.ne.s32.totalorder %s7320_s25, %s5001_s7 }
  0x3f   : > { %v4006_v38 = vpack.c.bf16 %v621_v37, %v620_v36  ;;  %v4009_v41 = vpack.c.bf16 %v623_v40, %v622_v39  ;;  %v624_v42 = vld [vmem:[%s7369_s1 + $0xc0] sm:$0xff]  ;;  %v625_v43 = vld [vmem:[%s7369_s1 + $0xc8] sm:$0xff]  ;;  %v626_v45 = vld [vmem:[%s7369_s1 + $0xd0] sm:$0xff]  ;;  %v455_v56 = vrot.slane %v5228_v14, 2  ;;  %s5074_s30 = smov [#allocation6]  }
  0x40   : > { %v343_v19 = vsel %vm340_vm0, %v341_v15, %v342_v18  ;;  %v4012_v44 = vpack.c.bf16 %v625_v43, %v624_v42  ;;  %v627_v46 = vld [vmem:[%s7369_s1 + $0xd8] sm:$0xff]  ;;  %v628_v48 = vld [vmem:[%s7369_s1 + $0xe0] sm:$0xff]  ;;  %v629_v49 = vld [vmem:[%s7369_s1 + $0xe8] sm:$0xff]  ;;  %p5003_p10 = pnand %p5002_p6, %p7623_p9  ;;  %s5005_s10 = sshll.u32 %s5074_s30, 4  ;;  %s5006_s10 = int_to_ptr.vmem [resolvable:$false] %s5005_s10 }
  0x41   : > { %3983 = vmatpush1.bf16.msra.mxu0 %v3982_v9  ;;  %815 = vmatprep.mubr.f32.mxu0 %v343_v19  ;;  %v4015_v47 = vpack.c.bf16 %v627_v46, %v626_v45  ;;  %v4018_v50 = vpack.c.bf16 %v629_v49, %v628_v48  ;;  %v630_v51 = vld [vmem:[%s7369_s1 + $0xf0] sm:$0xff]  ;;  %v631_v52 = vld [vmem:[%s7369_s1 + $0xf8] sm:$0xff]  ;;  %v632_v57 = vld [vmem:[%s7369_s1 + $0x100] sm:$0xff]  ;;  %v5348_v5 = vsel %vm453_vm1, %v454_v55, %v455_v56  ;;  %s5007_s11 = scalar_lea.vmem %s5006_s10, 8192  ;;  %p5008_p2 = scmp.lt.s32.totalorder %s7320_s25, %s5006_s10 }
  0x42   : > { %3984 = vmatprep.subr.bf16.mxu0 %v7378_v0  ;;  %v240_v53 = vld [vmem:[%s5215_s8 + $0x10] sm:$0x3]  ;;  %v4021_v54 = vpack.c.bf16 %v631_v52, %v630_v51  ;;  %v633_v58 = vld [vmem:[%s7369_s1 + $0x108] sm:$0xff]  ;;  %v5330_v60 = vld [vmem:[%s5215_s8 + $0x18] sm:$0xff]  ;;  %p5004_p12 = pneg %p5003_p10  ;;  %p5009_p3 = scmp.lt.s32.totalorder %s5007_s11, %s5001_s7 }
  0x43   : > { %v344_v59 = vrot.slane %v240_v53, 1  ;;  %v5333_v61 = vld [vmem:[%s5215_s8 + $0x20] sm:$0xff]  ;;  %v4024_v62 = vpack.c.bf16 %v633_v58, %v632_v57  ;;  %v346_v1 = vrot.slane %v5330_v60, 1  ;;  %v634_v3 = vld [vmem:[%s7369_s1 + $0x110] sm:$0xff]  ;;  %v635_v4 = vld [vmem:[%s7369_s1 + $0x118] sm:$0xff]  ;;  %v457_v8 = vrot.slane %v240_v53, 2 }
  0x44   : > { %v347_v2 = vrot.slane %v5333_v61, 1  ;;  %v5351_v6 = vld [vmem:[%s5215_s8 + $0x28] sm:$0x3]  ;;  %v4027_v7 = vpack.c.bf16 %v635_v4, %v634_v3  ;;  %v636_v11 = vld [vmem:[%s7369_s1 + $0x120] sm:$0xff]  ;;  %v5369_v15 = vld [vmem:[%s5215_s8 + $0x38] sm:$0xff]  ;;  %p5010_p4 = por %p5009_p3, %p5008_p2 }
  0x45   : > { %3986 = vmatpush1.bf16.msra.mxu0 %v3985_v13  ;;  %v345_v63 = vsel %vm340_vm0, %v342_v18, %v344_v59  ;;  %v349_v10 = vrot.slane %v5351_v6, 1  ;;  %v5366_v13 = vld [vmem:[%s5215_s8 + $0x30] sm:$0xff]  ;;  %v5372_v16 = vsel %vm453_vm1, %v455_v56, %v457_v8  ;;  %v5389_v22 = vld [vmem:[%s5215_s8 + $0x40] sm:$0x3]  ;;  %v641_v27 = vld [vmem:[%s7369_s1 + $0x148] sm:$0xff] }
  0x46   : > { %3987 = vmatprep.subr.bf16.mxu0 %v7378_v0  ;;  %v5355_v9 = vsel %vm340_vm0, %v346_v1, %v347_v2  ;;  %v351_v19 = vrot.slane %v5366_v13, 1  ;;  %v638_v21 = vld [vmem:[%s7369_s1 + $0x130] sm:$0xff]  ;;  %v354_v25 = vrot.slane %v5389_v22, 1  ;;  %v5405_v28 = vld [vmem:[%s5215_s8 + $0x48] sm:$0xff]  ;;  %v464_v31 = vrot.slane %v5366_v13, 2  ;;  %v643_v37 = vld [vmem:[%s7369_s1 + $0x158] sm:$0xff]  ;;  %p5011_p7 = pnand %p5010_p4, %p5004_p12 }
  0x47   : > { %7496 = vst [vmem:[#allocation9_spill] sm:$0xff] %v5355_v9  ;;  %v5377_v18 = vsel %vm340_vm0, %v347_v2, %v349_v10  ;;  %v356_v34 = vrot.slane %v5405_v28, 1  ;;  %v642_v36 = vld [vmem:[%s7369_s1 + $0x150] sm:$0xff]  ;;  %v644_v43 = vld [vmem:[%s7369_s1 + $0x160] sm:$0xff]  ;;  %v5452_v46 = vld [vmem:[%s5215_s8 + $0x68] sm:$0xff] }
  0x48   : > { %7497 = vst [vmem:[#allocation10_spill] sm:$0xff] %v5377_v18  ;;  %v4039_v40 = vpack.c.bf16 %v643_v37, %v642_v36  ;;  %v5449_v45 = vld [vmem:[%s5215_s8 + $0x60] sm:$0xff]  ;;  %v646_v51 = vld [vmem:[%s7369_s1 + $0x170] sm:$0xff]  ;;  %v647_v52 = vld [vmem:[%s7369_s1 + $0x178] sm:$0xff] }
  0x49   : > { %3989 = vmatpush1.bf16.msra.mxu0 %v3988_v20  ;;  %v352_v20 = vrot.slane %v5369_v15, 1  ;;  %v361_v49 = vrot.slane %v5449_v45, 1  ;;  %v5469_v53 = vld [vmem:[%s5215_s8 + $0x70] sm:$0x3]  ;;  %v648_v57 = vld [vmem:[%s7369_s1 + $0x180] sm:$0xff]  ;;  %v649_v58 = vld [vmem:[%s7369_s1 + $0x188] sm:$0xff] }
  0x4a   : > { %3990 = vmatprep.subr.bf16.mxu0 %v7378_v0  ;;  %v364_v56 = vrot.slane %v5469_v53, 1  ;;  %v5485_v59 = vld [vmem:[%s5215_s8 + $0x78] sm:$0xff]  ;;  %v650_v4 = vld [vmem:[%s7369_s1 + $0x190] sm:$0xff]  ;;  %v5505_v8 = vld [vmem:[%s5215_s8 + $0x88] sm:$0x3] }
  0x4b   : > { %v5394_v24 = vsel %vm340_vm0, %v351_v19, %v352_v20  ;;  %v5415_v33 = vsel %vm340_vm0, %v352_v20, %v354_v25  ;;  %v366_v2 = vrot.slane %v5485_v59, 1  ;;  %v653_v19 = vld [vmem:[%s7369_s1 + $0x1a8] sm:$0xff]  ;;  %v5521_v20 = vld [vmem:[%s5215_s8 + $0x90] sm:$0xff]  ;;  %v656_v37 = vld [vmem:[%s7369_s1 + $0x1c0] sm:$0xff] }
  0x4c   : > { %7498 = vst [vmem:[#allocation11_spill] sm:$0xff] %v5394_v24  ;;  %7499 = vst [vmem:[#allocation12_spill] sm:$0xff] %v5415_v33  ;;  %v371_v25 = vrot.slane %v5521_v20, 1 }
  0x4d   : > { %3992 = vmatpush1.bf16.msra.mxu0 %v3991_v23 }
  0x4e   : > { %3993 = vmatprep.subr.bf16.mxu0 %v7378_v0 }
  0x51   : > { %3995 = vmatpush1.bf16.msra.mxu0 %v3994_v26  ;;  %v640_v26 = vld [vmem:[%s7369_s1 + $0x140] sm:$0xff] }
  0x52   : > { %3996 = vmatprep.subr.bf16.mxu0 %v7378_v0  ;;  %v4036_v30 = vpack.c.bf16 %v641_v27, %v640_v26  ;;  %v654_v27 = vld [vmem:[%s7369_s1 + $0x1b0] sm:$0xff] }
  0x55   : > { %3998 = vmatpush1.bf16.msra.mxu0 %v3997_v29  ;;  %v5408_v29 = vld [vmem:[%s5215_s8 + $0x50] sm:$0xff] }
  0x56   : > { %3999 = vmatprep.subr.bf16.mxu0 %v7378_v0 }
  0x59   : > { %4001 = vmatpush1.bf16.msra.mxu0 %v4000_v32  ;;  %v7377_v32 = vrot.slane %v5369_v15, 2 }
  0x5a   : > { %4002 = vmatprep.subr.bf16.mxu0 %v7378_v0 }
  0x5b   : > { %v5432_v39 = vsel %vm453_vm1, %v464_v31, %v7377_v32  ;;  %v5541_v31 = vld [vmem:[%s5215_s8 + $0xa0] sm:$0x3] }
  0x5c   : > { %3847 = vmatprep.mubr.f32.mxu1 %v5432_v39  ;;  %v374_v36 = vrot.slane %v5541_v31, 1  ;;  %v5690_v32 = vld [vmem:[%s5215_s8 + $0x120] sm:$0xff] }
  0x5d   : > { %4004 = vmatpush1.bf16.msra.mxu0 %v4003_v35  ;;  %v357_v35 = vrot.slane %v5408_v29, 1 }
  0x5e   : > { %4005 = vmatprep.subr.bf16.mxu0 %v7378_v0 }
  0x61   : > { %4007 = vmatpush1.bf16.msra.mxu0 %v4006_v38  ;;  %v5427_v38 = vld [vmem:[%s5215_s8 + $0x58] sm:$0x3] }
  0x62   : > { %4008 = vmatprep.subr.bf16.mxu0 %v7378_v0  ;;  %v359_v42 = vrot.slane %v5427_v38, 1 }
  0x64   : > { %v5457_v48 = vsel %vm340_vm0, %v357_v35, %v359_v42  ;;  %v5557_v42 = vld [vmem:[%s5215_s8 + $0xa8] sm:$0xff] }
  0x65   : > { %4010 = vmatpush1.bf16.msra.mxu0 %v4009_v41  ;;  %v5438_v41 = vsel %vm340_vm0, %v356_v34, %v357_v35  ;;  %7501 = vst [vmem:[#allocation14_spill] sm:$0xff] %v5457_v48 }
  0x66   : > { %4011 = vmatprep.subr.bf16.mxu0 %v7378_v0  ;;  %7500 = vst [vmem:[#allocation13_spill] sm:$0xff] %v5438_v41 }
  0x69   : > { %4013 = vmatpush1.bf16.msra.mxu0 %v4012_v44  ;;  %v645_v44 = vld [vmem:[%s7369_s1 + $0x168] sm:$0xff] }
  0x6a   : > { %4014 = vmatprep.subr.bf16.mxu0 %v7378_v0 }
  0x6d   : > { %4016 = vmatpush1.bf16.msra.mxu0 %v4015_v47  ;;  %v4042_v47 = vpack.c.bf16 %v645_v44, %v644_v43  ;;  %v5560_v43 = vld [vmem:[%s5215_s8 + $0xb0] sm:$0xff] }
  0x6e   : > { %4017 = vmatprep.subr.bf16.mxu0 %v7378_v0 }
  0x71   : > { %4019 = vmatpush1.bf16.msra.mxu0 %v4018_v50  ;;  %v362_v50 = vrot.slane %v5452_v46, 1 }
  0x72   : > { %4020 = vmatprep.subr.bf16.mxu0 %v7378_v0 }
  0x73   : > { %v5474_v55 = vsel %vm340_vm0, %v361_v49, %v362_v50  ;;  %v5493_v1 = vsel %vm340_vm0, %v362_v50, %v364_v56  ;;  %v376_v49 = vrot.slane %v5557_v42, 1  ;;  %v377_v50 = vrot.slane %v5560_v43, 1 }
  0x74   : > { %7502 = vst [vmem:[#allocation15_spill] sm:$0xff] %v5474_v55  ;;  %7503 = vst [vmem:[#allocation16_spill] sm:$0xff] %v5493_v1 }
  0x75   : > { %4022 = vmatpush1.bf16.msra.mxu0 %v4021_v54  ;;  %v4045_v54 = vpack.c.bf16 %v647_v52, %v646_v51  ;;  %v658_v51 = vld [vmem:[%s7369_s1 + $0x1d0] sm:$0xff]  ;;  %v659_v52 = vld [vmem:[%s7369_s1 + $0x1d8] sm:$0xff] }
  0x76   : > { %4023 = vmatprep.subr.bf16.mxu0 %v7378_v0  ;;  %v4063_v56 = vpack.c.bf16 %v659_v52, %v658_v51  ;;  %v5646_v52 = vld [vmem:[%s5215_s8 + $0xf0] sm:$0xff] }
  0x78   : > { %816 = vmatmul.mubr.f32.vlgmr.msra.gmra.mrb[0].mxu0 %v5225_v12  ;;  %v637_v12 = vld [vmem:[%s7369_s1 + $0x128] sm:$0xff] }
  0x79   : > { %4025 = vmatpush1.bf16.msra.mxu0 %v4024_v62  ;;  %820 = vmatprep.mubr.f32.mxu0 %v345_v63  ;;  %v4030_v17 = vpack.c.bf16 %v637_v12, %v636_v11  ;;  %v5488_v62 = vld [vmem:[%s5215_s8 + $0x80] sm:$0xff]  ;;  %v4048_v63 = vpack.c.bf16 %v649_v58, %v648_v57  ;;  %v369_v12 = vrot.slane %v5505_v8, 1  ;;  %v5582_v57 = vsel %vm340_vm0, %v376_v49, %v377_v50  ;;  %v5637_v49 = vld [vmem:[%s5215_s8 + $0xe8] sm:$0x3] }
  0x7a   : > { %4026 = vmatprep.subr.bf16.mxu0 %v7378_v0  ;;  %v367_v3 = vrot.slane %v5488_v62, 1  ;;  %7508 = vst [vmem:[#allocation21_spill] sm:$0xff] %v5582_v57  ;;  %v389_v51 = vrot.slane %v5637_v49, 1 }
  0x7c   : > { %821 = vmatmul.mubr.f32.gmra.mrb[2].mxu0 %v5228_v14  ;;  %v639_v14 = vld [vmem:[%s7369_s1 + $0x138] sm:$0xff]  ;;  %v5510_v11 = vsel %vm340_vm0, %v366_v2, %v367_v3  ;;  %v661_v2 = vld [vmem:[%s7369_s1 + $0x1e8] sm:$0xff] }
  0x7d   : > { %825 = vmatprep.mubr.f32.mxu0 %v5355_v9  ;;  %4028 = vmatpush1.bf16.msra.mxu0 %v4027_v7  ;;  %v4033_v23 = vpack.c.bf16 %v639_v14, %v638_v21  ;;  %v651_v7 = vld [vmem:[%s7369_s1 + $0x198] sm:$0xff]  ;;  %7504 = vst [vmem:[#allocation17_spill] sm:$0xff] %v5510_v11 }
  0x7e   : > { %4029 = vmatprep.subr.bf16.mxu0 %v7378_v0  ;;  %v4051_v10 = vpack.c.bf16 %v651_v7, %v650_v4  ;;  %v5524_v21 = vld [vmem:[%s5215_s8 + $0x98] sm:$0xff]  ;;  %v5596_v4 = vld [vmem:[%s5215_s8 + $0xc8] sm:$0xff] }
  0x7f   : > { %v372_v26 = vrot.slane %v5524_v21, 1 }
  0x80   : > { %826 = vmatmul.mubr.f32.gmra.mrb[4].mxu0 %v5330_v60 }
  0x81   : > { %830 = vmatprep.mubr.f32.mxu0 %v5377_v18  ;;  %4031 = vmatpush1.bf16.msra.mxu0 %v4030_v17  ;;  %v652_v17 = vld [vmem:[%s7369_s1 + $0x1a0] sm:$0xff]  ;;  %v5546_v35 = vsel %vm340_vm0, %v371_v25, %v372_v26  ;;  %v5613_v25 = vld [vmem:[%s5215_s8 + $0xd0] sm:$0x3] }
  0x82   : > { %4032 = vmatprep.subr.bf16.mxu0 %v7378_v0  ;;  %v4054_v14 = vpack.c.bf16 %v653_v19, %v652_v17  ;;  %7506 = vst [vmem:[#allocation19_spill] sm:$0xff] %v5546_v35  ;;  %v382_v17 = vrot.slane %v5596_v4, 1  ;;  %v662_v19 = vld [vmem:[%s7369_s1 + $0x1f0] sm:$0xff] }
  0x84   : > { %831 = vmatmul.mubr.f32.gmra.mrb[6].mxu0 %v5333_v61 }
  0x85   : > { %835 = vmatprep.mubr.f32.mxu0 %v5394_v24  ;;  %4034 = vmatpush1.bf16.msra.mxu0 %v4033_v23  ;;  %v5529_v23 = vsel %vm340_vm0, %v367_v3, %v369_v12  ;;  %v5593_v3 = vld [vmem:[%s5215_s8 + $0xc0] sm:$0xff] }
  0x86   : > { %4035 = vmatprep.subr.bf16.mxu0 %v7378_v0  ;;  %7505 = vst [vmem:[#allocation18_spill] sm:$0xff] %v5529_v23  ;;  %v381_v12 = vrot.slane %v5593_v3, 1 }
  0x88   : > { %836 = vmatmul.mubr.f32.gmra.mrb[8].mxu0 %v5366_v13 }
  0x89   : > { %840 = vmatprep.mubr.f32.mxu0 %v5415_v33  ;;  %4037 = vmatpush1.bf16.msra.mxu0 %v4036_v30  ;;  %v655_v30 = vld [vmem:[%s7369_s1 + $0x1b8] sm:$0xff] }
  0x8a   : > { %4038 = vmatprep.subr.bf16.mxu0 %v7378_v0  ;;  %v4057_v34 = vpack.c.bf16 %v655_v30, %v654_v27  ;;  %v5618_v27 = vsel %vm340_vm0, %v381_v12, %v382_v17  ;;  %v384_v30 = vrot.slane %v5613_v25, 1 }
  0x8b   : > { %7510 = vst [vmem:[#allocation23_spill] sm:$0xff] %v5618_v27 }
  0x8c   : > { %841 = vmatmul.mubr.f32.gmra.mrb[10].mxu0 %v5369_v15 }
  0x8d   : > { %845 = vmatprep.mubr.f32.mxu0 %v5438_v41  ;;  %4040 = vmatpush1.bf16.msra.mxu0 %v4039_v40  ;;  %v657_v40 = vld [vmem:[%s7369_s1 + $0x1c8] sm:$0xff] }
  0x8e   : > { %4041 = vmatprep.subr.bf16.mxu0 %v7378_v0  ;;  %v4060_v44 = vpack.c.bf16 %v657_v40, %v656_v37  ;;  %v5631_v37 = vsel %vm340_vm0, %v382_v17, %v384_v30 }
  0x8f   : > { %7511 = vst [vmem:[#allocation24_spill] sm:$0xff] %v5631_v37 }
  0x90   : > { %846 = vmatmul.mubr.f32.gmra.mrb[12].mxu0 %v5405_v28 }
  0x91   : > { %850 = vmatprep.mubr.f32.mxu0 %v5457_v48  ;;  %4043 = vmatpush1.bf16.msra.mxu0 %v4042_v47  ;;  %v5565_v47 = vsel %vm340_vm0, %v372_v26, %v374_v36  ;;  %v5626_v36 = vld [vmem:[%s5215_s8 + $0xe0] sm:$0xff] }
  0x92   : > { %4044 = vmatprep.subr.bf16.mxu0 %v7378_v0  ;;  %7507 = vst [vmem:[#allocation20_spill] sm:$0xff] %v5565_v47 }
  0x94   : > { %851 = vmatmul.mubr.f32.gmra.mrb[14].mxu0 %v5408_v29 }
  0x95   : > { %855 = vmatprep.mubr.f32.mxu0 %v5474_v55  ;;  %4046 = vmatpush1.bf16.msra.mxu0 %v4045_v54  ;;  %v5577_v54 = vld [vmem:[%s5215_s8 + $0xb8] sm:$0x3] }
  0x96   : > { %4047 = vmatprep.subr.bf16.mxu0 %v7378_v0  ;;  %v379_v58 = vrot.slane %v5577_v54, 1 }
  0x98   : > { %856 = vmatmul.mubr.f32.gmra.mrb[16].mxu0 %v5449_v45 }
  0x99   : > { %860 = vmatprep.mubr.f32.mxu0 %v5493_v1  ;;  %4049 = vmatpush1.bf16.msra.mxu0 %v4048_v63  ;;  %v660_v63 = vld [vmem:[%s7369_s1 + $0x1e0] sm:$0xff]  ;;  %v7526_v1 = vmov 0.0|0.0  }
  0x9a   : > { %4050 = vmatprep.subr.bf16.mxu0 %v7378_v0  ;;  %v4066_v7 = vpack.c.bf16 %v661_v2, %v660_v63  ;;  %v391_v63 = vrot.slane %v5646_v52, 1 }
  0x9c   : > { %861 = vmatmul.mubr.f32.gmra.mrb[18].mxu0 %v5452_v46 }
  0x9d   : > { %865 = vmatprep.mubr.f32.mxu0 %v5510_v11  ;;  %4052 = vmatpush1.bf16.msra.mxu0 %v4051_v10  ;;  %v5601_v10 = vsel %vm340_vm0, %v377_v50, %v379_v58 }
  0x9e   : > { %4053 = vmatprep.subr.bf16.mxu0 %v7378_v0  ;;  %7509 = vst [vmem:[#allocation22_spill] sm:$0xff] %v5601_v10 }
  0xa0   : > { %866 = vmatmul.mubr.f32.gmra.mrb[20].mxu0 %v5485_v59 }
  0xa1   : > { %870 = vmatprep.mubr.f32.mxu0 %v5529_v23  ;;  %4055 = vmatpush1.bf16.msra.mxu0 %v4054_v14  ;;  %v663_v14 = vld [vmem:[%s7369_s1 + $0x1f8] sm:$0xff] }
  0xa2   : > { %4056 = vmatprep.subr.bf16.mxu0 %v7378_v0  ;;  %v4069_v26 = vpack.c.bf16 %v663_v14, %v662_v19  ;;  %v5668_v19 = vld [vmem:[%s5215_s8 + $0x108] sm:$0xff]  ;;  %v5671_v14 = vld [vmem:[%s5215_s8 + $0x110] sm:$0xff]  ;;  %v5769_v23 = vld [vmem:[%s5215_s8 + $0x178] sm:$0x3] }
  0xa3   : > { %v396_v30 = vrot.slane %v5668_v19, 1  ;;  %v419_v11 = vrot.slane %v5769_v23, 1 }
  0xa4   : > { %871 = vmatmul.mubr.f32.gmra.mrb[22].mxu0 %v5488_v62 }
  0xa5   : > { %875 = vmatprep.mubr.f32.mxu0 %v5546_v35  ;;  %4058 = vmatpush1.bf16.msra.mxu0 %v4057_v34  ;;  %v5623_v34 = vld [vmem:[%s5215_s8 + $0xd8] sm:$0xff]  ;;  %v5759_v35 = vld [vmem:[%s5215_s8 + $0x170] sm:$0xff] }
  0xa6   : > { %4059 = vmatprep.subr.bf16.mxu0 %v7378_v0  ;;  %v386_v40 = vrot.slane %v5623_v34, 1 }
  0xa8   : > { %876 = vmatmul.mubr.f32.gmra.mrb[24].mxu0 %v5521_v20 }
  0xa9   : > { %880 = vmatprep.mubr.f32.mxu0 %v5565_v47  ;;  %4061 = vmatpush1.bf16.msra.mxu0 %v4060_v44  ;;  %v387_v44 = vrot.slane %v5626_v36, 1 }
  0xaa   : > { %4062 = vmatprep.subr.bf16.mxu0 %v7378_v0 }
  0xab   : > { %v5642_v50 = vsel %vm340_vm0, %v386_v40, %v387_v44  ;;  %v5654_v58 = vsel %vm340_vm0, %v387_v44, %v389_v51  ;;  %v397_v40 = vrot.slane %v5671_v14, 1  ;;  %v5681_v44 = vld [vmem:[%s5215_s8 + $0x118] sm:$0x3] }
  0xac   : > { %881 = vmatmul.mubr.f32.gmra.mrb[26].mxu0 %v5524_v21  ;;  %7512 = vst [vmem:[#allocation25_spill] sm:$0xff] %v5642_v50  ;;  %7513 = vst [vmem:[#allocation26_spill] sm:$0xff] %v5654_v58 }
  0xad   : > { %885 = vmatprep.mubr.f32.mxu0 %v5582_v57  ;;  %4064 = vmatpush1.bf16.msra.mxu0 %v4063_v56  ;;  %v5649_v56 = vld [vmem:[%s5215_s8 + $0xf8] sm:$0xff]  ;;  %v5686_v51 = vsel %vm340_vm0, %v396_v30, %v397_v40  ;;  %v5703_v30 = vld [vmem:[%s5215_s8 + $0x130] sm:$0x3] }
  0xae   : > { %4065 = vmatprep.subr.bf16.mxu0 %v7378_v0  ;;  %v392_v2 = vrot.slane %v5649_v56, 1  ;;  %7516 = vst [vmem:[#allocation29_spill] sm:$0xff] %v5686_v51 }
  0xb0   : > { %886 = vmatmul.mubr.f32.gmra.mrb[28].mxu0 %v5557_v42  ;;  %v5664_v12 = vsel %vm340_vm0, %v391_v63, %v392_v2  ;;  %v399_v63 = vrot.slane %v5681_v44, 1 }
  0xb1   : > { %890 = vmatprep.mubr.f32.mxu0 %v5601_v10  ;;  %4067 = vmatpush1.bf16.msra.mxu0 %v4066_v7  ;;  %v5659_v7 = vld [vmem:[%s5215_s8 + $0x100] sm:$0x3]  ;;  %7514 = vst [vmem:[#allocation27_spill] sm:$0xff] %v5664_v12 }
  0xb2   : > { %4068 = vmatprep.subr.bf16.mxu0 %v7378_v0  ;;  %v394_v17 = vrot.slane %v5659_v7, 1 }
  0xb4   : > { %891 = vmatmul.mubr.f32.gmra.mrb[30].mxu0 %v5560_v43 }
  0xb5   : > { %895 = vmatprep.mubr.f32.mxu0 %v5618_v27  ;;  %4070 = vmatpush1.bf16.msra.mxu0 %v4069_v26  ;;  %v5676_v26 = vsel %vm340_vm0, %v392_v2, %v394_v17  ;;  %v5693_v2 = vld [vmem:[%s5215_s8 + $0x128] sm:$0xff]  ;;  %v5698_v17 = vsel %vm340_vm0, %v397_v40, %v399_v63  ;;  %v5715_v40 = vld [vmem:[%s5215_s8 + $0x140] sm:$0xff]  ;;  %v5734_v27 = vld [vmem:[%s5215_s8 + $0x150] sm:$0xff] }
  0xb6   : > { %4071 = vmatprep.subr.bf16.mxu0 %v7378_v0  ;;  %7515 = vst [vmem:[#allocation28_spill] sm:$0xff] %v5676_v26  ;;  %7517 = vst [vmem:[#allocation30_spill] sm:$0xff] %v5698_v17  ;;  %v401_v0 = vrot.slane %v5690_v32, 1 }
  0xb8   : > { %896 = vmatmul.mubr.f32.gmra.mrb[32].mxu0 %v5593_v3 }
  0xb9   : > { %900 = vmatprep.mubr.f32.mxu0 %v5631_v37 }
  0xbc   : > { %901 = vmatmul.mubr.f32.gmra.mrb[34].mxu0 %v5596_v4 }
  0xbd   : > { %905 = vmatprep.mubr.f32.mxu0 %v5642_v50  ;;  %v407_v50 = vrot.slane %v5715_v40, 1 }
  0xc0   : > { %906 = vmatmul.mubr.f32.gmra.mrb[36].mxu0 %v5623_v34 }
  0xc1   : > { %910 = vmatprep.mubr.f32.mxu0 %v5654_v58  ;;  %v5712_v58 = vld [vmem:[%s5215_s8 + $0x138] sm:$0xff] }
  0xc4   : > { %911 = vmatmul.mubr.f32.gmra.mrb[38].mxu0 %v5626_v36 }
  0xc5   : > { %915 = vmatprep.mubr.f32.mxu0 %v5664_v12 }
  0xc8   : > { %916 = vmatmul.mubr.f32.gmra.mrb[40].mxu0 %v5646_v52 }
  0xc9   : > { %920 = vmatprep.mubr.f32.mxu0 %v5676_v26  ;;  %v402_v26 = vrot.slane %v5693_v2, 1 }
  0xcb   : > { %v5708_v12 = vsel %vm340_vm0, %v401_v0, %v402_v26  ;;  %v5725_v0 = vld [vmem:[%s5215_s8 + $0x148] sm:$0x3] }
  0xcc   : > { %921 = vmatmul.mubr.f32.gmra.mrb[42].mxu0 %v5649_v56  ;;  %7518 = vst [vmem:[#allocation31_spill] sm:$0xff] %v5708_v12 }
  0xcd   : > { %925 = vmatprep.mubr.f32.mxu0 %v5686_v51  ;;  %v404_v51 = vrot.slane %v5703_v30, 1 }
  0xcf   : > { %v5720_v63 = vsel %vm340_vm0, %v402_v26, %v404_v51  ;;  %v5737_v26 = vld [vmem:[%s5215_s8 + $0x158] sm:$0xff] }
  0xd0   : > { %926 = vmatmul.mubr.f32.gmra.mrb[44].mxu0 %v5668_v19  ;;  %7519 = vst [vmem:[#allocation32_spill] sm:$0xff] %v5720_v63  ;;  %v412_v10 = vrot.slane %v5737_v26, 1 }
  0xd1   : > { %930 = vmatprep.mubr.f32.mxu0 %v5698_v17  ;;  %v406_v17 = vrot.slane %v5712_v58, 1 }
  0xd3   : > { %v5730_v37 = vsel %vm340_vm0, %v406_v17, %v407_v50  ;;  %v5747_v17 = vld [vmem:[%s5215_s8 + $0x160] sm:$0x3] }
  0xd4   : > { %931 = vmatmul.mubr.f32.gmra.mrb[46].mxu0 %v5671_v14  ;;  %7520 = vst [vmem:[#allocation33_spill] sm:$0xff] %v5730_v37  ;;  %v414_v47 = vrot.slane %v5747_v17, 1 }
  0xd5   : > { %935 = vmatprep.mubr.f32.mxu0 %v5708_v12  ;;  %v409_v12 = vrot.slane %v5725_v0, 1 }
  0xd7   : > { %v5742_v51 = vsel %vm340_vm0, %v407_v50, %v409_v12  ;;  %v5764_v50 = vsel %vm340_vm0, %v412_v10, %v414_v47 }
  0xd8   : > { %936 = vmatmul.mubr.f32.gmra.mrb[48].mxu0 %v5690_v32  ;;  %7521 = vst [vmem:[#allocation34_spill] sm:$0xff] %v5742_v51  ;;  %7523 = vst [vmem:[#allocation36_spill] sm:$0xff] %v5764_v50 }
  0xd9   : > { %940 = vmatprep.mubr.f32.mxu0 %v5720_v63  ;;  %v411_v63 = vrot.slane %v5734_v27, 1 }
  0xdb   : > { %v5752_v57 = vsel %vm340_vm0, %v411_v63, %v412_v10  ;;  %v664_v10 = vld [vmem:[%s7369_s1 + $0x200] sm:$0xff] }
  0xdc   : > { %941 = vmatmul.mubr.f32.gmra.mrb[50].mxu0 %v5693_v2  ;;  %7522 = vst [vmem:[#allocation35_spill] sm:$0xff] %v5752_v57 }
  0xdd   : > { %945 = vmatprep.mubr.f32.mxu0 %v5730_v37  ;;  %v5756_v37 = vld [vmem:[%s5215_s8 + $0x168] sm:$0xff] }
  0xde   : > { %v416_v12 = vrot.slane %v5756_v37, 1 }
  0xe0   : > { %946 = vmatmul.mubr.f32.gmra.mrb[52].mxu0 %v5712_v58 }
  0xe1   : > { %950 = vmatprep.mubr.f32.mxu0 %v5742_v51  ;;  %v417_v51 = vrot.slane %v5759_v35, 1 }
  0xe3   : > { %v5774_v63 = vsel %vm340_vm0, %v416_v12, %v417_v51  ;;  %v5780_v47 = vsel %vm340_vm0, %v417_v51, %v419_v11  ;;  %v665_v12 = vld [vmem:[%s7369_s1 + $0x208] sm:$0xff]  ;;  %v666_v11 = vld [vmem:[%s7369_s1 + $0x210] sm:$0xff]  ;;  %v667_v51 = vld [vmem:[%s7369_s1 + $0x218] sm:$0xff] }
  0xe4   : > { %951 = vmatmul.mubr.f32.gmra.mrb[54].mxu0 %v5715_v40  ;;  %7524 = vst [vmem:[#allocation37_spill] sm:$0xff] %v5774_v63  ;;  %7525 = vst [vmem:[#allocation38_spill] sm:$0xff] %v5780_v47 }
  0xe5   : > { %955 = vmatprep.mubr.f32.mxu0 %v5752_v57  ;;  %v4075_v57 = vpack.c.bf16 %v667_v51, %v666_v11  ;;  %v671_v11 = vld [vmem:[%s7369_s1 + $0x238] sm:$0xff]  ;;  %v674_v51 = vld [vmem:[%s7369_s1 + $0x250] sm:$0xff] }
  0xe8   : > { %956 = vmatmul.mubr.f32.gmra.mrb[56].mxu0 %v5734_v27 }
  0xe9   : > { %960 = vmatprep.mubr.f32.mxu0 %v5764_v50  ;;  %v460_v50 = vrot.slane %v5333_v61, 2 }
  0xec   : > { %961 = vmatmul.mubr.f32.gmra.mrb[58].mxu0 %v5737_v26 }
  0xed   : > { %965 = vmatprep.mubr.f32.mxu0 %v5774_v63  ;;  %v4072_v63 = vpack.c.bf16 %v665_v12, %v664_v10  ;;  %v668_v10 = vld [vmem:[%s7369_s1 + $0x220] sm:$0xff]  ;;  %v669_v12 = vld [vmem:[%s7369_s1 + $0x228] sm:$0xff] }
  0xf0   : > { %966 = vmatmul.mubr.f32.gmra.mrb[60].mxu0 %v5756_v37 }
  0xf1   : > { %970 = vmatprep.mubr.f32.mxu0 %v5780_v47  ;;  %v459_v47 = vrot.slane %v5330_v60, 2 }
  0xf4   : > { %971 = vmatmul.mubr.f32.gmra.mrb[62].mxu0 %v5759_v35 }
  0xf5   : > { %1040 = vmatprep.mubr.f32.mxu0 %v5330_v60  ;;  %v462_v60 = vrot.slane %v5351_v6, 2 }
  0xf8   : > { %1041 = vmatmul.mubr.f32.vlgmr.msra.gmra.mrb[0].mxu0 %v5348_v5  ;;  %v5812_v5 = vsel %vm453_vm1, %v459_v47, %v460_v50  ;;  %v467_v47 = vrot.slane %v5389_v22, 2 }
  0xf9   : > { %4073 = vmatpush1.bf16.msra.mxu0 %v4072_v63  ;;  %1045 = vmatprep.mubr.f32.mxu0 %v5333_v61  ;;  %v4078_v61 = vpack.c.bf16 %v669_v12, %v668_v10  ;;  %v670_v63 = vld [vmem:[%s7369_s1 + $0x230] sm:$0xff]  ;;  %v675_v10 = vld [vmem:[%s7369_s1 + $0x258] sm:$0xff]  ;;  %v7527_v12 = vrot.slane %v5369_v15, 2 }
  0xfa   : > { %4074 = vmatprep.subr.bf16.mxu0 %v7526_v1  ;;  %v4081_v6 = vpack.c.bf16 %v671_v11, %v670_v63  ;;  %v4087_v63 = vpack.c.bf16 %v675_v10, %v674_v51  ;;  %v676_v11 = vld [vmem:[%s7369_s1 + $0x260] sm:$0xff] }
  0xfb   : > { %v5849_v22 = vsel %vm453_vm1, %v7527_v12, %v467_v47  ;;  %v680_v10 = vld [vmem:[%s7369_s1 + $0x280] sm:$0xff]  ;;  %v681_v12 = vld [vmem:[%s7369_s1 + $0x288] sm:$0xff] }
  0xfc   : > { %1046 = vmatmul.mubr.f32.gmra.mrb[2].mxu0 %v5372_v16  ;;  %v672_v16 = vld [vmem:[%s7369_s1 + $0x240] sm:$0xff] }
  0xfd   : > { %1050 = vmatprep.mubr.f32.mxu0 %v5366_v13  ;;  %4076 = vmatpush1.bf16.msra.mxu0 %v4075_v57  ;;  %v5825_v13 = vsel %vm453_vm1, %v460_v50, %v462_v60  ;;  %v673_v57 = vld [vmem:[%s7369_s1 + $0x248] sm:$0xff]  ;;  %v469_v60 = vrot.slane %v5405_v28, 2 }
  0xfe   : > { %4077 = vmatprep.subr.bf16.mxu0 %v7526_v1  ;;  %v4084_v50 = vpack.c.bf16 %v673_v57, %v672_v16  ;;  %v678_v16 = vld [vmem:[%s7369_s1 + $0x270] sm:$0xff]  ;;  %v679_v57 = vld [vmem:[%s7369_s1 + $0x278] sm:$0xff] }
  0xff   : > { %v4093_v51 = vpack.c.bf16 %v679_v57, %v678_v16  ;;  %v685_v16 = vld [vmem:[%s7369_s1 + $0x2a8] sm:$0xff] }
 0x100   : > { %1051 = vmatmul.mubr.f32.gmra.mrb[4].mxu0 %v5812_v5 }
 0x101   : > { %1055 = vmatprep.mubr.f32.mxu0 %v5369_v15  ;;  %4079 = vmatpush1.bf16.msra.mxu0 %v4078_v61  ;;  %v470_v61 = vrot.slane %v5408_v29, 2 }
 0x102   : > { %4080 = vmatprep.subr.bf16.mxu0 %v7526_v1 }
 0x103   : > { %v5863_v15 = vsel %vm453_vm1, %v469_v60, %v470_v61  ;;  %v4096_v60 = vpack.c.bf16 %v681_v12, %v680_v10  ;;  %v485_v10 = vrot.slane %v5524_v21, 2 }
 0x104   : > { %1056 = vmatmul.mubr.f32.gmra.mrb[6].mxu0 %v5825_v13 }
 0x105   : > { %1060 = vmatprep.mubr.f32.mxu0 %v5405_v28  ;;  %4082 = vmatpush1.bf16.msra.mxu0 %v4081_v6  ;;  %v677_v6 = vld [vmem:[%s7369_s1 + $0x268] sm:$0xff]  ;;  %v472_v28 = vrot.slane %v5427_v38, 2  ;;  %v474_v38 = vrot.slane %v5449_v45, 2 }
 0x106   : > { %4083 = vmatprep.subr.bf16.mxu0 %v7526_v1 }
 0x107   : > { %v5876_v47 = vsel %vm453_vm1, %v470_v61, %v472_v28  ;;  %v682_v61 = vld [vmem:[%s7369_s1 + $0x290] sm:$0xff] }
 0x108   : > { %1061 = vmatmul.mubr.f32.gmra.mrb[8].mxu0 %v5432_v39 }
 0x109   : > { %1065 = vmatprep.mubr.f32.mxu0 %v5408_v29  ;;  %4085 = vmatpush1.bf16.msra.mxu0 %v4084_v50  ;;  %v4090_v29 = vpack.c.bf16 %v677_v6, %v676_v11  ;;  %v475_v50 = vrot.slane %v5452_v46, 2  ;;  %v480_v6 = vrot.slane %v5488_v62, 2 }
 0x10a   : > { %4086 = vmatprep.subr.bf16.mxu0 %v7526_v1 }
 0x10c   : > { %1066 = vmatmul.mubr.f32.gmra.mrb[10].mxu0 %v5849_v22 }
 0x10d   : > { %1070 = vmatprep.mubr.f32.mxu0 %v5449_v45  ;;  %4088 = vmatpush1.bf16.msra.mxu0 %v4087_v63  ;;  %v5890_v45 = vsel %vm453_vm1, %v474_v38, %v475_v50  ;;  %v683_v63 = vld [vmem:[%s7369_s1 + $0x298] sm:$0xff]  ;;  %v686_v38 = vld [vmem:[%s7369_s1 + $0x2b0] sm:$0xff] }
 0x10e   : > { %4089 = vmatprep.subr.bf16.mxu0 %v7526_v1  ;;  %v4099_v28 = vpack.c.bf16 %v683_v63, %v682_v61  ;;  %v690_v63 = vld [vmem:[%s7369_s1 + $0x2d0] sm:$0xff] }
 0x110   : > { %1071 = vmatmul.mubr.f32.gmra.mrb[12].mxu0 %v5863_v15 }
 0x111   : > { %1075 = vmatprep.mubr.f32.mxu0 %v5452_v46  ;;  %4091 = vmatpush1.bf16.msra.mxu0 %v4090_v29  ;;  %v477_v46 = vrot.slane %v5469_v53, 2  ;;  %v479_v53 = vrot.slane %v5485_v59, 2  ;;  %v684_v29 = vld [vmem:[%s7369_s1 + $0x2a0] sm:$0xff] }
 0x112   : > { %4092 = vmatprep.subr.bf16.mxu0 %v7526_v1  ;;  %v4102_v57 = vpack.c.bf16 %v685_v16, %v684_v29  ;;  %v692_v16 = vld [vmem:[%s7369_s1 + $0x2e0] sm:$0xff] }
 0x113   : > { %v5903_v11 = vsel %vm453_vm1, %v475_v50, %v477_v46  ;;  %v687_v50 = vld [vmem:[%s7369_s1 + $0x2b8] sm:$0xff]  ;;  %v688_v46 = vld [vmem:[%s7369_s1 + $0x2c0] sm:$0xff] }
 0x114   : > { %1076 = vmatmul.mubr.f32.gmra.mrb[14].mxu0 %v5876_v47  ;;  %v4105_v12 = vpack.c.bf16 %v687_v50, %v686_v38  ;;  %v694_v38 = vld [vmem:[%s7369_s1 + $0x2f0] sm:$0xff]  ;;  %v695_v50 = vld [vmem:[%s7369_s1 + $0x2f8] sm:$0xff] }
 0x115   : > { %1080 = vmatprep.mubr.f32.mxu0 %v5485_v59  ;;  %4094 = vmatpush1.bf16.msra.mxu0 %v4093_v51  ;;  %v5917_v59 = vsel %vm453_vm1, %v479_v53, %v480_v6  ;;  %v691_v53 = vld [vmem:[%s7369_s1 + $0x2d8] sm:$0xff] }
 0x116   : > { %4095 = vmatprep.subr.bf16.mxu0 %v7526_v1  ;;  %v4111_v29 = vpack.c.bf16 %v691_v53, %v690_v63 }
 0x118   : > { %1081 = vmatmul.mubr.f32.gmra.mrb[16].mxu0 %v5890_v45 }
 0x119   : > { %1085 = vmatprep.mubr.f32.mxu0 %v5488_v62  ;;  %4097 = vmatpush1.bf16.msra.mxu0 %v4096_v60  ;;  %v482_v62 = vrot.slane %v5505_v8, 2  ;;  %v484_v8 = vrot.slane %v5521_v20, 2  ;;  %v689_v60 = vld [vmem:[%s7369_s1 + $0x2c8] sm:$0xff] }
 0x11a   : > { %4098 = vmatprep.subr.bf16.mxu0 %v7526_v1  ;;  %v4108_v61 = vpack.c.bf16 %v689_v60, %v688_v46  ;;  %v497_v60 = vrot.slane %v5613_v25, 2 }
 0x11b   : > { %v5930_v51 = vsel %vm453_vm1, %v480_v6, %v482_v62  ;;  %v693_v62 = vld [vmem:[%s7369_s1 + $0x2e8] sm:$0xff] }
 0x11c   : > { %1086 = vmatmul.mubr.f32.gmra.mrb[18].mxu0 %v5903_v11 }
 0x11d   : > { %1090 = vmatprep.mubr.f32.mxu0 %v5521_v20  ;;  %4100 = vmatpush1.bf16.msra.mxu0 %v4099_v28  ;;  %v5944_v20 = vsel %vm453_vm1, %v484_v8, %v485_v10  ;;  %v490_v28 = vrot.slane %v5560_v43, 2 }
 0x11e   : > { %4101 = vmatprep.subr.bf16.mxu0 %v7526_v1 }
 0x120   : > { %1091 = vmatmul.mubr.f32.gmra.mrb[20].mxu0 %v5917_v59 }
 0x121   : > { %1095 = vmatprep.mubr.f32.mxu0 %v5524_v21  ;;  %4103 = vmatpush1.bf16.msra.mxu0 %v4102_v57  ;;  %v487_v21 = vrot.slane %v5541_v31, 2  ;;  %v489_v31 = vrot.slane %v5557_v42, 2  ;;  %v4114_v57 = vpack.c.bf16 %v693_v62, %v692_v16  ;;  %v728_v62 = vld [vmem:[%s7369_s1 + $0x400] sm:$0xff] }
 0x122   : > { %4104 = vmatprep.subr.bf16.mxu0 %v7526_v1 }
 0x123   : > { %v5957_v6 = vsel %vm453_vm1, %v485_v10, %v487_v21  ;;  %v495_v10 = vrot.slane %v5596_v4, 2  ;;  %v500_v21 = vrot.slane %v5626_v36, 2 }
 0x124   : > { %1096 = vmatmul.mubr.f32.gmra.mrb[22].mxu0 %v5930_v51 }
 0x125   : > { %1100 = vmatprep.mubr.f32.mxu0 %v5557_v42  ;;  %4106 = vmatpush1.bf16.msra.mxu0 %v4105_v12  ;;  %v5971_v42 = vsel %vm453_vm1, %v489_v31, %v490_v28  ;;  %v4117_v12 = vpack.c.bf16 %v695_v50, %v694_v38  ;;  %v730_v38 = vld [vmem:[%s7369_s1 + $0x410] sm:$0xff]  ;;  %v731_v50 = vld [vmem:[%s7369_s1 + $0x418] sm:$0xff] }
 0x126   : > { %4107 = vmatprep.subr.bf16.mxu0 %v7526_v1 }
 0x128   : > { %1101 = vmatmul.mubr.f32.gmra.mrb[24].mxu0 %v5944_v20 }
 0x129   : > { %1105 = vmatprep.mubr.f32.mxu0 %v5560_v43  ;;  %4109 = vmatpush1.bf16.msra.mxu0 %v4108_v61  ;;  %v492_v43 = vrot.slane %v5577_v54, 2  ;;  %v494_v54 = vrot.slane %v5593_v3, 2  ;;  %v502_v61 = vrot.slane %v5637_v49, 2  ;;  %v507_v49 = vrot.slane %v5659_v7, 2 }
 0x12a   : > { %4110 = vmatprep.subr.bf16.mxu0 %v7526_v1  ;;  %v512_v7 = vrot.slane %v5681_v44, 2  ;;  %v517_v44 = vrot.slane %v5703_v30, 2  ;;  %v520_v30 = vrot.slane %v5715_v40, 2 }
 0x12b   : > { %v5984_v8 = vsel %vm453_vm1, %v490_v28, %v492_v43  ;;  %v5992_v46 = vsel %vm453_vm1, %v494_v54, %v495_v10  ;;  %v6012_v63 = vsel %vm453_vm1, %v500_v21, %v502_v61  ;;  %v729_v43 = vld [vmem:[%s7369_s1 + $0x408] sm:$0xff]  ;;  %v4171_v54 = vpack.c.bf16 %v731_v50, %v730_v38  ;;  %v734_v61 = vld [vmem:[%s7369_s1 + $0x430] sm:$0xff] }
 0x12c   : > { %1106 = vmatmul.mubr.f32.gmra.mrb[26].mxu0 %v5957_v6 }
 0x12d   : > { %1110 = vmatprep.mubr.f32.mxu0 %v5593_v3  ;;  %4112 = vmatpush1.bf16.msra.mxu0 %v4111_v29  ;;  %v5999_v3 = vsel %vm453_vm1, %v495_v10, %v497_v60 }
 0x12e   : > { %4113 = vmatprep.subr.bf16.mxu0 %v7526_v1 }
 0x130   : > { %1111 = vmatmul.mubr.f32.gmra.mrb[28].mxu0 %v5971_v42 }
 0x131   : > { %1115 = vmatprep.mubr.f32.mxu0 %v5596_v4  ;;  %4115 = vmatpush1.bf16.msra.mxu0 %v4114_v57  ;;  %v499_v4 = vrot.slane %v5623_v34, 2  ;;  %v519_v57 = vrot.slane %v5712_v58, 2 }
 0x132   : > { %4116 = vmatprep.subr.bf16.mxu0 %v7526_v1 }
 0x133   : > { %v6006_v25 = vsel %vm453_vm1, %v499_v4, %v500_v21  ;;  %v6070_v10 = vsel %vm453_vm1, %v519_v57, %v520_v30  ;;  %v525_v21 = vrot.slane %v5737_v26, 2  ;;  %v741_v57 = vld [vmem:[%s7369_s1 + $0x468] sm:$0xff] }
 0x134   : > { %1116 = vmatmul.mubr.f32.gmra.mrb[30].mxu0 %v5984_v8 }
 0x135   : > { %1120 = vmatprep.mubr.f32.mxu0 %v5623_v34  ;;  %4118 = vmatpush1.bf16.msra.mxu0 %v4117_v12  ;;  %v504_v34 = vrot.slane %v5646_v52, 2  ;;  %v733_v12 = vld [vmem:[%s7369_s1 + $0x428] sm:$0xff] }
 0x136   : > { %4119 = vmatprep.subr.bf16.mxu0 %v7526_v1 }
 0x138   : > { %1121 = vmatmul.mubr.f32.gmra.mrb[32].mxu0 %v5992_v46 }
 0x139   : > { %1125 = vmatprep.mubr.f32.mxu0 %v5626_v36  ;;  %v505_v36 = vrot.slane %v5649_v56, 2 }
 0x13b   : > { %v6019_v53 = vsel %vm453_vm1, %v504_v34, %v505_v36  ;;  %v6025_v31 = vsel %vm453_vm1, %v505_v36, %v507_v49  ;;  %v735_v34 = vld [vmem:[%s7369_s1 + $0x438] sm:$0xff]  ;;  %v736_v49 = vld [vmem:[%s7369_s1 + $0x440] sm:$0xff] }
 0x13c   : > { %1126 = vmatmul.mubr.f32.gmra.mrb[34].mxu0 %v5999_v3  ;;  %v4179_v36 = vpack.c.bf16 %v735_v34, %v734_v61  ;;  %v700_v61 = vld [vmem:[%s7369_s1 + $0x320] sm:$0xff]  ;;  %v701_v34 = vld [vmem:[%s7369_s1 + $0x328] sm:$0xff] }
 0x13d   : > { %1130 = vmatprep.mubr.f32.mxu0 %v5646_v52  ;;  %v509_v52 = vrot.slane %v5668_v19, 2 }
 0x140   : > { %1131 = vmatmul.mubr.f32.gmra.mrb[36].mxu0 %v6006_v25 }
 0x141   : > { %1135 = vmatprep.mubr.f32.mxu0 %v5649_v56  ;;  %v510_v56 = vrot.slane %v5671_v14, 2 }
 0x143   : > { %v6032_v28 = vsel %vm453_vm1, %v509_v52, %v510_v56  ;;  %v6038_v29 = vsel %vm453_vm1, %v510_v56, %v512_v7  ;;  %v737_v52 = vld [vmem:[%s7369_s1 + $0x448] sm:$0xff] }
 0x144   : > { %1136 = vmatmul.mubr.f32.gmra.mrb[38].mxu0 %v6012_v63  ;;  %v4183_v56 = vpack.c.bf16 %v737_v52, %v736_v49  ;;  %v704_v49 = vld [vmem:[%s7369_s1 + $0x340] sm:$0xff]  ;;  %v705_v52 = vld [vmem:[%s7369_s1 + $0x348] sm:$0xff] }
 0x145   : > { %1140 = vmatprep.mubr.f32.mxu0 %v5668_v19  ;;  %v514_v19 = vrot.slane %v5690_v32, 2 }
 0x148   : > { %1141 = vmatmul.mubr.f32.gmra.mrb[40].mxu0 %v6019_v53 }
 0x149   : > { %1145 = vmatprep.mubr.f32.mxu0 %v5671_v14  ;;  %v515_v14 = vrot.slane %v5693_v2, 2 }
 0x14b   : > { %v6045_v16 = vsel %vm453_vm1, %v514_v19, %v515_v14  ;;  %v530_v19 = vrot.slane %v5759_v35, 2 }
 0x14c   : > { %1146 = vmatmul.mubr.f32.gmra.mrb[42].mxu0 %v6025_v31 }
 0x14d   : > { %1150 = vmatprep.mubr.f32.mxu0 %v5690_v32  ;;  %v4167_v32 = vpack.c.bf16 %v729_v43, %v728_v62  ;;  %v6118_v62 = vld [vmem:[%s5215_s8 + $0x180] sm:$0xff] }
 0x14f   : > { %4168 = vmatprep.subr.bf16.mxu1 %v4167_v32 }
 0x150   : > { %1151 = vmatmul.mubr.f32.gmra.mrb[44].mxu0 %v6032_v28  ;;  %4170 = vmatpush3.bf16.msra.mxu1 %v4167_v32  ;;  %v740_v32 = vld [vmem:[%s7369_s1 + $0x460] sm:$0xff] }
 0x151   : > { %1155 = vmatprep.mubr.f32.mxu0 %v5693_v2  ;;  %v6057_v2 = vsel %vm453_vm1, %v515_v14, %v517_v44  ;;  %4172 = vmatprep.subr.bf16.mxu1 %v4171_v54  ;;  %v738_v14 = vld [vmem:[%s7369_s1 + $0x450] sm:$0xff]  ;;  %v739_v44 = vld [vmem:[%s7369_s1 + $0x458] sm:$0xff]  ;;  %v4191_v38 = vpack.c.bf16 %v741_v57, %v740_v32  ;;  %v713_v32 = vld [vmem:[%s7369_s1 + $0x388] sm:$0xff] }
 0x152   : > { %v4187_v43 = vpack.c.bf16 %v739_v44, %v738_v14  ;;  %v709_v14 = vld [vmem:[%s7369_s1 + $0x368] sm:$0xff]  ;;  %v710_v44 = vld [vmem:[%s7369_s1 + $0x370] sm:$0xff]  ;;  %v7528_v57 = vld [vmem:[#allocation16_spill] sm:$0xff] }
 0x154   : > { %1156 = vmatmul.mubr.f32.gmra.mrb[46].mxu0 %v6038_v29  ;;  %4174 = vmatpush3.bf16.msra.mxu1 %v4171_v54  ;;  %v743_v54 = vld [vmem:[%s7369_s1 + $0x478] sm:$0xff] }
 0x155   : > { %1160 = vmatprep.mubr.f32.mxu0 %v5712_v58  ;;  %v522_v58 = vrot.slane %v5725_v0, 2  ;;  %v524_v0 = vrot.slane %v5734_v27, 2 }
 0x157   : > { %v6082_v4 = vsel %vm453_vm1, %v520_v30, %v522_v58  ;;  %v6133_v30 = vld [vmem:[%s5215_s8 + $0x188] sm:$0xff]  ;;  %v696_v58 = vld [vmem:[%s7369_s1 + $0x300] sm:$0xff] }
 0x158   : > { %1161 = vmatmul.mubr.f32.gmra.mrb[48].mxu0 %v6045_v16 }
 0x159   : > { %1165 = vmatprep.mubr.f32.mxu0 %v5715_v40  ;;  %v732_v40 = vld [vmem:[%s7369_s1 + $0x420] sm:$0xff] }
 0x15a   : > { %v4175_v60 = vpack.c.bf16 %v733_v12, %v732_v40  ;;  %v697_v40 = vld [vmem:[%s7369_s1 + $0x308] sm:$0xff] }
 0x15c   : > { %1166 = vmatmul.mubr.f32.gmra.mrb[50].mxu0 %v6057_v2  ;;  %4176 = vmatprep.subr.bf16.mxu1 %v4175_v60 }
 0x15d   : > { %1170 = vmatprep.mubr.f32.mxu0 %v5734_v27  ;;  %4178 = vmatpush3.bf16.msra.mxu1 %v4175_v60  ;;  %v6095_v27 = vsel %vm453_vm1, %v524_v0, %v525_v21  ;;  %v4120_v60 = vpack.c.bf16 %v697_v40, %v696_v58  ;;  %v698_v0 = vld [vmem:[%s7369_s1 + $0x310] sm:$0xff]  ;;  %v716_v58 = vld [vmem:[%s7369_s1 + $0x3a0] sm:$0xff]  ;;  %v717_v40 = vld [vmem:[%s7369_s1 + $0x3a8] sm:$0xff] }
 0x15e   : > { %4180 = vmatprep.subr.bf16.mxu1 %v4179_v36 }
 0x160   : > { %1171 = vmatmul.mubr.f32.gmra.mrb[52].mxu0 %v6070_v10 }
 0x161   : > { %1175 = vmatprep.mubr.f32.mxu0 %v5737_v26  ;;  %v527_v26 = vrot.slane %v5747_v17, 2  ;;  %4182 = vmatpush3.bf16.msra.mxu1 %v4179_v36  ;;  %v529_v17 = vrot.slane %v5756_v37, 2  ;;  %v702_v36 = vld [vmem:[%s7369_s1 + $0x330] sm:$0xff] }
 0x162   : > { %4184 = vmatprep.subr.bf16.mxu1 %v4183_v56 }
 0x163   : > { %v6107_v7 = vsel %vm453_vm1, %v525_v21, %v527_v26  ;;  %v699_v21 = vld [vmem:[%s7369_s1 + $0x318] sm:$0xff] }
 0x164   : > { %1176 = vmatmul.mubr.f32.gmra.mrb[54].mxu0 %v6082_v4  ;;  %v703_v26 = vld [vmem:[%s7369_s1 + $0x338] sm:$0xff] }
 0x165   : > { %1180 = vmatprep.mubr.f32.mxu0 %v5756_v37  ;;  %4186 = vmatpush3.bf16.msra.mxu1 %v4183_v56  ;;  %v6123_v37 = vsel %vm453_vm1, %v529_v17, %v530_v19  ;;  %v706_v56 = vld [vmem:[%s7369_s1 + $0x350] sm:$0xff]  ;;  %v707_v17 = vld [vmem:[%s7369_s1 + $0x358] sm:$0xff] }
 0x166   : > { %4188 = vmatprep.subr.bf16.mxu1 %v4187_v43 }
 0x168   : > { %1181 = vmatmul.mubr.f32.gmra.mrb[56].mxu0 %v6095_v27 }
 0x169   : > { %1185 = vmatprep.mubr.f32.mxu0 %v5759_v35  ;;  %v532_v35 = vrot.slane %v5769_v23, 2  ;;  %4190 = vmatpush3.bf16.msra.mxu1 %v4187_v43  ;;  %v742_v23 = vld [vmem:[%s7369_s1 + $0x470] sm:$0xff]  ;;  %v711_v43 = vld [vmem:[%s7369_s1 + $0x378] sm:$0xff] }
 0x16a   : > { %4192 = vmatprep.subr.bf16.mxu1 %v4191_v38  ;;  %v4195_v12 = vpack.c.bf16 %v743_v54, %v742_v23  ;;  %v715_v23 = vld [vmem:[%s7369_s1 + $0x398] sm:$0xff]  ;;  %v7529_v54 = vld [vmem:[#allocation17_spill] sm:$0xff] }
 0x16b   : > { %v6138_v50 = vsel %vm453_vm1, %v530_v19, %v532_v35  ;;  %v708_v19 = vld [vmem:[%s7369_s1 + $0x360] sm:$0xff] }
 0x16c   : > { %1186 = vmatmul.mubr.f32.gmra.mrb[58].mxu0 %v6107_v7  ;;  %v712_v35 = vld [vmem:[%s7369_s1 + $0x380] sm:$0xff] }
 0x16d   : > { %1190 = vmatprep.mubr.f32.mxu0 %v6118_v62  ;;  %4194 = vmatpush3.bf16.msra.mxu1 %v4191_v38  ;;  %v714_v38 = vld [vmem:[%s7369_s1 + $0x390] sm:$0xff] }
 0x16e   : > { %4196 = vmatprep.subr.bf16.mxu1 %v4195_v12 }
 0x170   : > { %1191 = vmatmul.mubr.f32.gmra.mrb[60].mxu0 %v6123_v37 }
 0x171   : > { %1195 = vmatprep.mubr.f32.mxu0 %v6133_v30  ;;  %4198 = vmatpush3.bf16.msra.mxu1 %v4195_v12  ;;  %v7530_v12 = vld [vmem:[#allocation18_spill] sm:$0xff] }
 0x172   : > { %4199 = vmatprep.subr.bf16.mxu1 %v7526_v1 }
 0x174   : > { %1196 = vmatmul.mubr.f32.gmra.mrb[62].mxu0 %v6138_v50  ;;  %3848 = vmatmul.mubr.f32.vlgmr.msra.gmra.mrb[0].mxu1 %v5849_v22 }
 0x175   : > { %1265 = vmatprep.mubr.f32.mxu0 %v5812_v5  ;;  %v4123_v5 = vpack.c.bf16 %v699_v21, %v698_v0  ;;  %3850 = vmatprep.mubr.f32.mxu1 %v5863_v15  ;;  %v719_v0 = vld [vmem:[%s7369_s1 + $0x3b8] sm:$0xff]  ;;  %v7531_v21 = vld [vmem:[#allocation19_spill] sm:$0xff] }
 0x178   : > { %1266 = vmatmul.mubr.f32.vlgmr.msra.gmra.mrb[0].mxu0 %v5355_v9  ;;  %3851 = vmatmul.mubr.f32.gmra.mrb[2].mxu1 %v5876_v47 }
 0x179   : > { %4121 = vmatpush1.bf16.msra.mxu0 %v4120_v60  ;;  %1270 = vmatprep.mubr.f32.mxu0 %v5825_v13  ;;  %v4126_v13 = vpack.c.bf16 %v701_v34, %v700_v61  ;;  %v718_v60 = vld [vmem:[%s7369_s1 + $0x3b0] sm:$0xff]  ;;  %v721_v61 = vld [vmem:[%s7369_s1 + $0x3c8] sm:$0xff]  ;;  %v7532_v34 = vld [vmem:[#allocation20_spill] sm:$0xff] }
 0x17a   : > { %4122 = vmatprep.subr.bf16.mxu0 %v7526_v1  ;;  %3853 = vmatprep.mubr.f32.mxu1 %v5890_v45 }
 0x17c   : > { %1271 = vmatmul.mubr.f32.gmra.mrb[2].mxu0 %v5377_v18  ;;  %3854 = vmatmul.mubr.f32.gmra.mrb[4].mxu1 %v5903_v11 }
 0x17d   : > { %1275 = vmatprep.mubr.f32.mxu0 %v5432_v39  ;;  %4124 = vmatpush1.bf16.msra.mxu0 %v4123_v5  ;;  %v4129_v39 = vpack.c.bf16 %v703_v26, %v702_v36  ;;  %v720_v5 = vld [vmem:[%s7369_s1 + $0x3c0] sm:$0xff]  ;;  %v723_v36 = vld [vmem:[%s7369_s1 + $0x3d8] sm:$0xff] }
 0x17e   : > { %4125 = vmatprep.subr.bf16.mxu0 %v7526_v1  ;;  %3856 = vmatprep.mubr.f32.mxu1 %v5917_v59  ;;  %v7533_v26 = vld [vmem:[#allocation21_spill] sm:$0xff] }
 0x180   : > { %1276 = vmatmul.mubr.f32.gmra.mrb[4].mxu0 %v5394_v24  ;;  %3857 = vmatmul.mubr.f32.gmra.mrb[6].mxu1 %v5930_v51 }
 0x181   : > { %1280 = vmatprep.mubr.f32.mxu0 %v5849_v22  ;;  %4127 = vmatpush1.bf16.msra.mxu0 %v4126_v13  ;;  %v4132_v22 = vpack.c.bf16 %v705_v52, %v704_v49  ;;  %v722_v13 = vld [vmem:[%s7369_s1 + $0x3d0] sm:$0xff]  ;;  %v576_v49 = vrot.slane %v6118_v62, 2  ;;  %v577_v52 = vrot.slane %v6133_v30, 2 }
 0x182   : > { %4128 = vmatprep.subr.bf16.mxu0 %v7526_v1  ;;  %3859 = vmatprep.mubr.f32.mxu1 %v5944_v20 }
 0x184   : > { %1281 = vmatmul.mubr.f32.gmra.mrb[6].mxu0 %v5415_v33  ;;  %3860 = vmatmul.mubr.f32.gmra.mrb[8].mxu1 %v5957_v6 }
 0x185   : > { %1285 = vmatprep.mubr.f32.mxu0 %v5863_v15  ;;  %4130 = vmatpush1.bf16.msra.mxu0 %v4129_v39  ;;  %v4135_v15 = vpack.c.bf16 %v707_v17, %v706_v56  ;;  %v6295_v39 = vld [vmem:[%s5215_s8 + $0x190] sm:$0x3]  ;;  %v725_v56 = vld [vmem:[%s7369_s1 + $0x3e8] sm:$0xff] }
 0x186   : > { %4131 = vmatprep.subr.bf16.mxu0 %v7526_v1  ;;  %3862 = vmatprep.mubr.f32.mxu1 %v5971_v42  ;;  %v7534_v17 = vld [vmem:[#allocation22_spill] sm:$0xff] }
 0x188   : > { %1286 = vmatmul.mubr.f32.gmra.mrb[8].mxu0 %v5438_v41  ;;  %3863 = vmatmul.mubr.f32.gmra.mrb[10].mxu1 %v5984_v8 }
 0x189   : > { %1290 = vmatprep.mubr.f32.mxu0 %v5876_v47  ;;  %4133 = vmatpush1.bf16.msra.mxu0 %v4132_v22  ;;  %v4138_v47 = vpack.c.bf16 %v709_v14, %v708_v19  ;;  %v724_v22 = vld [vmem:[%s7369_s1 + $0x3e0] sm:$0xff]  ;;  %v578_v19 = vsel %vm453_vm1, %v576_v49, %v577_v52  ;;  %v726_v14 = vld [vmem:[%s7369_s1 + $0x3f0] sm:$0xff] }
 0x18a   : > { %4134 = vmatprep.subr.bf16.mxu0 %v7526_v1  ;;  %3865 = vmatprep.mubr.f32.mxu1 %v5992_v46  ;;  %v2279_v49 = vld [vmem:[#allocation3 + $0x20] sm:$0xff] }
 0x18c   : > { %1291 = vmatmul.mubr.f32.gmra.mrb[10].mxu0 %v5457_v48  ;;  %3866 = vmatmul.mubr.f32.gmra.mrb[12].mxu1 %v5999_v3 }
 0x18d   : > { %1295 = vmatprep.mubr.f32.mxu0 %v5890_v45  ;;  %4136 = vmatpush1.bf16.msra.mxu0 %v4135_v15  ;;  %v4141_v45 = vpack.c.bf16 %v711_v43, %v710_v44  ;;  %v4162_v15 = vpack.c.bf16 %v725_v56, %v724_v22  ;;  %v7535_v43 = vld [vmem:[#allocation23_spill] sm:$0xff]  ;;  %v4945_v56 = vld [vmem:[%s5215_s8 + $0x38] sm:$0xff] }
 0x18e   : > { %4137 = vmatprep.subr.bf16.mxu0 %v7526_v1  ;;  %3868 = vmatprep.mubr.f32.mxu1 %v6006_v25 }
 0x190   : > { %1296 = vmatmul.mubr.f32.gmra.mrb[12].mxu0 %v5474_v55  ;;  %3869 = vmatmul.mubr.f32.gmra.mrb[14].mxu1 %v6012_v63 }
 0x191   : > { %1300 = vmatprep.mubr.f32.mxu0 %v5903_v11  ;;  %4139 = vmatpush1.bf16.msra.mxu0 %v4138_v47  ;;  %v4144_v11 = vpack.c.bf16 %v713_v32, %v712_v35  ;;  %v727_v47 = vld [vmem:[%s7369_s1 + $0x3f8] sm:$0xff]  ;;  %v7537_v35 = vld [vmem:[#allocation25_spill] sm:$0xff]  ;;  %v7538_v32 = vld [vmem:[#allocation26_spill] sm:$0xff] }
 0x192   : > { %4140 = vmatprep.subr.bf16.mxu0 %v7526_v1  ;;  %3871 = vmatprep.mubr.f32.mxu1 %v6019_v53 }
 0x194   : > { %1301 = vmatmul.mubr.f32.gmra.mrb[14].mxu0 %v7528_v57  ;;  %3872 = vmatmul.mubr.f32.gmra.mrb[16].mxu1 %v6025_v31 }
 0x195   : > { %1305 = vmatprep.mubr.f32.mxu0 %v5917_v59  ;;  %4142 = vmatpush1.bf16.msra.mxu0 %v4141_v45  ;;  %v4147_v59 = vpack.c.bf16 %v715_v23, %v714_v38  ;;  %v7536_v45 = vld [vmem:[#allocation24_spill] sm:$0xff]  ;;  %v7541_v38 = vld [vmem:[#allocation29_spill] sm:$0xff] }
 0x196   : > { %4143 = vmatprep.subr.bf16.mxu0 %v7526_v1  ;;  %3874 = vmatprep.mubr.f32.mxu1 %v6032_v28  ;;  %v6356_v23 = vld [vmem:[%s5215_s8 + $0x198] sm:$0xff] }
 0x198   : > { %1306 = vmatmul.mubr.f32.gmra.mrb[16].mxu0 %v7529_v54  ;;  %3875 = vmatmul.mubr.f32.gmra.mrb[18].mxu1 %v6038_v29 }
 0x199   : > { %1310 = vmatprep.mubr.f32.mxu0 %v5930_v51  ;;  %4145 = vmatpush1.bf16.msra.mxu0 %v4144_v11  ;;  %v4150_v51 = vpack.c.bf16 %v717_v40, %v716_v58  ;;  %v7539_v11 = vld [vmem:[#allocation27_spill] sm:$0xff]  ;;  %v593_v58 = vrot.slane %v6356_v23, 2  ;;  %v6369_v40 = vld [vmem:[%s5215_s8 + $0x1a8] sm:$0x3] }
 0x19a   : > { %4146 = vmatprep.subr.bf16.mxu0 %v7526_v1  ;;  %3877 = vmatprep.mubr.f32.mxu1 %v6045_v16 }
 0x19c   : > { %1311 = vmatmul.mubr.f32.gmra.mrb[18].mxu0 %v7530_v12  ;;  %3878 = vmatmul.mubr.f32.gmra.mrb[20].mxu1 %v6057_v2 }
 0x19d   : > { %1315 = vmatprep.mubr.f32.mxu0 %v5944_v20  ;;  %4148 = vmatpush1.bf16.msra.mxu0 %v4147_v59  ;;  %v4153_v20 = vpack.c.bf16 %v719_v0, %v718_v60  ;;  %v7550_v59 = vld [vmem:[#allocation38_spill] sm:$0xff] }
 0x19e   : > { %4149 = vmatprep.subr.bf16.mxu0 %v7526_v1  ;;  %3880 = vmatprep.mubr.f32.mxu1 %v6070_v10 }
 0x1a0   : > { %1316 = vmatmul.mubr.f32.gmra.mrb[20].mxu0 %v7531_v21  ;;  %3881 = vmatmul.mubr.f32.gmra.mrb[22].mxu1 %v6082_v4 }
 0x1a1   : > { %1320 = vmatprep.mubr.f32.mxu0 %v5957_v6  ;;  %4151 = vmatpush1.bf16.msra.mxu0 %v4150_v51  ;;  %v4156_v6 = vpack.c.bf16 %v721_v61, %v720_v5  ;;  %v596_v51 = vrot.slane %v6369_v40, 2  ;;  %v2275_v5 = vld [vmem:[#allocation3] sm:$0xff]  ;;  %v2276_v61 = vld [vmem:[#allocation3 + $0x8] sm:$0xff] }
 0x1a2   : > { %4152 = vmatprep.subr.bf16.mxu0 %v7526_v1  ;;  %3883 = vmatprep.mubr.f32.mxu1 %v6095_v27 }
 0x1a4   : > { %1321 = vmatmul.mubr.f32.gmra.mrb[22].mxu0 %v7532_v34  ;;  %3884 = vmatmul.mubr.f32.gmra.mrb[24].mxu1 %v6107_v7 }
 0x1a5   : > { %1325 = vmatprep.mubr.f32.mxu0 %v5971_v42  ;;  %4154 = vmatpush1.bf16.msra.mxu0 %v4153_v20  ;;  %v4159_v42 = vpack.c.bf16 %v723_v36, %v722_v13  ;;  %v4200_v13 = vpack.c.bf16 %v2276_v61, %v2275_v5  ;;  %v2278_v36 = vld [vmem:[#allocation3 + $0x18] sm:$0xff]  ;;  %v2287_v5 = vld [vmem:[#allocation3 + $0x60] sm:$0xff]  ;;  %v2288_v61 = vld [vmem:[#allocation3 + $0x68] sm:$0xff] }
 0x1a6   : > { %4155 = vmatprep.subr.bf16.mxu0 %v7526_v1  ;;  %3886 = vmatprep.mubr.f32.mxu1 %v6123_v37 }
 0x1a7   : > { %4201 = vmatpush1.bf16.msra.mxu1 %v4200_v13  ;;  %v4949_v13 = vld [vmem:[%s5215_s8 + $0x68] sm:$0xff] }
 0x1a8   : > { %1326 = vmatmul.mubr.f32.gmra.mrb[24].mxu0 %v7533_v26  ;;  %3887 = vmatmul.mubr.f32.gmra.mrb[26].mxu1 %v6138_v50 }
 0x1a9   : > { %1330 = vmatprep.mubr.f32.mxu0 %v5984_v8  ;;  %4157 = vmatpush1.bf16.msra.mxu0 %v4156_v6  ;;  %v579_v8 = vrot.slane %v6295_v39, 2  ;;  %v2277_v6 = vld [vmem:[#allocation3 + $0x10] sm:$0xff] }
 0x1aa   : > { %4158 = vmatprep.subr.bf16.mxu0 %v7526_v1  ;;  %3889 = vmatprep.mubr.f32.mxu1 %v578_v19 }
 0x1ab   : > { %v580_v44 = vsel %vm453_vm1, %v577_v52, %v579_v8  ;;  %4202 = vmatprep.subr.bf16.mxu1 %v7526_v1  ;;  %v2280_v52 = vld [vmem:[#allocation3 + $0x28] sm:$0xff]  ;;  %v2281_v8 = vld [vmem:[#allocation3 + $0x30] sm:$0xff] }
 0x1ac   : > { %1331 = vmatmul.mubr.f32.gmra.mrb[26].mxu0 %v7534_v17  ;;  %3890 = vmatmul.mubr.f32.gmra.mrb[28].mxu1 %v580_v44  ;;  %v4206_v22 = vpack.c.bf16 %v2280_v52, %v2279_v49  ;;  %v4950_v49 = vld [vmem:[%s5215_s8 + $0x78] sm:$0xff]  ;;  %v2291_v52 = vld [vmem:[#allocation3 + $0x80] sm:$0xff] }
 0x1ad   : > { %1335 = vmatprep.mubr.f32.mxu0 %v5992_v46  ;;  %4160 = vmatpush1.bf16.msra.mxu0 %v4159_v42  ;;  %v4165_v46 = vpack.c.bf16 %v727_v47, %v726_v14  ;;  %v4944_v42 = vld [vmem:[%s5215_s8 + $0x30] sm:$0xff]  ;;  %v2404_v14 = vld [vmem:[#allocation3 + $0x408] sm:$0xff] }
 0x1ae   : > { %4161 = vmatprep.subr.bf16.mxu0 %v7526_v1 }
 0x1b0   : > { %1336 = vmatmul.mubr.f32.gmra.mrb[28].mxu0 %v7535_v43 }
 0x1b1   : > { %1340 = vmatprep.mubr.f32.mxu0 %v5999_v3  ;;  %4163 = vmatpush1.bf16.msra.mxu0 %v4162_v15  ;;  %v7540_v3 = vld [vmem:[#allocation28_spill] sm:$0xff] }
 0x1b2   : > { %4164 = vmatprep.subr.bf16.mxu0 %v7526_v1  ;;  %v2282_v15 = vld [vmem:[#allocation3 + $0x38] sm:$0xff] }
 0x1b4   : > { %1341 = vmatmul.mubr.f32.gmra.mrb[30].mxu0 %v7536_v45 }
 0x1b5   : > { %1345 = vmatprep.mubr.f32.mxu0 %v6006_v25  ;;  %4166 = vmatpush1.bf16.msra.mxu0 %v4165_v46  ;;  %v7542_v25 = vld [vmem:[#allocation30_spill] sm:$0xff] }
 0x1b6   : > { %v4946_v46 = vld [vmem:[%s5215_s8 + $0x48] sm:$0xff] }
 0x1b8   : > { %1346 = vmatmul.mubr.f32.gmra.mrb[32].mxu0 %v7537_v35 }
 0x1b9   : > { %1350 = vmatprep.mubr.f32.mxu0 %v6012_v63  ;;  %v7543_v63 = vld [vmem:[#allocation31_spill] sm:$0xff] }
 0x1bc   : > { %1351 = vmatmul.mubr.f32.gmra.mrb[34].mxu0 %v7538_v32 }
 0x1bd   : > { %1355 = vmatprep.mubr.f32.mxu0 %v6019_v53  ;;  %v7544_v53 = vld [vmem:[#allocation32_spill] sm:$0xff] }
 0x1c0   : > { %1356 = vmatmul.mubr.f32.gmra.mrb[36].mxu0 %v7539_v11 }
 0x1c1   : > { %1360 = vmatprep.mubr.f32.mxu0 %v6025_v31  ;;  %v7545_v31 = vld [vmem:[#allocation33_spill] sm:$0xff] }
 0x1c4   : > { %1361 = vmatmul.mubr.f32.gmra.mrb[38].mxu0 %v7540_v3 }
 0x1c5   : > { %1365 = vmatprep.mubr.f32.mxu0 %v6032_v28  ;;  %v7546_v28 = vld [vmem:[#allocation34_spill] sm:$0xff] }
 0x1c8   : > { %1366 = vmatmul.mubr.f32.gmra.mrb[40].mxu0 %v7541_v38 }
 0x1c9   : > { %1370 = vmatprep.mubr.f32.mxu0 %v6038_v29  ;;  %v7547_v29 = vld [vmem:[#allocation35_spill] sm:$0xff] }
 0x1cc   : > { %1371 = vmatmul.mubr.f32.gmra.mrb[42].mxu0 %v7542_v25 }
 0x1cd   : > { %1375 = vmatprep.mubr.f32.mxu0 %v6045_v16  ;;  %v7548_v16 = vld [vmem:[#allocation36_spill] sm:$0xff] }
 0x1d0   : > { %1376 = vmatmul.mubr.f32.gmra.mrb[44].mxu0 %v7543_v63 }
 0x1d1   : > { %1380 = vmatprep.mubr.f32.mxu0 %v6057_v2  ;;  %v7549_v2 = vld [vmem:[#allocation37_spill] sm:$0xff] }
 0x1d4   : > { %1381 = vmatmul.mubr.f32.gmra.mrb[46].mxu0 %v7544_v53 }
 0x1d5   : > { %1385 = vmatprep.mubr.f32.mxu0 %v6070_v10  ;;  %v569_v10 = vrot.slane %v6118_v62, 1 }
 0x1d8   : > { %1386 = vmatmul.mubr.f32.gmra.mrb[48].mxu0 %v7545_v31 }
 0x1d9   : > { %1390 = vmatprep.mubr.f32.mxu0 %v6082_v4  ;;  %v570_v4 = vrot.slane %v6133_v30, 1 }
 0x1dc   : > { %1391 = vmatmul.mubr.f32.gmra.mrb[50].mxu0 %v7546_v28 }
 0x1dd   : > { %1395 = vmatprep.mubr.f32.mxu0 %v6095_v27  ;;  %v6359_v27 = vld [vmem:[%s5215_s8 + $0x1a0] sm:$0xff] }
 0x1e0   : > { %1396 = vmatmul.mubr.f32.gmra.mrb[52].mxu0 %v7547_v29 }
 0x1e1   : > { %1400 = vmatprep.mubr.f32.mxu0 %v6107_v7  ;;  %v6363_v7 = vsel %vm340_vm0, %v569_v10, %v570_v4  ;;  %v2283_v10 = vld [vmem:[#allocation3 + $0x40] sm:$0xff] }
 0x1e2   : > { %7551 = vst [vmem:[#allocation39_spill] sm:$0xff] %v6363_v7 }
 0x1e4   : > { %1401 = vmatmul.mubr.f32.gmra.mrb[54].mxu0 %v7548_v16 }
 0x1e5   : > { %1405 = vmatprep.mubr.f32.mxu0 %v6123_v37  ;;  %v572_v37 = vrot.slane %v6295_v39, 1  ;;  %v4203_v39 = vpack.c.bf16 %v2278_v36, %v2277_v6  ;;  %v4218_v6 = vpack.c.bf16 %v2288_v61, %v2287_v5  ;;  %v2289_v36 = vld [vmem:[#allocation3 + $0x70] sm:$0xff]  ;;  %v2300_v5 = vld [vmem:[#allocation3 + $0xc8] sm:$0xff] }
 0x1e7   : > { %v6376_v20 = vsel %vm340_vm0, %v570_v4, %v572_v37  ;;  %4204 = vmatpush1.bf16.msra.mxu1 %v4203_v39  ;;  %v2284_v4 = vld [vmem:[#allocation3 + $0x48] sm:$0xff]  ;;  %v2290_v39 = vld [vmem:[#allocation3 + $0x78] sm:$0xff] }
 0x1e8   : > { %1406 = vmatmul.mubr.f32.gmra.mrb[56].mxu0 %v7549_v2  ;;  %7552 = vst [vmem:[#allocation40_spill] sm:$0xff] %v6376_v20  ;;  %4205 = vmatprep.subr.bf16.mxu1 %v7526_v1  ;;  %v4212_v37 = vpack.c.bf16 %v2284_v4, %v2283_v10  ;;  %v2296_v10 = vld [vmem:[#allocation3 + $0xa8] sm:$0xff] }
 0x1e9   : > { %1410 = vmatprep.mubr.f32.mxu0 %v6138_v50  ;;  %v594_v50 = vrot.slane %v6359_v27, 2 }
 0x1eb   : > { %v595_v60 = vsel %vm453_vm1, %v593_v58, %v594_v50  ;;  %v597_v0 = vsel %vm453_vm1, %v594_v50, %v596_v51  ;;  %4207 = vmatpush1.bf16.msra.mxu1 %v4206_v22  ;;  %v4947_v58 = vld [vmem:[%s5215_s8 + $0x50] sm:$0xff]  ;;  %v2286_v51 = vld [vmem:[#allocation3 + $0x58] sm:$0xff]  ;;  %v2292_v22 = vld [vmem:[#allocation3 + $0x88] sm:$0xff] }
 0x1ec   : > { %1411 = vmatmul.mubr.f32.gmra.mrb[58].mxu0 %v7550_v59  ;;  %3892 = vmatprep.mubr.f32.mxu1 %v595_v60  ;;  %v2285_v50 = vld [vmem:[#allocation3 + $0x50] sm:$0xff] }
 0x1ed   : > { %1415 = vmatprep.mubr.f32.mxu0 %v578_v19  ;;  %3893 = vmatmul.mubr.f32.gmra.mrb[30].mxu1 %v597_v0  ;;  %v2403_v19 = vld [vmem:[#allocation3 + $0x400] sm:$0xff]  ;;  %v4215_v60 = vpack.c.bf16 %v2286_v51, %v2285_v50  ;;  %v2298_v50 = vld [vmem:[#allocation3 + $0xb8] sm:$0xff] }
 0x1ee   : > { %v6386_v47 = vpack.c.bf16 %v2404_v14, %v2403_v19  ;;  %4208 = vmatprep.subr.bf16.mxu1 %v7526_v1  ;;  %v4948_v0 = vld [vmem:[%s5215_s8 + $0x60] sm:$0xff]  ;;  %v2294_v19 = vld [vmem:[#allocation3 + $0x98] sm:$0xff] }
 0x1f0   : > { %1416 = vmatmul.mubr.f32.gmra.mrb[60].mxu0 %v6363_v7  ;;  %7553 = vst [vmem:[#allocation41_spill] sm:$0xff] %v6386_v47  ;;  %4392 = vmatprep.subr.bf16.mxu0 %v6386_v47 }
 0x1f1   : > { %1420 = vmatprep.mubr.f32.mxu0 %v580_v44  ;;  %v4209_v44 = vpack.c.bf16 %v2282_v15, %v2281_v8  ;;  %v4951_v8 = vld [vmem:[%s5215_s8 + $0x80] sm:$0xff]  ;;  %v2293_v15 = vld [vmem:[#allocation3 + $0x90] sm:$0xff] }
 0x1f2   : > { %v4227_v14 = vpack.c.bf16 %v2294_v19, %v2293_v15  ;;  %v4962_v15 = vld [vmem:[%s5215_s8 + $0x108] sm:$0xff]  ;;  %v2303_v19 = vld [vmem:[#allocation3 + $0xe0] sm:$0xff] }
 0x1f3   : > { %4210 = vmatpush1.bf16.msra.mxu1 %v4209_v44  ;;  %v4952_v44 = vld [vmem:[%s5215_s8 + $0x90] sm:$0xff] }
 0x1f4   : > { %1421 = vmatmul.mubr.f32.gmra.mrb[62].mxu0 %v6376_v20  ;;  %4211 = vmatprep.subr.bf16.mxu1 %v7526_v1 }
 0x1f5   : > { %1490 = vmatprep.mubr.f32.mxu0 %v5394_v24 }
 0x1f7   : > { %4213 = vmatpush1.bf16.msra.mxu1 %v4212_v37  ;;  %v4953_v37 = vld [vmem:[%s5215_s8 + $0x98] sm:$0xff] }
 0x1f8   : > { %1491 = vmatmul.mubr.f32.vlgmr.msra.gmra.mrb[0].mxu0 %v4944_v42  ;;  %4214 = vmatprep.subr.bf16.mxu1 %v7526_v1  ;;  %v4221_v42 = vpack.c.bf16 %v2290_v39, %v2289_v36  ;;  %v2302_v36 = vld [vmem:[#allocation3 + $0xd8] sm:$0xff] }
 0x1f9   : > { %1495 = vmatprep.mubr.f32.mxu0 %v5415_v33  ;;  %4394 = vmatpush3.bf16.msra.mxu0 %v6386_v47 }
 0x1fb   : > { %4216 = vmatpush1.bf16.msra.mxu1 %v4215_v60  ;;  %v4954_v60 = vld [vmem:[%s5215_s8 + $0xa8] sm:$0xff] }
 0x1fc   : > { %1496 = vmatmul.mubr.f32.gmra.mrb[2].mxu0 %v4945_v56  ;;  %4217 = vmatprep.subr.bf16.mxu1 %v7526_v1  ;;  %v4224_v56 = vpack.c.bf16 %v2292_v22, %v2291_v52  ;;  %v4958_v52 = vld [vmem:[%s5215_s8 + $0xd8] sm:$0xff]  ;;  %v4959_v22 = vld [vmem:[%s5215_s8 + $0xe0] sm:$0xff] }
 0x1fd   : > { %1500 = vmatprep.mubr.f32.mxu0 %v5438_v41 }
 0x1ff   : > { %4219 = vmatpush1.bf16.msra.mxu1 %v4218_v6  ;;  %v4955_v6 = vld [vmem:[%s5215_s8 + $0xb0] sm:$0xff] }
 0x200   : > { %1501 = vmatmul.mubr.f32.gmra.mrb[4].mxu0 %v4946_v46  ;;  %4220 = vmatprep.subr.bf16.mxu1 %v7526_v1  ;;  %v2295_v46 = vld [vmem:[#allocation3 + $0xa0] sm:$0xff] }
 0x201   : > { %1505 = vmatprep.mubr.f32.mxu0 %v5457_v48  ;;  %v4230_v4 = vpack.c.bf16 %v2296_v10, %v2295_v46  ;;  %v5073_v10 = vmov 0.0  }
 0x202   : > { %1909 = vst [vmem:[#allocation2 + $0x8] sm:$0xff] %v5073_v10  ;;  %2490 = vmatprep.mubr.f32.mxu1 %v5073_v10  ;;  %1908 = vst [vmem:[#allocation2] sm:$0xff] %v5073_v10 }
 0x203   : > { %4222 = vmatpush1.bf16.msra.mxu1 %v4221_v42  ;;  %v4956_v42 = vld [vmem:[%s5215_s8 + $0xc0] sm:$0xff]  ;;  %1910 = vst [vmem:[#allocation2 + $0x10] sm:$0xff] %v5073_v10  ;;  %1911 = vst [vmem:[#allocation2 + $0x18] sm:$0x1] %v5073_v10 }
 0x204   : > { %1506 = vmatmul.mubr.f32.gmra.mrb[6].mxu0 %v4947_v58  ;;  %4223 = vmatprep.subr.bf16.mxu1 %v7526_v1  ;;  %v2297_v58 = vld [vmem:[#allocation3 + $0xb0] sm:$0xff]  ;;  %1913 = vst [vmem:[#allocation2 + $0x220] sm:$0xff] %v5073_v10  ;;  %1914 = vst [vmem:[#allocation2 + $0x228] sm:$0xff] %v5073_v10 }
 0x205   : > { %1510 = vmatprep.mubr.f32.mxu0 %v5474_v55  ;;  %v4233_v51 = vpack.c.bf16 %v2298_v50, %v2297_v58  ;;  %1915 = vst [vmem:[#allocation2 + $0x230] sm:$0xff] %v5073_v10  ;;  %1916 = vst [vmem:[#allocation2 + $0x238] sm:$0x1] %v5073_v10  ;;  %v4964_v58 = vld [vmem:[%s5215_s8 + $0x120] sm:$0xff]  ;;  %v2405_v50 = vld [vmem:[#allocation3 + $0x410] sm:$0xff] }
 0x206   : > { %1918 = vst [vmem:[#allocation2 + $0x27] sm:$0x1] %v5073_v10  ;;  %1919 = vst [vmem:[#allocation2 + $0x47] sm:$0x1] %v5073_v10 }
 0x207   : > { %4225 = vmatpush1.bf16.msra.mxu1 %v4224_v56  ;;  %v4960_v56 = vld [vmem:[%s5215_s8 + $0xf0] sm:$0xff]  ;;  %1920 = vst [vmem:[#allocation2 + $0x67] sm:$0x1] %v5073_v10  ;;  %1921 = vst [vmem:[#allocation2 + $0x87] sm:$0x1] %v5073_v10 }
 0x208   : > { %1511 = vmatmul.mubr.f32.gmra.mrb[8].mxu0 %v4948_v0  ;;  %4226 = vmatprep.subr.bf16.mxu1 %v7526_v1  ;;  %v2299_v0 = vld [vmem:[#allocation3 + $0xc0] sm:$0xff]  ;;  %1922 = vst [vmem:[#allocation2 + $0xa7] sm:$0x1] %v5073_v10  ;;  %1923 = vst [vmem:[#allocation2 + $0xc7] sm:$0x1] %v5073_v10 }
 0x209   : > { %1515 = vmatprep.mubr.f32.mxu0 %v7528_v57  ;;  %v4236_v61 = vpack.c.bf16 %v2300_v5, %v2299_v0  ;;  %1924 = vst [vmem:[#allocation2 + $0xe7] sm:$0x1] %v5073_v10  ;;  %1925 = vst [vmem:[#allocation2 + $0x107] sm:$0x1] %v5073_v10 }
 0x20a   : > { %1926 = vst [vmem:[#allocation2 + $0x127] sm:$0x1] %v5073_v10  ;;  %1927 = vst [vmem:[#allocation2 + $0x147] sm:$0x1] %v5073_v10 }
 0x20b   : > { %4228 = vmatpush1.bf16.msra.mxu1 %v4227_v14  ;;  %v2304_v14 = vld [vmem:[#allocation3 + $0xe8] sm:$0xff]  ;;  %1928 = vst [vmem:[#allocation2 + $0x167] sm:$0x1] %v5073_v10  ;;  %1929 = vst [vmem:[#allocation2 + $0x187] sm:$0x1] %v5073_v10 }
 0x20c   : > { %1516 = vmatmul.mubr.f32.gmra.mrb[10].mxu0 %v4949_v13  ;;  %4229 = vmatprep.subr.bf16.mxu1 %v7526_v1  ;;  %v2301_v13 = vld [vmem:[#allocation3 + $0xd0] sm:$0xff]  ;;  %v4242_v46 = vpack.c.bf16 %v2304_v14, %v2303_v19  ;;  %1930 = vst [vmem:[#allocation2 + $0x1a7] sm:$0x1] %v5073_v10  ;;  %1931 = vst [vmem:[#allocation2 + $0x1c7] sm:$0x1] %v5073_v10  ;;  %v4967_v19 = vld [vmem:[%s5215_s8 + $0x140] sm:$0xff] }
 0x20d   : > { %1520 = vmatprep.mubr.f32.mxu0 %v7529_v54  ;;  %v4239_v39 = vpack.c.bf16 %v2302_v36, %v2301_v13  ;;  %1932 = vst [vmem:[#allocation2 + $0x1e7] sm:$0x1] %v5073_v10  ;;  %1933 = vst [vmem:[#allocation2 + $0x207] sm:$0x1] %v5073_v10  ;;  %v2407_v13 = vld [vmem:[#allocation3 + $0x420] sm:$0xff]  ;;  %v2408_v36 = vld [vmem:[#allocation3 + $0x428] sm:$0xff] }
 0x20e   : > { %1936 = vst [vmem:[#allocation2 + $0x38] sm:$0x1] %v5073_v10  ;;  %1937 = vst [vmem:[#allocation2 + $0x58] sm:$0x1] %v5073_v10 }
 0x20f   : > { %4231 = vmatpush1.bf16.msra.mxu1 %v4230_v4  ;;  %1938 = vst [vmem:[#allocation2 + $0x78] sm:$0x1] %v5073_v10  ;;  %1939 = vst [vmem:[#allocation2 + $0x98] sm:$0x1] %v5073_v10  ;;  %v2305_v4 = vld [vmem:[#allocation3 + $0xf0] sm:$0xff] }
 0x210   : > { %1521 = vmatmul.mubr.f32.gmra.mrb[12].mxu0 %v4950_v49  ;;  %4232 = vmatprep.subr.bf16.mxu1 %v7526_v1  ;;  %v4957_v49 = vld [vmem:[%s5215_s8 + $0xc8] sm:$0xff]  ;;  %1940 = vst [vmem:[#allocation2 + $0xb8] sm:$0x1] %v5073_v10  ;;  %1941 = vst [vmem:[#allocation2 + $0xd8] sm:$0x1] %v5073_v10 }
 0x211   : > { %1525 = vmatprep.mubr.f32.mxu0 %v7530_v12  ;;  %1942 = vst [vmem:[#allocation2 + $0xf8] sm:$0x1] %v5073_v10  ;;  %1943 = vst [vmem:[#allocation2 + $0x118] sm:$0x1] %v5073_v10 }
 0x212   : > { %1944 = vst [vmem:[#allocation2 + $0x138] sm:$0x1] %v5073_v10  ;;  %1945 = vst [vmem:[#allocation2 + $0x158] sm:$0x1] %v5073_v10 }
 0x213   : > { %4234 = vmatpush1.bf16.msra.mxu1 %v4233_v51  ;;  %1946 = vst [vmem:[#allocation2 + $0x178] sm:$0x1] %v5073_v10  ;;  %1947 = vst [vmem:[#allocation2 + $0x198] sm:$0x1] %v5073_v10  ;;  %v2406_v51 = vld [vmem:[#allocation3 + $0x418] sm:$0xff] }
 0x214   : > { %1526 = vmatmul.mubr.f32.gmra.mrb[14].mxu0 %v4951_v8  ;;  %4235 = vmatprep.subr.bf16.mxu1 %v7526_v1  ;;  %v4961_v8 = vld [vmem:[%s5215_s8 + $0xf8] sm:$0xff]  ;;  %1948 = vst [vmem:[#allocation2 + $0x1b8] sm:$0x1] %v5073_v10  ;;  %1949 = vst [vmem:[#allocation2 + $0x1d8] sm:$0x1] %v5073_v10  ;;  %v6486_v0 = vpack.c.bf16 %v2406_v51, %v2405_v50  ;;  %v4968_v50 = vld [vmem:[%s5215_s8 + $0x150] sm:$0xff] }
 0x215   : > { %1530 = vmatprep.mubr.f32.mxu0 %v7531_v21  ;;  %1950 = vst [vmem:[#allocation2 + $0x1f8] sm:$0x1] %v5073_v10  ;;  %1951 = vst [vmem:[#allocation2 + $0x218] sm:$0x1] %v5073_v10  ;;  %v2413_v51 = vld [vmem:[#allocation3 + $0x450] sm:$0xff] }
 0x216   : > { %1917 = vst [vmem:[#allocation2 + $0x7] sm:$0x1] %v5073_v10  ;;  %1934 = vst [vmem:[#allocation2 + $0x227] sm:$0x1] %v5073_v10  ;;  %4396 = vmatprep.subr.bf16.mxu0 %v6486_v0 }
 0x217   : > { %4237 = vmatpush1.bf16.msra.mxu1 %v4236_v61  ;;  %1935 = vst [vmem:[#allocation2 + $0x18] sm:$0x1] %v5073_v10  ;;  %1952 = vst [vmem:[#allocation2 + $0x238] sm:$0x1] %v5073_v10  ;;  %v4965_v61 = vld [vmem:[%s5215_s8 + $0x128] sm:$0xff]  ;;  %4398 = vmatpush3.bf16.msra.mxu0 %v6486_v0 }
 0x218   : > { %1531 = vmatmul.mubr.f32.gmra.mrb[16].mxu0 %v4952_v44  ;;  %4238 = vmatprep.subr.bf16.mxu1 %v7526_v1  ;;  %v4963_v44 = vld [vmem:[%s5215_s8 + $0x110] sm:$0xff]  ;;  %7554 = vst [vmem:[#allocation42_spill] sm:$0xff] %v6486_v0 }
 0x219   : > { %1535 = vmatprep.mubr.f32.mxu0 %v7532_v34 }
 0x21b   : > { %4240 = vmatpush1.bf16.msra.mxu1 %v4239_v39 }
 0x21c   : > { %1536 = vmatmul.mubr.f32.gmra.mrb[18].mxu0 %v4953_v37  ;;  %4241 = vmatprep.subr.bf16.mxu1 %v7526_v1  ;;  %v2306_v37 = vld [vmem:[#allocation3 + $0xf8] sm:$0xff] }
 0x21d   : > { %1540 = vmatprep.mubr.f32.mxu0 %v7533_v26  ;;  %v1986_v39 = vld [vmem:[#allocation2 + $0x7] sm:$0xff] }
 0x21f   : > { %4243 = vmatpush1.bf16.msra.mxu1 %v4242_v46  ;;  %v2412_v46 = vld [vmem:[#allocation3 + $0x448] sm:$0xff] }
 0x220   : > { %1541 = vmatmul.mubr.f32.gmra.mrb[20].mxu0 %v4954_v60  ;;  %4244 = vmatprep.subr.bf16.mxu1 %v7526_v1  ;;  %v4245_v60 = vpack.c.bf16 %v2306_v37, %v2305_v4  ;;  %v2307_v4 = vld [vmem:[#allocation3 + $0x100] sm:$0xff]  ;;  %v2308_v37 = vld [vmem:[#allocation3 + $0x108] sm:$0xff] }
 0x221   : > { %1545 = vmatprep.mubr.f32.mxu0 %v7534_v17 }
 0x223   : > { %4246 = vmatpush1.bf16.msra.mxu1 %v4245_v60  ;;  %v2414_v60 = vld [vmem:[#allocation3 + $0x458] sm:$0xff] }
 0x224   : > { %1546 = vmatmul.mubr.f32.gmra.mrb[22].mxu0 %v4955_v6  ;;  %4247 = vmatprep.subr.bf16.mxu1 %v7526_v1 }
 0x225   : > { %1550 = vmatprep.mubr.f32.mxu0 %v7535_v43  ;;  %v2338_v43 = vld [vmem:[#allocation3 + $0x1f8] sm:$0xff] }
 0x226   : > { %2491 = vmatmul.mubr.f32.vlgmr.msra.gmra.mrb[32].mxu1 %v1986_v39 }
 0x227   : > { %2495 = vmatprep.mubr.f32.mxu1 %v5073_v10 }
 0x228   : > { %1551 = vmatmul.mubr.f32.gmra.mrb[24].mxu0 %v4956_v42  ;;  %v6497_v42 = vpack.c.bf16 %v2408_v36, %v2407_v13  ;;  %v4969_v36 = vld [vmem:[%s5215_s8 + $0x158] sm:$0xff] }
 0x229   : > { %1555 = vmatprep.mubr.f32.mxu0 %v7536_v45  ;;  %v2336_v45 = vld [vmem:[#allocation3 + $0x1e8] sm:$0xff] }
 0x22a   : > { %7555 = vst [vmem:[#allocation43_spill] sm:$0xff] %v6497_v42  ;;  %4400 = vmatprep.subr.bf16.mxu0 %v6497_v42 }
 0x22b   : > { %4402 = vmatpush3.bf16.msra.mxu0 %v6497_v42 }
 0x22c   : > { %1556 = vmatmul.mubr.f32.gmra.mrb[26].mxu0 %v4957_v49  ;;  %v4966_v49 = vld [vmem:[%s5215_s8 + $0x138] sm:$0xff] }
 0x22d   : > { %1560 = vmatprep.mubr.f32.mxu0 %v7537_v35  ;;  %v2335_v35 = vld [vmem:[#allocation3 + $0x1e0] sm:$0xff] }
 0x230   : > { %1561 = vmatmul.mubr.f32.gmra.mrb[28].mxu0 %v4958_v52  ;;  %v2409_v52 = vld [vmem:[#allocation3 + $0x430] sm:$0xff] }
 0x231   : > { %1565 = vmatprep.mubr.f32.mxu0 %v7538_v32  ;;  %v2334_v32 = vld [vmem:[#allocation3 + $0x1d8] sm:$0xff] }
 0x234   : > { %1566 = vmatmul.mubr.f32.gmra.mrb[30].mxu0 %v4959_v22  ;;  %v2410_v22 = vld [vmem:[#allocation3 + $0x438] sm:$0xff] }
 0x235   : > { %1570 = vmatprep.mubr.f32.mxu0 %v7539_v11  ;;  %v2333_v11 = vld [vmem:[#allocation3 + $0x1d0] sm:$0xff] }
 0x238   : > { %1571 = vmatmul.mubr.f32.gmra.mrb[32].mxu0 %v4960_v56  ;;  %v1987_v56 = vld [vmem:[#allocation2 + $0xf] sm:$0xff] }
 0x239   : > { %1575 = vmatprep.mubr.f32.mxu0 %v7540_v3  ;;  %2496 = vmatmul.mubr.f32.gmra.mrb[34].mxu1 %v1987_v56  ;;  %v2309_v56 = vld [vmem:[#allocation3 + $0x110] sm:$0xff]  ;;  %v2332_v3 = vld [vmem:[#allocation3 + $0x1c8] sm:$0xff] }
 0x23c   : > { %1576 = vmatmul.mubr.f32.gmra.mrb[34].mxu0 %v4961_v8  ;;  %v6504_v8 = vpack.c.bf16 %v2410_v22, %v2409_v52  ;;  %v2416_v52 = vld [vmem:[#allocation3 + $0x468] sm:$0xff] }
 0x23d   : > { %1580 = vmatprep.mubr.f32.mxu0 %v7541_v38  ;;  %v2331_v38 = vld [vmem:[#allocation3 + $0x1c0] sm:$0xff] }
 0x23e   : > { %7556 = vst [vmem:[#allocation44_spill] sm:$0xff] %v6504_v8  ;;  %4404 = vmatprep.subr.bf16.mxu0 %v6504_v8 }
 0x23f   : > { %4406 = vmatpush3.bf16.msra.mxu0 %v6504_v8 }
 0x240   : > { %1581 = vmatmul.mubr.f32.gmra.mrb[36].mxu0 %v4962_v15 }
 0x241   : > { %1585 = vmatprep.mubr.f32.mxu0 %v7542_v25  ;;  %v2330_v25 = vld [vmem:[#allocation3 + $0x1b8] sm:$0xff] }
 0x244   : > { %1586 = vmatmul.mubr.f32.gmra.mrb[38].mxu0 %v4963_v44  ;;  %v2411_v44 = vld [vmem:[#allocation3 + $0x440] sm:$0xff] }
 0x245   : > { %1590 = vmatprep.mubr.f32.mxu0 %v7543_v63  ;;  %v6514_v10 = vpack.c.bf16 %v2412_v46, %v2411_v44  ;;  %v4970_v46 = vld [vmem:[%s5215_s8 + $0x168] sm:$0xff]  ;;  %v2329_v63 = vld [vmem:[#allocation3 + $0x1b0] sm:$0xff] }
 0x247   : > { %v6489_v5 = vpop.f32.mrb[0].mxu1  ;;  %7557 = vst [vmem:[#allocation45_spill] sm:$0xff] %v6514_v10  ;;  %4408 = vmatprep.subr.bf16.mxu0 %v6514_v10 }
 0x248   : > { %1591 = vmatmul.mubr.f32.gmra.mrb[40].mxu0 %v4964_v58  ;;  %v6493_v6 = vpop.f32.mrb[1].mxu1  ;;  %v4248_v58 = vpack.c.bf16 %v2308_v37, %v2307_v4  ;;  %v2417_v4 = vld [vmem:[#allocation3 + $0x470] sm:$0xff]  ;;  %v2418_v37 = vld [vmem:[#allocation3 + $0x478] sm:$0xff] }
 0x249   : > { %1595 = vmatprep.mubr.f32.mxu0 %v7544_v53  ;;  %4410 = vmatpush3.bf16.msra.mxu0 %v6514_v10  ;;  %v2328_v53 = vld [vmem:[#allocation3 + $0x1a8] sm:$0xff] }
 0x24a   : > { %4249 = vmatpush1.bf16.msra.mxu1 %v4248_v58  ;;  %v6536_v58 = vpack.c.bf16 %v2418_v37, %v2417_v4 }
 0x24b   : > { %v6507_v15 = vpop.f32.mrb[2].mxu1  ;;  %4250 = vmatprep.subr.bf16.mxu1 %v7526_v1 }
 0x24c   : > { %1596 = vmatmul.mubr.f32.gmra.mrb[42].mxu0 %v4965_v61  ;;  %v6510_v14 = vpop.f32.mrb[3].mxu1  ;;  %v6519_v61 = vpack.c.bf16 %v2414_v60, %v2413_v51  ;;  %7560 = vst [vmem:[#allocation48_spill] sm:$0xff] %v6536_v58  ;;  %v4971_v51 = vld [vmem:[%s5215_s8 + $0x170] sm:$0xff] }
 0x24d   : > { %1600 = vmatprep.mubr.f32.mxu0 %v7545_v31  ;;  %v2326_v31 = vld [vmem:[#allocation3 + $0x198] sm:$0xff] }
 0x24e   : > { %7558 = vst [vmem:[#allocation46_spill] sm:$0xff] %v6519_v61  ;;  %4412 = vmatprep.subr.bf16.mxu0 %v6519_v61 }
 0x24f   : > { %v6524_v13 = vpop.f32.mrb[4].mxu1  ;;  %4414 = vmatpush3.bf16.msra.mxu0 %v6519_v61 }
 0x250   : > { %1601 = vmatmul.mubr.f32.gmra.mrb[44].mxu0 %v4966_v49  ;;  %v6527_v39 = vpop.f32.mrb[5].mxu1  ;;  %v2415_v49 = vld [vmem:[#allocation3 + $0x460] sm:$0xff] }
 0x251   : > { %1605 = vmatprep.mubr.f32.mxu0 %v7546_v28  ;;  %v6530_v22 = vpack.c.bf16 %v2416_v52, %v2415_v49  ;;  %v587_v49 = vrot.slane %v6359_v27, 1  ;;  %v2311_v52 = vld [vmem:[#allocation3 + $0x120] sm:$0xff] }
 0x252   : > { %v2327_v28 = vld [vmem:[#allocation3 + $0x1a0] sm:$0xff] }
 0x253   : > { %7559 = vst [vmem:[#allocation47_spill] sm:$0xff] %v6530_v22  ;;  %4416 = vmatprep.subr.bf16.mxu0 %v6530_v22 }
 0x254   : > { %1606 = vmatmul.mubr.f32.gmra.mrb[46].mxu0 %v4967_v19  ;;  %v2310_v19 = vld [vmem:[#allocation3 + $0x118] sm:$0xff] }
 0x255   : > { %1610 = vmatprep.mubr.f32.mxu0 %v7547_v29  ;;  %v4251_v44 = vpack.c.bf16 %v2310_v19, %v2309_v56  ;;  %4418 = vmatpush3.bf16.msra.mxu0 %v6530_v22  ;;  %v2312_v56 = vld [vmem:[#allocation3 + $0x128] sm:$0xff] }
 0x256   : > { %4420 = vmatprep.subr.bf16.mxu0 %v6536_v58  ;;  %v4254_v19 = vpack.c.bf16 %v2312_v56, %v2311_v52  ;;  %v2313_v52 = vld [vmem:[#allocation3 + $0x130] sm:$0xff]  ;;  %v2324_v29 = vld [vmem:[#allocation3 + $0x188] sm:$0xff] }
 0x257   : > { %4252 = vmatpush1.bf16.msra.mxu1 %v4251_v44 }
 0x258   : > { %1611 = vmatmul.mubr.f32.gmra.mrb[48].mxu0 %v4968_v50  ;;  %4253 = vmatprep.subr.bf16.mxu1 %v7526_v1  ;;  %v6541_v50 = vpop.f32.mrb[6].mxu1 }
 0x259   : > { %1615 = vmatprep.mubr.f32.mxu0 %v7548_v16  ;;  %v6544_v60 = vpop.f32.mrb[7].mxu1  ;;  %4422 = vmatpush3.bf16.msra.mxu0 %v6536_v58  ;;  %v2325_v16 = vld [vmem:[#allocation3 + $0x190] sm:$0xff] }
 0x25a   : > { %v6555_v4 = vpop.f32.mrb[8].mxu1 }
 0x25b   : > { %4255 = vmatpush1.bf16.msra.mxu1 %v4254_v19  ;;  %v6558_v37 = vpop.f32.mrb[9].mxu1  ;;  %v2316_v19 = vld [vmem:[#allocation3 + $0x148] sm:$0xff] }
 0x25c   : > { %1616 = vmatmul.mubr.f32.gmra.mrb[50].mxu0 %v4969_v36  ;;  %v586_v36 = vrot.slane %v6356_v23, 1  ;;  %4256 = vmatprep.subr.bf16.mxu1 %v7526_v1 }
 0x25d   : > { %1620 = vmatprep.mubr.f32.mxu0 %v7549_v2  ;;  %v2322_v2 = vld [vmem:[#allocation3 + $0x178] sm:$0xff] }
 0x25e   : > { %v588_v44 = vsel %vm340_vm0, %v586_v36, %v587_v49 }
 0x260   : > { %1621 = vmatmul.mubr.f32.gmra.mrb[52].mxu0 %v4970_v46  ;;  %v589_v46 = vrot.slane %v6369_v40, 1  ;;  %v6563_v40 = vpop.f32.mrb[10].mxu1 }
 0x261   : > { %1625 = vmatprep.mubr.f32.mxu0 %v7550_v59  ;;  %v6566_v36 = vpop.f32.mrb[11].mxu1  ;;  %v2323_v59 = vld [vmem:[#allocation3 + $0x180] sm:$0xff] }
 0x264   : > { %1626 = vmatmul.mubr.f32.gmra.mrb[54].mxu0 %v4971_v51  ;;  %v590_v51 = vsel %vm340_vm0, %v587_v49, %v589_v46  ;;  %v6569_v49 = vpop.f32.mrb[12].mxu1 }
 0x265   : > { %1630 = vmatprep.mubr.f32.mxu0 %v6363_v7  ;;  %v6571_v46 = vpop.f32.mrb[13].mxu1  ;;  %v2320_v7 = vld [vmem:[#allocation3 + $0x168] sm:$0xff] }
 0x268   : > { %1631 = vmatmul.mubr.f32.gmra.mrb[56].mxu0 %v6118_v62  ;;  %v2314_v62 = vld [vmem:[#allocation3 + $0x138] sm:$0xff] }
 0x269   : > { %1635 = vmatprep.mubr.f32.mxu0 %v6376_v20  ;;  %v4257_v56 = vpack.c.bf16 %v2314_v62, %v2313_v52  ;;  %v6574_v62 = vpop.f32.mrb[14].mxu1  ;;  %v2321_v20 = vld [vmem:[#allocation3 + $0x170] sm:$0xff] }
 0x26b   : > { %4258 = vmatpush1.bf16.msra.mxu1 %v4257_v56  ;;  %v2319_v56 = vld [vmem:[#allocation3 + $0x160] sm:$0xff] }
 0x26c   : > { %1636 = vmatmul.mubr.f32.gmra.mrb[58].mxu0 %v6133_v30  ;;  %4259 = vmatprep.subr.bf16.mxu1 %v7526_v1  ;;  %v2315_v30 = vld [vmem:[#allocation3 + $0x140] sm:$0xff] }
 0x26d   : > { %1640 = vmatprep.mubr.f32.mxu0 %v588_v44  ;;  %v4260_v44 = vpack.c.bf16 %v2316_v19, %v2315_v30  ;;  %v4266_v30 = vpack.c.bf16 %v2320_v7, %v2319_v56  ;;  %v4272_v7 = vpack.c.bf16 %v2324_v29, %v2323_v59  ;;  %v4278_v29 = vpack.c.bf16 %v2328_v53, %v2327_v28 }
 0x26e   : > { %v4284_v53 = vpack.c.bf16 %v2332_v3, %v2331_v38  ;;  %v4290_v3 = vpack.c.bf16 %v2336_v45, %v2335_v35  ;;  %v6621_v38 = vld [vmem:[%s7370_s2] ss:$0 sm:$0xff] }
 0x26f   : > { %4261 = vmatpush1.bf16.msra.mxu1 %v4260_v44 }
 0x270   : > { %1641 = vmatmul.mubr.f32.gmra.mrb[60].mxu0 %v6356_v23  ;;  %4262 = vmatprep.subr.bf16.mxu1 %v7526_v1  ;;  %v2317_v23 = vld [vmem:[#allocation3 + $0x150] sm:$0xff] }
 0x271   : > { %1645 = vmatprep.mubr.f32.mxu0 %v590_v51  ;;  %v2318_v51 = vld [vmem:[#allocation3 + $0x158] sm:$0xff] }
 0x272   : > { %v4263_v52 = vpack.c.bf16 %v2318_v51, %v2317_v23  ;;  %v4269_v23 = vpack.c.bf16 %v2322_v2, %v2321_v20  ;;  %v4275_v2 = vpack.c.bf16 %v2326_v31, %v2325_v16  ;;  %v4281_v31 = vpack.c.bf16 %v2330_v25, %v2329_v63 }
 0x273   : > { %v4287_v25 = vpack.c.bf16 %v2334_v32, %v2333_v11 }
 0x274   : > { %1646 = vmatmul.mubr.f32.gmra.mrb[62].mxu0 %v6359_v27  ;;  %4264 = vmatpush1.bf16.msra.mxu1 %v4263_v52  ;;  %v6576_v27 = vpop.f32.mrb[15].mxu1 }
 0x275   : > { %4265 = vmatprep.subr.bf16.mxu1 %v7526_v1  ;;  %v6579_v19 = vpop.f32.mrb[16].mxu1 }
 0x276   : > { %v6581_v44 = vpop.f32.mrb[17].mxu1 }
 0x277   : > { %v6584_v51 = vpop.f32.mrb[18].mxu1 }
 0x278   : > { %4267 = vmatpush1.bf16.msra.mxu1 %v4266_v30  ;;  %v6586_v52 = vpop.f32.mrb[19].mxu1 }
 0x279   : > { %4268 = vmatprep.subr.bf16.mxu1 %v7526_v1  ;;  %v6589_v56 = vpop.f32.mrb[20].mxu1 }
 0x27a   : > { %v6591_v30 = vpop.f32.mrb[21].mxu1 }
 0x27b   : > { %v6594_v20 = vpop.f32.mrb[22].mxu1 }
 0x27c   : > { %4270 = vmatpush1.bf16.msra.mxu1 %v4269_v23  ;;  %v6596_v23 = vpop.f32.mrb[23].mxu1 }
 0x27d   : > { %4271 = vmatprep.subr.bf16.mxu1 %v7526_v1  ;;  %v6599_v59 = vpop.f32.mrb[24].mxu1 }
 0x280   : > { %4273 = vmatpush1.bf16.msra.mxu1 %v4272_v7  ;;  %v6601_v7 = vpop.f32.mrb[25].mxu1 }
 0x281   : > { %4274 = vmatprep.subr.bf16.mxu1 %v7526_v1  ;;  %v6604_v16 = vpop.f32.mrb[26].mxu1 }
 0x284   : > { %4276 = vmatpush1.bf16.msra.mxu1 %v4275_v2  ;;  %v6606_v2 = vpop.f32.mrb[27].mxu1 }
 0x285   : > { %4277 = vmatprep.subr.bf16.mxu1 %v7526_v1  ;;  %v6609_v28 = vpop.f32.mrb[28].mxu1 }
 0x288   : > { %4279 = vmatpush1.bf16.msra.mxu1 %v4278_v29  ;;  %v6611_v29 = vpop.f32.mrb[29].mxu1 }
 0x289   : > { %4280 = vmatprep.subr.bf16.mxu1 %v7526_v1 }
 0x28c   : > { %4282 = vmatpush1.bf16.msra.mxu1 %v4281_v31 }
 0x28d   : > { %4283 = vmatprep.subr.bf16.mxu1 %v7526_v1 }
 0x290   : > { %4285 = vmatpush1.bf16.msra.mxu1 %v4284_v53 }
 0x291   : > { %4286 = vmatprep.subr.bf16.mxu1 %v7526_v1 }
 0x294   : > { %4288 = vmatpush1.bf16.msra.mxu1 %v4287_v25  ;;  %v2337_v25 = vld [vmem:[#allocation3 + $0x1f0] sm:$0xff] }
 0x295   : > { %4289 = vmatprep.subr.bf16.mxu1 %v7526_v1  ;;  %v4293_v17 = vpack.c.bf16 %v2338_v43, %v2337_v25 }
 0x298   : > { %4291 = vmatpush1.bf16.msra.mxu1 %v4290_v3 }
 0x299   : > { %4292 = vmatprep.subr.bf16.mxu1 %v7526_v1 }
 0x29c   : > { %4294 = vmatpush1.bf16.msra.mxu1 %v4293_v17 }
 0x29d   : > { %4295 = vmatprep.subr.bf16.mxu1 %v7526_v1 }
 0x2c0   : > { %v6614_v63 = vpop.f32.mrb[30].mxu1 }
 0x2c1   : > { %v6616_v31 = vpop.f32.mrb[31].mxu1 }
 0x2cb   : > { %v1492_v53 = vpop.f32.mrb[0].mxu0 }
 0x2cc   : > { %v4439_v32 = vadd.f32 %v6621_v38, %v1492_v53  ;;  %v1494_v11 = vpop.f32.mrb[1].mxu0 }
 0x2ce   : > { %v1718_v26 = vadd.f32 %v4439_v32, %v6493_v6 }
 0x2cf   : > { %v1497_v34 = vpop.f32.mrb[2].mxu0 }
 0x2d0   : > { %v1876_v45 = vmax.f32 %v1718_v26, 0.0  ;;  %v4440_v35 = vadd.f32 %v6621_v38, %v1497_v34  ;;  %v1499_v21 = vpop.f32.mrb[3].mxu0 }
 0x2d2   : > { %1954 = vst [vmem:[#allocation2 + $0x28] sm:$0xff] %v1876_v45  ;;  %v1723_v3 = vadd.f32 %v4440_v35, %v6489_v5  ;;  %2500 = vmatprep.mubr.f32.mxu1 %v1876_v45 }
 0x2d3   : > { %v1502_v12 = vpop.f32.mrb[4].mxu0 }
 0x2d4   : > { %v1877_v53 = vmax.f32 %v1723_v3, 0.0  ;;  %v4441_v11 = vadd.f32 %v6621_v38, %v1502_v12  ;;  %v1504_v54 = vpop.f32.mrb[5].mxu0 }
 0x2d6   : > { %1955 = vst [vmem:[#allocation2 + $0x30] sm:$0xff] %v1877_v53  ;;  %v1728_v43 = vadd.f32 %v4441_v11, %v6510_v14 }
 0x2d7   : > { %v1507_v6 = vpop.f32.mrb[6].mxu0 }
 0x2d8   : > { %v1878_v17 = vmax.f32 %v1728_v43, 0.0  ;;  %v4442_v26 = vadd.f32 %v6621_v38, %v1507_v6  ;;  %v1509_v34 = vpop.f32.mrb[7].mxu0 }
 0x2d9   : > { %v6632_v21 = vld [vmem:[#allocation2 + $0x27] sm:$0xff] }
 0x2da   : > { %1956 = vst [vmem:[#allocation2 + $0x48] sm:$0xff] %v1878_v17  ;;  %v1733_v32 = vadd.f32 %v4442_v26, %v6507_v15  ;;  %2501 = vmatmul.mubr.f32.gmra.mrb[36].mxu1 %v6632_v21 }
 0x2db   : > { %v1512_v5 = vpop.f32.mrb[8].mxu0  ;;  %2505 = vmatprep.mubr.f32.mxu1 %v1877_v53 }
 0x2dc   : > { %v1879_v25 = vmax.f32 %v1733_v32, 0.0  ;;  %v4443_v54 = vadd.f32 %v6621_v38, %v1512_v5  ;;  %v1514_v12 = vpop.f32.mrb[9].mxu0 }
 0x2dd   : > { %v6637_v45 = vld [vmem:[#allocation2 + $0x2f] sm:$0xff] }
 0x2de   : > { %1957 = vst [vmem:[#allocation2 + $0x50] sm:$0xff] %v1879_v25  ;;  %v1738_v14 = vadd.f32 %v4443_v54, %v6527_v39  ;;  %2506 = vmatmul.mubr.f32.gmra.mrb[38].mxu1 %v6637_v45 }
 0x2df   : > { %v1517_v35 = vpop.f32.mrb[10].mxu0  ;;  %2510 = vmatprep.mubr.f32.mxu1 %v1878_v17 }
 0x2e0   : > { %v1880_v3 = vmax.f32 %v1738_v14, 0.0  ;;  %v4444_v15 = vadd.f32 %v6621_v38, %v1517_v35  ;;  %v1519_v11 = vpop.f32.mrb[11].mxu0 }
 0x2e1   : > { %v6642_v43 = vld [vmem:[#allocation2 + $0x47] sm:$0xff] }
 0x2e2   : > { %1958 = vst [vmem:[#allocation2 + $0x68] sm:$0xff] %v1880_v3  ;;  %v1743_v53 = vadd.f32 %v4444_v15, %v6524_v13  ;;  %2511 = vmatmul.mubr.f32.gmra.mrb[40].mxu1 %v6642_v43 }
 0x2e3   : > { %v1522_v6 = vpop.f32.mrb[12].mxu0  ;;  %2515 = vmatprep.mubr.f32.mxu1 %v1879_v25 }
 0x2e4   : > { %v1881_v26 = vmax.f32 %v1743_v53, 0.0  ;;  %v4445_v39 = vadd.f32 %v6621_v38, %v1522_v6  ;;  %v1524_v34 = vpop.f32.mrb[13].mxu0 }
 0x2e5   : > { %v6647_v32 = vld [vmem:[#allocation2 + $0x49] sm:$0xff]  ;;  %v6651_v5 = vld [vmem:[#allocation2 + $0x51] sm:$0xff] }
 0x2e6   : > { %v6649_v17 = vld [vmem:[#allocation2 + $0x4f] sm:$0xff]  ;;  %1959 = vst [vmem:[#allocation2 + $0x70] sm:$0xff] %v1881_v26  ;;  %v1748_v54 = vadd.f32 %v4445_v39, %v6544_v60  ;;  %3927 = vmatprep.mubr.f32.mxu0 %v6647_v32 }
 0x2e7   : > { %2516 = vmatmul.mubr.f32.gmra.mrb[42].mxu1 %v6649_v17  ;;  %v1527_v13 = vpop.f32.mrb[14].mxu0  ;;  %3928 = vmatmul.mubr.f32.vlgmr.msra.gmra.mrb[64].mxu0 %v6651_v5 }
 0x2e8   : > { %2520 = vmatprep.mubr.f32.mxu1 %v1880_v3  ;;  %v1882_v25 = vmax.f32 %v1748_v54, 0.0  ;;  %v4446_v12 = vadd.f32 %v6621_v38, %v1527_v13  ;;  %v1529_v14 = vpop.f32.mrb[15].mxu0 }
 0x2e9   : > { %v6658_v35 = vld [vmem:[#allocation2 + $0x67] sm:$0xff] }
 0x2ea   : > { %1960 = vst [vmem:[#allocation2 + $0x88] sm:$0xff] %v1882_v25  ;;  %v1753_v15 = vadd.f32 %v4446_v12, %v6541_v50 }
 0x2eb   : > { %2521 = vmatmul.mubr.f32.gmra.mrb[44].mxu1 %v6658_v35  ;;  %v1532_v60 = vpop.f32.mrb[16].mxu0 }
 0x2ec   : > { %2525 = vmatprep.mubr.f32.mxu1 %v1881_v26  ;;  %v1883_v11 = vmax.f32 %v1753_v15, 0.0  ;;  %v4447_v53 = vadd.f32 %v6621_v38, %v1532_v60  ;;  %v1534_v6 = vpop.f32.mrb[17].mxu0 }
 0x2ed   : > { %v6663_v39 = vld [vmem:[#allocation2 + $0x69] sm:$0xff]  ;;  %v6667_v34 = vld [vmem:[#allocation2 + $0x71] sm:$0xff] }
 0x2ee   : > { %v6665_v3 = vld [vmem:[#allocation2 + $0x6f] sm:$0xff]  ;;  %1961 = vst [vmem:[#allocation2 + $0x90] sm:$0xff] %v1883_v11  ;;  %v1758_v54 = vadd.f32 %v4447_v53, %v6558_v37  ;;  %3930 = vmatprep.mubr.f32.mxu0 %v6663_v39 }
 0x2ef   : > { %2526 = vmatmul.mubr.f32.gmra.mrb[46].mxu1 %v6665_v3  ;;  %v1537_v50 = vpop.f32.mrb[18].mxu0  ;;  %3931 = vmatmul.mubr.f32.gmra.mrb[66].mxu0 %v6667_v34 }
 0x2f0   : > { %2530 = vmatprep.mubr.f32.mxu1 %v1882_v25  ;;  %v1884_v26 = vmax.f32 %v1758_v54, 0.0  ;;  %v4448_v13 = vadd.f32 %v6621_v38, %v1537_v50  ;;  %v1539_v12 = vpop.f32.mrb[19].mxu0 }
 0x2f1   : > { %v6674_v14 = vld [vmem:[#allocation2 + $0x87] sm:$0xff] }
 0x2f2   : > { %1962 = vst [vmem:[#allocation2 + $0xa8] sm:$0xff] %v1884_v26  ;;  %v1763_v15 = vadd.f32 %v4448_v13, %v6555_v4 }
 0x2f3   : > { %2531 = vmatmul.mubr.f32.gmra.mrb[48].mxu1 %v6674_v14  ;;  %v1542_v37 = vpop.f32.mrb[20].mxu0 }
 0x2f4   : > { %2535 = vmatprep.mubr.f32.mxu1 %v1883_v11  ;;  %v1885_v60 = vmax.f32 %v1763_v15, 0.0  ;;  %v4449_v53 = vadd.f32 %v6621_v38, %v1542_v37  ;;  %v1544_v6 = vpop.f32.mrb[21].mxu0 }
 0x2f5   : > { %v6679_v57 = vld [vmem:[#allocation2 + $0x89] sm:$0xff]  ;;  %v6683_v54 = vld [vmem:[#allocation2 + $0x91] sm:$0xff] }
 0x2f6   : > { %v6681_v25 = vld [vmem:[#allocation2 + $0x8f] sm:$0xff]  ;;  %1963 = vst [vmem:[#allocation2 + $0xb0] sm:$0xff] %v1885_v60  ;;  %v1768_v50 = vadd.f32 %v4449_v53, %v6566_v36  ;;  %3933 = vmatprep.mubr.f32.mxu0 %v6679_v57 }
 0x2f7   : > { %2536 = vmatmul.mubr.f32.gmra.mrb[50].mxu1 %v6681_v25  ;;  %v1547_v4 = vpop.f32.mrb[22].mxu0  ;;  %3934 = vmatmul.mubr.f32.gmra.mrb[68].mxu0 %v6683_v54 }
 0x2f8   : > { %2540 = vmatprep.mubr.f32.mxu1 %v1884_v26  ;;  %v1886_v11 = vmax.f32 %v1768_v50, 0.0  ;;  %v4450_v13 = vadd.f32 %v6621_v38, %v1547_v4  ;;  %v1549_v12 = vpop.f32.mrb[23].mxu0 }
 0x2f9   : > { %v6690_v15 = vld [vmem:[#allocation2 + $0xa7] sm:$0xff] }
 0x2fa   : > { %1964 = vst [vmem:[#allocation2 + $0xc8] sm:$0xff] %v1886_v11  ;;  %v1773_v37 = vadd.f32 %v4450_v13, %v6563_v40 }
 0x2fb   : > { %2541 = vmatmul.mubr.f32.gmra.mrb[52].mxu1 %v6690_v15  ;;  %v1552_v36 = vpop.f32.mrb[24].mxu0 }
 0x2fc   : > { %2545 = vmatprep.mubr.f32.mxu1 %v1885_v60  ;;  %v1887_v53 = vmax.f32 %v1773_v37, 0.0  ;;  %v4451_v6 = vadd.f32 %v6621_v38, %v1552_v36  ;;  %v1554_v55 = vpop.f32.mrb[25].mxu0 }
 0x2fd   : > { %v6695_v48 = vld [vmem:[#allocation2 + $0xa9] sm:$0xff]  ;;  %v6699_v50 = vld [vmem:[#allocation2 + $0xb1] sm:$0xff] }
 0x2fe   : > { %v6697_v26 = vld [vmem:[#allocation2 + $0xaf] sm:$0xff]  ;;  %1965 = vst [vmem:[#allocation2 + $0xd0] sm:$0xff] %v1887_v53  ;;  %v1778_v4 = vadd.f32 %v4451_v6, %v6571_v46  ;;  %3936 = vmatprep.mubr.f32.mxu0 %v6695_v48 }
 0x2ff   : > { %2546 = vmatmul.mubr.f32.gmra.mrb[54].mxu1 %v6697_v26  ;;  %v1557_v40 = vpop.f32.mrb[26].mxu0  ;;  %3937 = vmatmul.mubr.f32.gmra.mrb[70].mxu0 %v6699_v50 }
 0x300   : > { %2550 = vmatprep.mubr.f32.mxu1 %v1886_v11  ;;  %v1888_v60 = vmax.f32 %v1778_v4, 0.0  ;;  %v4452_v55 = vadd.f32 %v6621_v38, %v1557_v40  ;;  %v1559_v13 = vpop.f32.mrb[27].mxu0 }
 0x301   : > { %v6706_v12 = vld [vmem:[#allocation2 + $0xc7] sm:$0xff] }
 0x302   : > { %1966 = vst [vmem:[#allocation2 + $0xe8] sm:$0xff] %v1888_v60  ;;  %v1783_v37 = vadd.f32 %v4452_v55, %v6569_v49 }
 0x303   : > { %2551 = vmatmul.mubr.f32.gmra.mrb[56].mxu1 %v6706_v12  ;;  %v1562_v46 = vpop.f32.mrb[28].mxu0 }
 0x304   : > { %2555 = vmatprep.mubr.f32.mxu1 %v1887_v53  ;;  %v1889_v36 = vmax.f32 %v1783_v37, 0.0  ;;  %v4453_v6 = vadd.f32 %v6621_v38, %v1562_v46  ;;  %v1564_v41 = vpop.f32.mrb[29].mxu0 }
 0x305   : > { %v6711_v33 = vld [vmem:[#allocation2 + $0xc9] sm:$0xff]  ;;  %v6715_v4 = vld [vmem:[#allocation2 + $0xd1] sm:$0xff] }
 0x306   : > { %v6713_v11 = vld [vmem:[#allocation2 + $0xcf] sm:$0xff]  ;;  %1967 = vst [vmem:[#allocation2 + $0xf0] sm:$0xff] %v1889_v36  ;;  %v1788_v40 = vadd.f32 %v4453_v6, %v6576_v27  ;;  %3939 = vmatprep.mubr.f32.mxu0 %v6711_v33 }
 0x307   : > { %2556 = vmatmul.mubr.f32.gmra.mrb[58].mxu1 %v6713_v11  ;;  %v1567_v49 = vpop.f32.mrb[30].mxu0  ;;  %3940 = vmatmul.mubr.f32.gmra.mrb[72].mxu0 %v6715_v4 }
 0x308   : > { %2560 = vmatprep.mubr.f32.mxu1 %v1888_v60  ;;  %v1890_v53 = vmax.f32 %v1788_v40, 0.0  ;;  %v4454_v41 = vadd.f32 %v6621_v38, %v1567_v49  ;;  %v1569_v55 = vpop.f32.mrb[31].mxu0 }
 0x309   : > { %v6722_v13 = vld [vmem:[#allocation2 + $0xe7] sm:$0xff] }
 0x30a   : > { %1968 = vst [vmem:[#allocation2 + $0x108] sm:$0xff] %v1890_v53  ;;  %v1793_v37 = vadd.f32 %v4454_v41, %v6574_v62 }
 0x30b   : > { %2561 = vmatmul.mubr.f32.gmra.mrb[60].mxu1 %v6722_v13  ;;  %v1572_v27 = vpop.f32.mrb[32].mxu0 }
 0x30c   : > { %2565 = vmatprep.mubr.f32.mxu1 %v1889_v36  ;;  %v1891_v46 = vmax.f32 %v1793_v37, 0.0  ;;  %v4455_v6 = vadd.f32 %v6621_v38, %v1572_v27  ;;  %v1574_v24 = vpop.f32.mrb[33].mxu0 }
 0x30d   : > { %v6727_v18 = vld [vmem:[#allocation2 + $0xe9] sm:$0xff]  ;;  %v6731_v40 = vld [vmem:[#allocation2 + $0xf1] sm:$0xff] }
 0x30e   : > { %v6729_v60 = vld [vmem:[#allocation2 + $0xef] sm:$0xff]  ;;  %1969 = vst [vmem:[#allocation2 + $0x110] sm:$0xff] %v1891_v46  ;;  %v1798_v49 = vadd.f32 %v4455_v6, %v6581_v44  ;;  %3942 = vmatprep.mubr.f32.mxu0 %v6727_v18 }
 0x30f   : > { %2566 = vmatmul.mubr.f32.gmra.mrb[62].mxu1 %v6729_v60  ;;  %v1577_v62 = vpop.f32.mrb[34].mxu0  ;;  %3943 = vmatmul.mubr.f32.gmra.mrb[74].mxu0 %v6731_v40 }
 0x310   : > { %2570 = vmatprep.mubr.f32.mxu1 %v1890_v53  ;;  %v1892_v36 = vmax.f32 %v1798_v49, 0.0  ;;  %v4456_v24 = vadd.f32 %v6621_v38, %v1577_v62  ;;  %v1579_v41 = vpop.f32.mrb[35].mxu0 }
 0x311   : > { %v6738_v55 = vld [vmem:[#allocation2 + $0x107] sm:$0xff] }
 0x312   : > { %1970 = vst [vmem:[#allocation2 + $0x128] sm:$0xff] %v1892_v36  ;;  %v1803_v37 = vadd.f32 %v4456_v24, %v6579_v19 }
 0x313   : > { %2571 = vmatmul.mubr.f32.gmra.mrb[64].mxu1 %v6738_v55  ;;  %v1582_v44 = vpop.f32.mrb[36].mxu0 }
 0x314   : > { %2575 = vmatprep.mubr.f32.mxu1 %v1891_v46  ;;  %v1893_v27 = vmax.f32 %v1803_v37, 0.0  ;;  %v4457_v6 = vadd.f32 %v6621_v38, %v1582_v44  ;;  %v1584_v9 = vpop.f32.mrb[37].mxu0 }
 0x315   : > { %v6743_v58 = vld [vmem:[#allocation2 + $0x109] sm:$0xff]  ;;  %v6747_v49 = vld [vmem:[#allocation2 + $0x111] sm:$0xff] }
 0x316   : > { %v6745_v53 = vld [vmem:[#allocation2 + $0x10f] sm:$0xff]  ;;  %1971 = vst [vmem:[#allocation2 + $0x130] sm:$0xff] %v1893_v27  ;;  %v1808_v62 = vadd.f32 %v4457_v6, %v6586_v52  ;;  %3945 = vmatprep.mubr.f32.mxu0 %v6743_v58 }
 0x317   : > { %2576 = vmatmul.mubr.f32.gmra.mrb[66].mxu1 %v6745_v53  ;;  %v1587_v19 = vpop.f32.mrb[38].mxu0  ;;  %3946 = vmatmul.mubr.f32.gmra.mrb[76].mxu0 %v6747_v49 }
 0x318   : > { %2580 = vmatprep.mubr.f32.mxu1 %v1892_v36  ;;  %v1894_v46 = vmax.f32 %v1808_v62, 0.0  ;;  %v4458_v9 = vadd.f32 %v6621_v38, %v1587_v19  ;;  %v1589_v24 = vpop.f32.mrb[39].mxu0 }
 0x319   : > { %v6754_v41 = vld [vmem:[#allocation2 + $0x127] sm:$0xff] }
 0x31a   : > { %1972 = vst [vmem:[#allocation2 + $0x148] sm:$0xff] %v1894_v46  ;;  %v1813_v37 = vadd.f32 %v4458_v9, %v6584_v51 }
 0x31b   : > { %2581 = vmatmul.mubr.f32.gmra.mrb[68].mxu1 %v6754_v41  ;;  %v1592_v52 = vpop.f32.mrb[40].mxu0 }
 0x31c   : > { %2585 = vmatprep.mubr.f32.mxu1 %v1893_v27  ;;  %v1895_v44 = vmax.f32 %v1813_v37, 0.0  ;;  %v4459_v6 = vadd.f32 %v6621_v38, %v1592_v52  ;;  %v1594_v22 = vpop.f32.mrb[41].mxu0 }
 0x31d   : > { %v6759_v61 = vld [vmem:[#allocation2 + $0x129] sm:$0xff]  ;;  %v6763_v62 = vld [vmem:[#allocation2 + $0x131] sm:$0xff] }
 0x31e   : > { %v6761_v36 = vld [vmem:[#allocation2 + $0x12f] sm:$0xff]  ;;  %1973 = vst [vmem:[#allocation2 + $0x150] sm:$0xff] %v1895_v44  ;;  %v1818_v19 = vadd.f32 %v4459_v6, %v6591_v30  ;;  %3948 = vmatprep.mubr.f32.mxu0 %v6759_v61 }
 0x31f   : > { %2586 = vmatmul.mubr.f32.gmra.mrb[70].mxu1 %v6761_v36  ;;  %v1597_v51 = vpop.f32.mrb[42].mxu0  ;;  %3949 = vmatmul.mubr.f32.gmra.mrb[78].mxu0 %v6763_v62 }
 0x320   : > { %2590 = vmatprep.mubr.f32.mxu1 %v1894_v46  ;;  %v1896_v27 = vmax.f32 %v1818_v19, 0.0  ;;  %v4460_v22 = vadd.f32 %v6621_v38, %v1597_v51  ;;  %v1599_v9 = vpop.f32.mrb[43].mxu0 }
 0x321   : > { %v6770_v24 = vld [vmem:[#allocation2 + $0x147] sm:$0xff] }
 0x322   : > { %1974 = vst [vmem:[#allocation2 + $0x168] sm:$0xff] %v1896_v27  ;;  %v1823_v37 = vadd.f32 %v4460_v22, %v6589_v56 }
 0x323   : > { %2591 = vmatmul.mubr.f32.gmra.mrb[72].mxu1 %v6770_v24  ;;  %v1602_v30 = vpop.f32.mrb[44].mxu0 }
 0x324   : > { %2595 = vmatprep.mubr.f32.mxu1 %v1895_v44  ;;  %v1897_v52 = vmax.f32 %v1823_v37, 0.0  ;;  %v4461_v6 = vadd.f32 %v6621_v38, %v1602_v30  ;;  %v1604_v10 = vpop.f32.mrb[45].mxu0 }
 0x325   : > { %v6775_v8 = vld [vmem:[#allocation2 + $0x149] sm:$0xff]  ;;  %v6779_v19 = vld [vmem:[#allocation2 + $0x151] sm:$0xff] }
 0x326   : > { %v6777_v46 = vld [vmem:[#allocation2 + $0x14f] sm:$0xff]  ;;  %1975 = vst [vmem:[#allocation2 + $0x170] sm:$0xff] %v1897_v52  ;;  %v1828_v51 = vadd.f32 %v4461_v6, %v6596_v23  ;;  %3951 = vmatprep.mubr.f32.mxu0 %v6775_v8 }
 0x327   : > { %2596 = vmatmul.mubr.f32.gmra.mrb[74].mxu1 %v6777_v46  ;;  %v1607_v56 = vpop.f32.mrb[46].mxu0  ;;  %3952 = vmatmul.mubr.f32.gmra.mrb[80].mxu0 %v6779_v19 }
 0x328   : > { %2600 = vmatprep.mubr.f32.mxu1 %v1896_v27  ;;  %v1898_v44 = vmax.f32 %v1828_v51, 0.0  ;;  %v4462_v10 = vadd.f32 %v6621_v38, %v1607_v56  ;;  %v1609_v22 = vpop.f32.mrb[47].mxu0 }
 0x329   : > { %v6786_v9 = vld [vmem:[#allocation2 + $0x167] sm:$0xff] }
 0x32a   : > { %1976 = vst [vmem:[#allocation2 + $0x188] sm:$0xff] %v1898_v44  ;;  %v1833_v37 = vadd.f32 %v4462_v10, %v6594_v20 }
 0x32b   : > { %2601 = vmatmul.mubr.f32.gmra.mrb[76].mxu1 %v6786_v9  ;;  %v1612_v23 = vpop.f32.mrb[48].mxu0 }
 0x32c   : > { %2605 = vmatprep.mubr.f32.mxu1 %v1897_v52  ;;  %v1899_v30 = vmax.f32 %v1833_v37, 0.0  ;;  %v4463_v6 = vadd.f32 %v6621_v38, %v1612_v23  ;;  %v1614_v42 = vpop.f32.mrb[49].mxu0 }
 0x32d   : > { %v6791_v0 = vld [vmem:[#allocation2 + $0x169] sm:$0xff]  ;;  %v6795_v51 = vld [vmem:[#allocation2 + $0x171] sm:$0xff] }
 0x32e   : > { %v6793_v27 = vld [vmem:[#allocation2 + $0x16f] sm:$0xff]  ;;  %1977 = vst [vmem:[#allocation2 + $0x190] sm:$0xff] %v1899_v30  ;;  %v1838_v56 = vadd.f32 %v4463_v6, %v6601_v7  ;;  %3954 = vmatprep.mubr.f32.mxu0 %v6791_v0 }
 0x32f   : > { %2606 = vmatmul.mubr.f32.gmra.mrb[78].mxu1 %v6793_v27  ;;  %v1617_v20 = vpop.f32.mrb[50].mxu0  ;;  %3955 = vmatmul.mubr.f32.gmra.mrb[82].mxu0 %v6795_v51 }
 0x330   : > { %2610 = vmatprep.mubr.f32.mxu1 %v1898_v44  ;;  %v6801_v52 = vmax.f32 %v1838_v56, 0.0  ;;  %v4464_v42 = vadd.f32 %v6621_v38, %v1617_v20  ;;  %v1619_v10 = vpop.f32.mrb[51].mxu0 }
 0x331   : > { %v6804_v22 = vld [vmem:[#allocation2 + $0x187] sm:$0xff] }
 0x332   : > { %7561 = vst [vmem:[#allocation49_spill] sm:$0xff] %v6801_v52  ;;  %1978 = vst [vmem:[#allocation2 + $0x1a8] sm:$0xff] %v6801_v52  ;;  %v1843_v37 = vadd.f32 %v4464_v42, %v6599_v59 }
 0x333   : > { %2611 = vmatmul.mubr.f32.gmra.mrb[80].mxu1 %v6804_v22  ;;  %v1622_v7 = vpop.f32.mrb[52].mxu0 }
 0x334   : > { %2615 = vmatprep.mubr.f32.mxu1 %v1899_v30  ;;  %v6809_v23 = vmax.f32 %v1843_v37, 0.0  ;;  %v4465_v6 = vadd.f32 %v6621_v38, %v1622_v7  ;;  %v1624_v44 = vpop.f32.mrb[53].mxu0 }
 0x335   : > { %v6812_v56 = vld [vmem:[#allocation2 + $0x189] sm:$0xff]  ;;  %v6816_v20 = vld [vmem:[#allocation2 + $0x191] sm:$0xff] }
 0x336   : > { %7562 = vst [vmem:[#allocation50_spill] sm:$0xff] %v6809_v23  ;;  %v6814_v47 = vld [vmem:[#allocation2 + $0x18f] sm:$0xff]  ;;  %7563 = vst [vmem:[#allocation51_spill] sm:$0xff] %v6816_v20  ;;  %v1848_v10 = vadd.f32 %v4465_v6, %v6606_v2  ;;  %3957 = vmatprep.mubr.f32.mxu0 %v6812_v56 }
 0x337   : > { %1979 = vst [vmem:[#allocation2 + $0x1b0] sm:$0xff] %v6809_v23  ;;  %2616 = vmatmul.mubr.f32.gmra.mrb[82].mxu1 %v6814_v47  ;;  %v1627_v59 = vpop.f32.mrb[54].mxu0  ;;  %3958 = vmatmul.mubr.f32.gmra.mrb[84].mxu0 %v6816_v20 }
 0x338   : > { %2620 = vmatprep.mubr.f32.mxu1 %v6801_v52  ;;  %v6824_v30 = vmax.f32 %v1848_v10, 0.0  ;;  %v4466_v42 = vadd.f32 %v6621_v38, %v1627_v59  ;;  %v1629_v37 = vpop.f32.mrb[55].mxu0 }
 0x339   : > { %v6827_v7 = vld [vmem:[#allocation2 + $0x1a7] sm:$0xff] }
 0x33a   : > { %7564 = vst [vmem:[#allocation52_spill] sm:$0xff] %v6824_v30  ;;  %1980 = vst [vmem:[#allocation2 + $0x1c8] sm:$0xff] %v6824_v30  ;;  %v1853_v2 = vadd.f32 %v4466_v42, %v6604_v16 }
 0x33b   : > { %2621 = vmatmul.mubr.f32.gmra.mrb[84].mxu1 %v6827_v7  ;;  %v1632_v6 = vpop.f32.mrb[56].mxu0 }
 0x33c   : > { %2625 = vmatprep.mubr.f32.mxu1 %v6809_v23  ;;  %v6833_v44 = vmax.f32 %v1853_v2, 0.0  ;;  %v4467_v52 = vadd.f32 %v6621_v38, %v1632_v6  ;;  %v1634_v10 = vpop.f32.mrb[57].mxu0 }
 0x33e   : > { %7565 = vst [vmem:[#allocation53_spill] sm:$0xff] %v6833_v44  ;;  %v6836_v20 = vld [vmem:[#allocation2 + $0x1a9] sm:$0xff]  ;;  %v6840_v37 = vld [vmem:[#allocation2 + $0x1b1] sm:$0xff]  ;;  %1981 = vst [vmem:[#allocation2 + $0x1d0] sm:$0xff] %v6833_v44  ;;  %v1858_v16 = vadd.f32 %v4467_v52, %v6611_v29 }
 0x33f   : > { %7566 = vst [vmem:[#allocation54_spill] sm:$0xff] %v6836_v20  ;;  %v6838_v59 = vld [vmem:[#allocation2 + $0x1af] sm:$0xff]  ;;  %7567 = vst [vmem:[#allocation55_spill] sm:$0xff] %v6840_v37  ;;  %3960 = vmatprep.mubr.f32.mxu0 %v6836_v20  ;;  %v1637_v42 = vpop.f32.mrb[58].mxu0 }
 0x340   : > { %2626 = vmatmul.mubr.f32.gmra.mrb[86].mxu1 %v6838_v59  ;;  %3961 = vmatmul.mubr.f32.gmra.mrb[86].mxu0 %v6840_v37  ;;  %v6848_v2 = vmax.f32 %v1858_v16, 0.0  ;;  %v4468_v6 = vadd.f32 %v6621_v38, %v1637_v42  ;;  %v1639_v10 = vpop.f32.mrb[59].mxu0 }
 0x341   : > { %2630 = vmatprep.mubr.f32.mxu1 %v6824_v30  ;;  %v6851_v23 = vld [vmem:[#allocation2 + $0x1c7] sm:$0xff] }
 0x342   : > { %7568 = vst [vmem:[#allocation56_spill] sm:$0xff] %v6848_v2  ;;  %1982 = vst [vmem:[#allocation2 + $0x1e8] sm:$0xff] %v6848_v2  ;;  %v1863_v29 = vadd.f32 %v4468_v6, %v6609_v28 }
 0x343   : > { %v1642_v52 = vpop.f32.mrb[60].mxu0 }
 0x344   : > { %2631 = vmatmul.mubr.f32.gmra.mrb[88].mxu1 %v6851_v23  ;;  %v6857_v20 = vmax.f32 %v1863_v29, 0.0  ;;  %v4469_v30 = vadd.f32 %v6621_v38, %v1642_v52  ;;  %v1644_v16 = vpop.f32.mrb[61].mxu0 }
 0x345   : > { %2635 = vmatprep.mubr.f32.mxu1 %v6833_v44  ;;  %v6860_v37 = vld [vmem:[#allocation2 + $0x1cf] sm:$0xff] }
 0x346   : > { %7569 = vst [vmem:[#allocation57_spill] sm:$0xff] %v6857_v20  ;;  %1983 = vst [vmem:[#allocation2 + $0x1f0] sm:$0xff] %v6857_v20  ;;  %v6864_v42 = vadd.f32 %v4469_v30, %v6616_v31  ;;  %v2339_v30 = vld [vmem:[#allocation3 + $0x200] sm:$0xff]  ;;  %v2340_v16 = vld [vmem:[#allocation3 + $0x208] sm:$0xff] }
 0x347   : > { %v1647_v28 = vpop.f32.mrb[62].mxu0 }
 0x348   : > { %7570 = vst [vmem:[#allocation58_spill] sm:$0xff] %v6864_v42  ;;  %2636 = vmatmul.mubr.f32.gmra.mrb[90].mxu1 %v6860_v37  ;;  %v7485_v6 = vmax.f32 %v6864_v42, 0.0  ;;  %v4470_v10 = vadd.f32 %v6621_v38, %v1647_v28  ;;  %v1649_v29 = vpop.f32.mrb[63].mxu0  ;;  %v2050_v38 = vld [vmem:[#allocation2 + $0x9] sm:$0xff]  ;;  %v2343_v42 = vld [vmem:[#allocation3 + $0x220] sm:$0xff] }
 0x349   : > { %2640 = vmatprep.mubr.f32.mxu1 %v6848_v2  ;;  %v6870_v44 = vld [vmem:[#allocation2 + $0x1e7] sm:$0xff]  ;;  %v2341_v28 = vld [vmem:[#allocation3 + $0x210] sm:$0xff] }
 0x34a   : > { %1984 = vst [vmem:[#allocation2 + $0x208] sm:$0xff] %v7485_v6  ;;  %v6875_v52 = vadd.f32 %v4470_v10, %v6614_v63  ;;  %v4296_v63 = vpack.c.bf16 %v2340_v16, %v2339_v30  ;;  %v2342_v10 = vld [vmem:[#allocation3 + $0x218] sm:$0xff]  ;;  %v6890_v16 = vld [vmem:[#allocation2 + $0x29] sm:$0xff] }
 0x34b   : > { %v2051_v29 = vld [vmem:[#allocation2 + $0x11] sm:$0xff]  ;;  %v4299_v6 = vpack.c.bf16 %v2342_v10, %v2341_v28 }
 0x34c   : > { %2641 = vmatmul.mubr.f32.gmra.mrb[92].mxu1 %v6870_v44  ;;  %v7488_v31 = vmax.f32 %v6875_v52, 0.0  ;;  %v2346_v30 = vld [vmem:[#allocation3 + $0x238] sm:$0xff]  ;;  %v2353_v10 = vld [vmem:[#allocation3 + $0x270] sm:$0xff] }
 0x34d   : > { %2645 = vmatprep.mubr.f32.mxu1 %v6857_v20  ;;  %v6880_v2 = vld [vmem:[#allocation2 + $0x1ef] sm:$0xff] }
 0x34e   : > { %1985 = vst [vmem:[#allocation2 + $0x210] sm:$0xff] %v7488_v31  ;;  %v2344_v20 = vld [vmem:[#allocation3 + $0x228] sm:$0xff]  ;;  %v6895_v28 = vld [vmem:[#allocation2 + $0x31] sm:$0xff] }
 0x34f   : > { %v4302_v31 = vpack.c.bf16 %v2344_v20, %v2343_v42  ;;  %v2349_v20 = vld [vmem:[#allocation3 + $0x250] sm:$0xff]  ;;  %v2350_v42 = vld [vmem:[#allocation3 + $0x258] sm:$0xff] }
 0x350   : > { %2646 = vmatmul.mubr.f32.gmra.mrb[94].mxu1 %v6880_v2 }
 0x351   : > { %2715 = vmatprep.mubr.f32.mxu1 %v6632_v21  ;;  %v2345_v21 = vld [vmem:[#allocation3 + $0x230] sm:$0xff] }
 0x354   : > { %2716 = vmatmul.mubr.f32.vlgmr.msra.gmra.mrb[32].mxu1 %v2050_v38  ;;  %v2347_v38 = vld [vmem:[#allocation3 + $0x240] sm:$0xff] }
 0x355   : > { %2720 = vmatprep.mubr.f32.mxu1 %v6637_v45  ;;  %4297 = vmatpush1.bf16.msra.mxu1 %v4296_v63  ;;  %v4305_v45 = vpack.c.bf16 %v2346_v30, %v2345_v21  ;;  %v2348_v63 = vld [vmem:[#allocation3 + $0x248] sm:$0xff]  ;;  %v2358_v30 = vld [vmem:[#allocation3 + $0x298] sm:$0xff] }
 0x356   : > { %4298 = vmatprep.subr.bf16.mxu1 %v7526_v1  ;;  %v2356_v21 = vld [vmem:[#allocation3 + $0x288] sm:$0xff] }
 0x358   : > { %2721 = vmatmul.mubr.f32.gmra.mrb[34].mxu1 %v2051_v29  ;;  %v2354_v29 = vld [vmem:[#allocation3 + $0x278] sm:$0xff] }
 0x359   : > { %2725 = vmatprep.mubr.f32.mxu1 %v6642_v43  ;;  %4300 = vmatpush1.bf16.msra.mxu1 %v4299_v6  ;;  %v4308_v43 = vpack.c.bf16 %v2348_v63, %v2347_v38  ;;  %v2351_v6 = vld [vmem:[#allocation3 + $0x260] sm:$0xff]  ;;  %v2362_v38 = vld [vmem:[#allocation3 + $0x2b8] sm:$0xff]  ;;  %v2364_v63 = vld [vmem:[#allocation3 + $0x2c8] sm:$0xff] }
 0x35a   : > { %4301 = vmatprep.subr.bf16.mxu1 %v7526_v1 }
 0x35c   : > { %2726 = vmatmul.mubr.f32.gmra.mrb[36].mxu1 %v6890_v16 }
 0x35d   : > { %2730 = vmatprep.mubr.f32.mxu1 %v6649_v17  ;;  %4303 = vmatpush1.bf16.msra.mxu1 %v4302_v31  ;;  %v4311_v17 = vpack.c.bf16 %v2350_v42, %v2349_v20  ;;  %v2352_v31 = vld [vmem:[#allocation3 + $0x268] sm:$0xff]  ;;  %v2370_v42 = vld [vmem:[#allocation3 + $0x2f8] sm:$0xff] }
 0x35e   : > { %4304 = vmatprep.subr.bf16.mxu1 %v7526_v1  ;;  %v2368_v20 = vld [vmem:[#allocation3 + $0x2e8] sm:$0xff] }
 0x360   : > { %2731 = vmatmul.mubr.f32.gmra.mrb[38].mxu1 %v6895_v28 }
 0x361   : > { %2735 = vmatprep.mubr.f32.mxu1 %v6658_v35  ;;  %4306 = vmatpush1.bf16.msra.mxu1 %v4305_v45  ;;  %v4314_v35 = vpack.c.bf16 %v2352_v31, %v2351_v6  ;;  %v2360_v45 = vld [vmem:[#allocation3 + $0x2a8] sm:$0xff]  ;;  %v2375_v31 = vld [vmem:[#allocation3 + $0x320] sm:$0xff] }
 0x362   : > { %4307 = vmatprep.subr.bf16.mxu1 %v7526_v1 }
 0x364   : > { %2736 = vmatmul.mubr.f32.gmra.mrb[40].mxu1 %v6647_v32  ;;  %v4317_v32 = vpack.c.bf16 %v2354_v29, %v2353_v10  ;;  %v2115_v10 = vld [vmem:[#allocation2 + $0x30] sm:$0xff] }
 0x365   : > { %2740 = vmatprep.mubr.f32.mxu1 %v6665_v3  ;;  %4309 = vmatpush1.bf16.msra.mxu1 %v4308_v43  ;;  %v2355_v3 = vld [vmem:[#allocation3 + $0x280] sm:$0xff]  ;;  %v2366_v43 = vld [vmem:[#allocation3 + $0x2d8] sm:$0xff] }
 0x366   : > { %4310 = vmatprep.subr.bf16.mxu1 %v7526_v1 }
 0x368   : > { %2741 = vmatmul.mubr.f32.gmra.mrb[42].mxu1 %v6651_v5  ;;  %v4320_v5 = vpack.c.bf16 %v2356_v21, %v2355_v3  ;;  %v2378_v3 = vld [vmem:[#allocation3 + $0x338] sm:$0xff]  ;;  %v6999_v21 = vld [vmem:[#allocation2 + $0x48] sm:$0xff] }
 0x369   : > { %2745 = vmatprep.mubr.f32.mxu1 %v6674_v14  ;;  %4312 = vmatpush1.bf16.msra.mxu1 %v4311_v17  ;;  %v2357_v14 = vld [vmem:[#allocation3 + $0x290] sm:$0xff] }
 0x36a   : > { %4313 = vmatprep.subr.bf16.mxu1 %v7526_v1 }
 0x36c   : > { %2746 = vmatmul.mubr.f32.gmra.mrb[44].mxu1 %v6663_v39  ;;  %v4323_v39 = vpack.c.bf16 %v2358_v30, %v2357_v14 }
 0x36d   : > { %2750 = vmatprep.mubr.f32.mxu1 %v6681_v25  ;;  %4315 = vmatpush1.bf16.msra.mxu1 %v4314_v35  ;;  %v2359_v25 = vld [vmem:[#allocation3 + $0x2a0] sm:$0xff]  ;;  %v2376_v35 = vld [vmem:[#allocation3 + $0x328] sm:$0xff] }
 0x36e   : > { %4316 = vmatprep.subr.bf16.mxu1 %v7526_v1  ;;  %v4350_v29 = vpack.c.bf16 %v2376_v35, %v2375_v31  ;;  %v7031_v31 = vld [vmem:[#allocation2 + $0x90] sm:$0xff] }
 0x36f   : > { %v2154_v35 = vld [vmem:[#allocation2 + $0xa9] sm:$0xff] }
 0x370   : > { %2751 = vmatmul.mubr.f32.gmra.mrb[46].mxu1 %v6667_v34  ;;  %v4326_v34 = vpack.c.bf16 %v2360_v45, %v2359_v25  ;;  %v2380_v25 = vld [vmem:[#allocation3 + $0x348] sm:$0xff]  ;;  %v7007_v45 = vld [vmem:[#allocation2 + $0x50] sm:$0xff] }
 0x371   : > { %2755 = vmatprep.mubr.f32.mxu1 %v6690_v15  ;;  %4318 = vmatpush1.bf16.msra.mxu1 %v4317_v32  ;;  %v2361_v15 = vld [vmem:[#allocation3 + $0x2b0] sm:$0xff] }
 0x372   : > { %4319 = vmatprep.subr.bf16.mxu1 %v7526_v1  ;;  %v2377_v32 = vld [vmem:[#allocation3 + $0x330] sm:$0xff] }
 0x373   : > { %v4353_v30 = vpack.c.bf16 %v2378_v3, %v2377_v32  ;;  %v7035_v32 = vld [vmem:[#allocation2 + $0xa8] sm:$0xff] }
 0x374   : > { %2756 = vmatmul.mubr.f32.gmra.mrb[48].mxu1 %v6679_v57  ;;  %v4329_v57 = vpack.c.bf16 %v2362_v38, %v2361_v15  ;;  %v2381_v38 = vld [vmem:[#allocation3 + $0x350] sm:$0xff] }
 0x375   : > { %2760 = vmatprep.mubr.f32.mxu1 %v6697_v26  ;;  %4321 = vmatpush1.bf16.msra.mxu1 %v4320_v5  ;;  %v2363_v26 = vld [vmem:[#allocation3 + $0x2c0] sm:$0xff] }
 0x376   : > { %4322 = vmatprep.subr.bf16.mxu1 %v7526_v1 }
 0x378   : > { %2761 = vmatmul.mubr.f32.gmra.mrb[50].mxu1 %v6683_v54  ;;  %v4332_v54 = vpack.c.bf16 %v2364_v63, %v2363_v26  ;;  %v7011_v26 = vld [vmem:[#allocation2 + $0x68] sm:$0xff] }
 0x379   : > { %2765 = vmatprep.mubr.f32.mxu1 %v6706_v12  ;;  %4324 = vmatpush1.bf16.msra.mxu1 %v4323_v39  ;;  %v2365_v12 = vld [vmem:[#allocation3 + $0x2d0] sm:$0xff]  ;;  %v2379_v39 = vld [vmem:[#allocation3 + $0x340] sm:$0xff] }
 0x37a   : > { %4325 = vmatprep.subr.bf16.mxu1 %v7526_v1  ;;  %v4356_v15 = vpack.c.bf16 %v2380_v25, %v2379_v39  ;;  %v2391_v25 = vld [vmem:[#allocation3 + $0x3a0] sm:$0xff] }
 0x37c   : > { %2766 = vmatmul.mubr.f32.gmra.mrb[52].mxu1 %v6695_v48  ;;  %v4335_v48 = vpack.c.bf16 %v2366_v43, %v2365_v12 }
 0x37d   : > { %2770 = vmatprep.mubr.f32.mxu1 %v6713_v11  ;;  %4327 = vmatpush1.bf16.msra.mxu1 %v4326_v34  ;;  %v2367_v11 = vld [vmem:[#allocation3 + $0x2e0] sm:$0xff]  ;;  %v2150_v34 = vld [vmem:[#allocation2 + $0x69] sm:$0xff] }
 0x37e   : > { %4328 = vmatprep.subr.bf16.mxu1 %v7526_v1 }
 0x380   : > { %2771 = vmatmul.mubr.f32.gmra.mrb[54].mxu1 %v6699_v50  ;;  %v4338_v50 = vpack.c.bf16 %v2368_v20, %v2367_v11  ;;  %v2384_v11 = vld [vmem:[#allocation3 + $0x368] sm:$0xff]  ;;  %v7019_v20 = vld [vmem:[#allocation2 + $0x70] sm:$0xff] }
 0x381   : > { %2775 = vmatprep.mubr.f32.mxu1 %v6722_v13  ;;  %4330 = vmatpush1.bf16.msra.mxu1 %v4329_v57  ;;  %v2369_v13 = vld [vmem:[#allocation3 + $0x2f0] sm:$0xff]  ;;  %v2382_v57 = vld [vmem:[#allocation3 + $0x358] sm:$0xff] }
 0x382   : > { %4331 = vmatprep.subr.bf16.mxu1 %v7526_v1  ;;  %v4359_v43 = vpack.c.bf16 %v2382_v57, %v2381_v38  ;;  %v2156_v38 = vld [vmem:[#allocation2 + $0xc9] sm:$0xff] }
 0x384   : > { %2776 = vmatmul.mubr.f32.gmra.mrb[56].mxu1 %v6711_v33  ;;  %v4341_v33 = vpack.c.bf16 %v2370_v42, %v2369_v13  ;;  %v2385_v42 = vld [vmem:[#allocation3 + $0x370] sm:$0xff] }
 0x385   : > { %2780 = vmatprep.mubr.f32.mxu1 %v6729_v60  ;;  %4333 = vmatpush1.bf16.msra.mxu1 %v4332_v54  ;;  %v2151_v54 = vld [vmem:[#allocation2 + $0x71] sm:$0xff] }
 0x386   : > { %4334 = vmatprep.subr.bf16.mxu1 %v7526_v1 }
 0x388   : > { %2781 = vmatmul.mubr.f32.gmra.mrb[58].mxu1 %v6715_v4  ;;  %v7572_v4 = vld [vmem:[#allocation54_spill] sm:$0xff] }
 0x389   : > { %2785 = vmatprep.mubr.f32.mxu1 %v6738_v55  ;;  %4336 = vmatpush1.bf16.msra.mxu1 %v4335_v48  ;;  %v2383_v48 = vld [vmem:[#allocation3 + $0x360] sm:$0xff] }
 0x38a   : > { %4337 = vmatprep.subr.bf16.mxu1 %v7526_v1  ;;  %v4362_v13 = vpack.c.bf16 %v2384_v11, %v2383_v48  ;;  %v7047_v48 = vld [vmem:[#allocation2 + $0xc8] sm:$0xff] }
 0x38c   : > { %2786 = vmatmul.mubr.f32.gmra.mrb[60].mxu1 %v6727_v18  ;;  %v7571_v18 = vld [vmem:[#allocation51_spill] sm:$0xff] }
 0x38d   : > { %2790 = vmatprep.mubr.f32.mxu1 %v6745_v53  ;;  %4339 = vmatpush1.bf16.msra.mxu1 %v4338_v50  ;;  %v2152_v50 = vld [vmem:[#allocation2 + $0x89] sm:$0xff] }
 0x38e   : > { %4340 = vmatprep.subr.bf16.mxu1 %v7526_v1 }
 0x390   : > { %2791 = vmatmul.mubr.f32.gmra.mrb[62].mxu1 %v6731_v40  ;;  %v6964_v40 = vld [vmem:[#allocation2 + $0x1c9] sm:$0xff] }
 0x391   : > { %2795 = vmatprep.mubr.f32.mxu1 %v6754_v41  ;;  %4342 = vmatpush1.bf16.msra.mxu1 %v4341_v33  ;;  %v6975_v41 = vld [vmem:[#allocation2 + $0x207] sm:$0xff]  ;;  %v2386_v33 = vld [vmem:[#allocation3 + $0x378] sm:$0xff] }
 0x392   : > { %4343 = vmatprep.subr.bf16.mxu1 %v7526_v1 }
 0x394   : > { %2796 = vmatmul.mubr.f32.gmra.mrb[64].mxu1 %v6743_v58 }
 0x395   : > { %2800 = vmatprep.mubr.f32.mxu1 %v6761_v36  ;;  %v6978_v36 = vld [vmem:[#allocation2 + $0x1e9] sm:$0xff] }
 0x398   : > { %2801 = vmatmul.mubr.f32.gmra.mrb[66].mxu1 %v6747_v49  ;;  %v6972_v49 = vld [vmem:[#allocation2 + $0x1d1] sm:$0xff] }
 0x399   : > { %2805 = vmatprep.mubr.f32.mxu1 %v6770_v24 }
 0x39c   : > { %2806 = vmatmul.mubr.f32.gmra.mrb[68].mxu1 %v6759_v61 }
 0x39d   : > { %2810 = vmatprep.mubr.f32.mxu1 %v6777_v46  ;;  %v6983_v46 = vld [vmem:[#allocation2 + $0x20f] sm:$0xff] }
 0x3a0   : > { %2811 = vmatmul.mubr.f32.gmra.mrb[70].mxu1 %v6763_v62 }
 0x3a1   : > { %2815 = vmatprep.mubr.f32.mxu1 %v6786_v9 }
 0x3a4   : > { %2816 = vmatmul.mubr.f32.gmra.mrb[72].mxu1 %v6775_v8 }
 0x3a5   : > { %2820 = vmatprep.mubr.f32.mxu1 %v6793_v27  ;;  %v2371_v27 = vld [vmem:[#allocation3 + $0x300] sm:$0xff] }
 0x3a8   : > { %2821 = vmatmul.mubr.f32.gmra.mrb[74].mxu1 %v6779_v19 }
 0x3a9   : > { %2825 = vmatprep.mubr.f32.mxu1 %v6804_v22  ;;  %v2372_v22 = vld [vmem:[#allocation3 + $0x308] sm:$0xff] }
 0x3ac   : > { %2826 = vmatmul.mubr.f32.gmra.mrb[76].mxu1 %v6791_v0 }
 0x3ad   : > { %2830 = vmatprep.mubr.f32.mxu1 %v6814_v47  ;;  %v7573_v47 = vld [vmem:[#allocation55_spill] sm:$0xff] }
 0x3b0   : > { %2831 = vmatmul.mubr.f32.gmra.mrb[78].mxu1 %v6795_v51 }
 0x3b1   : > { %2835 = vmatprep.mubr.f32.mxu1 %v6827_v7  ;;  %v4344_v7 = vpack.c.bf16 %v2372_v22, %v2371_v27  ;;  %v7023_v27 = vld [vmem:[#allocation2 + $0x88] sm:$0xff] }
 0x3b4   : > { %2836 = vmatmul.mubr.f32.gmra.mrb[80].mxu1 %v6812_v56 }
 0x3b5   : > { %2840 = vmatprep.mubr.f32.mxu1 %v6838_v59  ;;  %v2374_v59 = vld [vmem:[#allocation3 + $0x318] sm:$0xff] }
 0x3b8   : > { %2841 = vmatmul.mubr.f32.gmra.mrb[82].mxu1 %v7571_v18 }
 0x3b9   : > { %2845 = vmatprep.mubr.f32.mxu1 %v6851_v23  ;;  %v6988_v23 = vld [vmem:[#allocation2 + $0x1f1] sm:$0xff] }
 0x3ba   : > { %v6956_v58 = vpop.f32.mrb[64].mxu0 }
 0x3bb   : > { %v6959_v60 = vpop.f32.mrb[65].mxu0 }
 0x3bc   : > { %2846 = vmatmul.mubr.f32.gmra.mrb[84].mxu1 %v7572_v4 }
 0x3bd   : > { %2850 = vmatprep.mubr.f32.mxu1 %v6860_v37  ;;  %v2114_v37 = vld [vmem:[#allocation2 + $0x28] sm:$0xff] }
 0x3c0   : > { %2851 = vmatmul.mubr.f32.gmra.mrb[86].mxu1 %v7573_v47 }
 0x3c1   : > { %2855 = vmatprep.mubr.f32.mxu1 %v6870_v44  ;;  %v2373_v44 = vld [vmem:[#allocation3 + $0x310] sm:$0xff] }
 0x3c2   : > { %v6966_v55 = vpop.f32.mrb[66].mxu0  ;;  %v4347_v6 = vpack.c.bf16 %v2374_v59, %v2373_v44  ;;  %v4365_v59 = vpack.c.bf16 %v2386_v33, %v2385_v42  ;;  %v2395_v33 = vld [vmem:[#allocation3 + $0x3c0] sm:$0xff] }
 0x3c3   : > { %v6969_v53 = vpop.f32.mrb[67].mxu0 }
 0x3c4   : > { %2856 = vmatmul.mubr.f32.gmra.mrb[88].mxu1 %v6964_v40 }
 0x3c5   : > { %2860 = vmatprep.mubr.f32.mxu1 %v6880_v2 }
 0x3c8   : > { %2861 = vmatmul.mubr.f32.gmra.mrb[90].mxu1 %v6972_v49 }
 0x3c9   : > { %2865 = vmatprep.mubr.f32.mxu1 %v6975_v41 }
 0x3ca   : > { %v6980_v24 = vpop.f32.mrb[68].mxu0 }
 0x3cb   : > { %v6985_v9 = vpop.f32.mrb[69].mxu0 }
 0x3cc   : > { %2866 = vmatmul.mubr.f32.gmra.mrb[92].mxu1 %v6978_v36 }
 0x3cd   : > { %2870 = vmatprep.mubr.f32.mxu1 %v6983_v46 }
 0x3d0   : > { %2871 = vmatmul.mubr.f32.gmra.mrb[94].mxu1 %v6988_v23 }
 0x3d1   : > { %2940 = vmatprep.mubr.f32.mxu1 %v6890_v16  ;;  %v2148_v16 = vld [vmem:[#allocation2 + $0x49] sm:$0xff] }
 0x3d2   : > { %v6992_v2 = vpop.f32.mrb[70].mxu0 }
 0x3d3   : > { %v6994_v17 = vpop.f32.mrb[71].mxu0 }
 0x3d4   : > { %2941 = vmatmul.mubr.f32.vlgmr.msra.gmra.mrb[32].mxu1 %v2114_v37  ;;  %v2387_v37 = vld [vmem:[#allocation3 + $0x380] sm:$0xff] }
 0x3d5   : > { %2945 = vmatprep.mubr.f32.mxu1 %v6895_v28  ;;  %4345 = vmatpush1.bf16.msra.mxu1 %v4344_v7  ;;  %v2149_v28 = vld [vmem:[#allocation2 + $0x51] sm:$0xff] }
 0x3d6   : > { %4346 = vmatprep.subr.bf16.mxu1 %v7526_v1  ;;  %v2153_v7 = vld [vmem:[#allocation2 + $0x91] sm:$0xff] }
 0x3d8   : > { %2946 = vmatmul.mubr.f32.gmra.mrb[34].mxu1 %v2115_v10 }
 0x3d9   : > { %2950 = vmatprep.mubr.f32.mxu1 %v2148_v16  ;;  %4348 = vmatpush1.bf16.msra.mxu1 %v4347_v6  ;;  %v2388_v6 = vld [vmem:[#allocation3 + $0x388] sm:$0xff]  ;;  %v2389_v16 = vld [vmem:[#allocation3 + $0x390] sm:$0xff] }
 0x3da   : > { %4349 = vmatprep.subr.bf16.mxu1 %v7526_v1  ;;  %v7001_v5 = vpop.f32.mrb[72].mxu0  ;;  %v4368_v10 = vpack.c.bf16 %v2388_v6, %v2387_v37  ;;  %v2158_v37 = vld [vmem:[#allocation2 + $0xe9] sm:$0xff] }
 0x3db   : > { %v7004_v14 = vpop.f32.mrb[73].mxu0 }
 0x3dc   : > { %2951 = vmatmul.mubr.f32.gmra.mrb[36].mxu1 %v6999_v21 }
 0x3dd   : > { %2955 = vmatprep.mubr.f32.mxu1 %v2149_v28  ;;  %4351 = vmatpush1.bf16.msra.mxu1 %v4350_v29  ;;  %v2390_v29 = vld [vmem:[#allocation3 + $0x398] sm:$0xff] }
 0x3de   : > { %4352 = vmatprep.subr.bf16.mxu1 %v7526_v1  ;;  %v2155_v28 = vld [vmem:[#allocation2 + $0xb1] sm:$0xff]  ;;  %v4371_v39 = vpack.c.bf16 %v2390_v29, %v2389_v16  ;;  %v7059_v16 = vld [vmem:[#allocation2 + $0xe8] sm:$0xff] }
 0x3e0   : > { %2956 = vmatmul.mubr.f32.gmra.mrb[38].mxu1 %v7007_v45 }
 0x3e1   : > { %2960 = vmatprep.mubr.f32.mxu1 %v2150_v34  ;;  %4354 = vmatpush1.bf16.msra.mxu1 %v4353_v30  ;;  %v2392_v34 = vld [vmem:[#allocation3 + $0x3a8] sm:$0xff] }
 0x3e2   : > { %4355 = vmatprep.subr.bf16.mxu1 %v7526_v1  ;;  %v7013_v63 = vpop.f32.mrb[74].mxu0  ;;  %v4374_v57 = vpack.c.bf16 %v2392_v34, %v2391_v25  ;;  %v2399_v34 = vld [vmem:[#allocation3 + $0x3e0] sm:$0xff] }
 0x3e3   : > { %v7016_v12 = vpop.f32.mrb[75].mxu0 }
 0x3e4   : > { %2961 = vmatmul.mubr.f32.gmra.mrb[40].mxu1 %v7011_v26 }
 0x3e5   : > { %2965 = vmatprep.mubr.f32.mxu1 %v2151_v54  ;;  %4357 = vmatpush1.bf16.msra.mxu1 %v4356_v15  ;;  %v7043_v15 = vld [vmem:[#allocation2 + $0xb0] sm:$0xff] }
 0x3e6   : > { %4358 = vmatprep.subr.bf16.mxu1 %v7526_v1  ;;  %v2393_v54 = vld [vmem:[#allocation3 + $0x3b0] sm:$0xff] }
 0x3e8   : > { %2966 = vmatmul.mubr.f32.gmra.mrb[42].mxu1 %v7019_v20 }
 0x3e9   : > { %2970 = vmatprep.mubr.f32.mxu1 %v2152_v50  ;;  %4360 = vmatpush1.bf16.msra.mxu1 %v4359_v43  ;;  %v2394_v43 = vld [vmem:[#allocation3 + $0x3b8] sm:$0xff] }
 0x3ea   : > { %4361 = vmatprep.subr.bf16.mxu1 %v7526_v1  ;;  %v7025_v22 = vpop.f32.mrb[76].mxu0  ;;  %v2157_v50 = vld [vmem:[#allocation2 + $0xd1] sm:$0xff]  ;;  %v4377_v42 = vpack.c.bf16 %v2394_v43, %v2393_v54  ;;  %v2160_v54 = vld [vmem:[#allocation2 + $0x109] sm:$0xff] }
 0x3eb   : > { %v7028_v44 = vpop.f32.mrb[77].mxu0 }
 0x3ec   : > { %2971 = vmatmul.mubr.f32.gmra.mrb[44].mxu1 %v7023_v27 }
 0x3ed   : > { %2975 = vmatprep.mubr.f32.mxu1 %v2153_v7  ;;  %4363 = vmatpush1.bf16.msra.mxu1 %v4362_v13  ;;  %v2396_v7 = vld [vmem:[#allocation3 + $0x3c8] sm:$0xff] }
 0x3ee   : > { %4364 = vmatprep.subr.bf16.mxu1 %v7526_v1  ;;  %v4380_v6 = vpack.c.bf16 %v2396_v7, %v2395_v33  ;;  %v7071_v33 = vld [vmem:[#allocation2 + $0x108] sm:$0xff] }
 0x3f0   : > { %2976 = vmatmul.mubr.f32.gmra.mrb[46].mxu1 %v7031_v31 }
 0x3f1   : > { %2980 = vmatprep.mubr.f32.mxu1 %v2154_v35  ;;  %4366 = vmatpush1.bf16.msra.mxu1 %v4365_v59  ;;  %v7055_v59 = vld [vmem:[#allocation2 + $0xd0] sm:$0xff] }
 0x3f2   : > { %4367 = vmatprep.subr.bf16.mxu1 %v7526_v1  ;;  %v7037_v3 = vpop.f32.mrb[78].mxu0  ;;  %v2397_v35 = vld [vmem:[#allocation3 + $0x3d0] sm:$0xff] }
 0x3f3   : > { %v7040_v30 = vpop.f32.mrb[79].mxu0 }
 0x3f4   : > { %2981 = vmatmul.mubr.f32.gmra.mrb[48].mxu1 %v7035_v32 }
 0x3f5   : > { %2985 = vmatprep.mubr.f32.mxu1 %v2155_v28  ;;  %4369 = vmatpush1.bf16.msra.mxu1 %v4368_v10  ;;  %v2398_v10 = vld [vmem:[#allocation3 + $0x3d8] sm:$0xff] }
 0x3f6   : > { %4370 = vmatprep.subr.bf16.mxu1 %v7526_v1  ;;  %v2159_v28 = vld [vmem:[#allocation2 + $0xf1] sm:$0xff]  ;;  %v4383_v25 = vpack.c.bf16 %v2398_v10, %v2397_v35 }
 0x3f7   : > { %v7079_v10 = vld [vmem:[#allocation2 + $0x110] sm:$0xff] }
 0x3f8   : > { %2986 = vmatmul.mubr.f32.gmra.mrb[50].mxu1 %v7043_v15 }
 0x3f9   : > { %2990 = vmatprep.mubr.f32.mxu1 %v2156_v38  ;;  %4372 = vmatpush1.bf16.msra.mxu1 %v4371_v39  ;;  %v2400_v38 = vld [vmem:[#allocation3 + $0x3e8] sm:$0xff] }
 0x3fa   : > { %4373 = vmatprep.subr.bf16.mxu1 %v7526_v1  ;;  %v7049_v11 = vpop.f32.mrb[80].mxu0  ;;  %v4386_v43 = vpack.c.bf16 %v2400_v38, %v2399_v34 }
 0x3fb   : > { %v7052_v13 = vpop.f32.mrb[81].mxu0 }
 0x3fc   : > { %2991 = vmatmul.mubr.f32.gmra.mrb[52].mxu1 %v7047_v48 }
 0x3fd   : > { %2995 = vmatprep.mubr.f32.mxu1 %v2157_v50  ;;  %4375 = vmatpush1.bf16.msra.mxu1 %v4374_v57  ;;  %v7067_v57 = vld [vmem:[#allocation2 + $0xf0] sm:$0xff] }
 0x3fe   : > { %4376 = vmatprep.subr.bf16.mxu1 %v7526_v1  ;;  %v2401_v50 = vld [vmem:[#allocation3 + $0x3f0] sm:$0xff] }
 0x400   : > { %2996 = vmatmul.mubr.f32.gmra.mrb[54].mxu1 %v7055_v59 }
 0x401   : > { %3000 = vmatprep.mubr.f32.mxu1 %v2158_v37  ;;  %4378 = vmatpush1.bf16.msra.mxu1 %v4377_v42  ;;  %v2402_v42 = vld [vmem:[#allocation3 + $0x3f8] sm:$0xff] }
 0x402   : > { %4379 = vmatprep.subr.bf16.mxu1 %v7526_v1  ;;  %v7061_v29 = vpop.f32.mrb[82].mxu0  ;;  %v2161_v37 = vld [vmem:[#allocation2 + $0x111] sm:$0xff]  ;;  %v4389_v35 = vpack.c.bf16 %v2402_v42, %v2401_v50  ;;  %v7578_v50 = vld [vmem:[#allocation53_spill] sm:$0xff]  ;;  %v7131_v42 = vld [vmem:[#allocation2 + $0x209] sm:$0xff] }
 0x403   : > { %v7064_v39 = vpop.f32.mrb[83].mxu0 }
 0x404   : > { %3001 = vmatmul.mubr.f32.gmra.mrb[56].mxu1 %v7059_v16 }
 0x405   : > { %3005 = vmatprep.mubr.f32.mxu1 %v2159_v28  ;;  %4381 = vmatpush1.bf16.msra.mxu1 %v4380_v6  ;;  %v7574_v28 = vld [vmem:[#allocation41_spill] sm:$0xff] }
 0x406   : > { %4382 = vmatprep.subr.bf16.mxu1 %v7526_v1 }
 0x408   : > { %3006 = vmatmul.mubr.f32.gmra.mrb[58].mxu1 %v7067_v57 }
 0x409   : > { %3010 = vmatprep.mubr.f32.mxu1 %v2160_v54  ;;  %4384 = vmatpush1.bf16.msra.mxu1 %v4383_v25  ;;  %v7084_v25 = vld [vmem:[#allocation2 + $0x128] sm:$0xff]  ;;  %v7100_v54 = vld [vmem:[#allocation2 + $0x150] sm:$0xff] }
 0x40a   : > { %4385 = vmatprep.subr.bf16.mxu1 %v7526_v1  ;;  %v7073_v7 = vpop.f32.mrb[84].mxu0 }
 0x40b   : > { %v7076_v6 = vpop.f32.mrb[85].mxu0 }
 0x40c   : > { %3011 = vmatmul.mubr.f32.gmra.mrb[60].mxu1 %v7071_v33 }
 0x40d   : > { %3015 = vmatprep.mubr.f32.mxu1 %v2161_v37  ;;  %4387 = vmatpush1.bf16.msra.mxu1 %v4386_v43  ;;  %v7104_v43 = vld [vmem:[#allocation2 + $0x168] sm:$0xff] }
 0x40e   : > { %4388 = vmatprep.subr.bf16.mxu1 %v7526_v1  ;;  %v7092_v1 = vld [vmem:[#allocation2 + $0x130] sm:$0xff] }
 0x410   : > { %3016 = vmatmul.mubr.f32.gmra.mrb[62].mxu1 %v7079_v10 }
 0x411   : > { %3020 = vmatprep.mubr.f32.mxu1 %v6759_v61  ;;  %4390 = vmatpush1.bf16.msra.mxu1 %v4389_v35  ;;  %v7096_v61 = vld [vmem:[#allocation2 + $0x148] sm:$0xff]  ;;  %v7136_v35 = vld [vmem:[#allocation2 + $0x211] sm:$0xff] }
 0x412   : > { %4423 = vmatprep.subr.bf16.mxu1 %v7574_v28 }
 0x413   : > { %v7086_v34 = vpop.f32.mrb[86].mxu0 }
 0x414   : > { %3021 = vmatmul.mubr.f32.gmra.mrb[64].mxu1 %v7084_v25  ;;  %v7089_v38 = vpop.f32.mrb[87].mxu0 }
 0x415   : > { %3025 = vmatprep.mubr.f32.mxu1 %v6763_v62  ;;  %v7108_v62 = vld [vmem:[#allocation2 + $0x170] sm:$0xff] }
 0x418   : > { %3026 = vmatmul.mubr.f32.gmra.mrb[66].mxu1 %v7092_v1 }
 0x419   : > { %3030 = vmatprep.mubr.f32.mxu1 %v6775_v8  ;;  %v7112_v8 = vld [vmem:[#allocation2 + $0x188] sm:$0xff] }
 0x41c   : > { %3031 = vmatmul.mubr.f32.gmra.mrb[68].mxu1 %v7096_v61 }
 0x41d   : > { %3035 = vmatprep.mubr.f32.mxu1 %v6779_v19  ;;  %v7116_v19 = vld [vmem:[#allocation2 + $0x190] sm:$0xff] }
 0x420   : > { %3036 = vmatmul.mubr.f32.gmra.mrb[70].mxu1 %v7100_v54 }
 0x421   : > { %3040 = vmatprep.mubr.f32.mxu1 %v6791_v0  ;;  %v7575_v0 = vld [vmem:[#allocation49_spill] sm:$0xff] }
 0x424   : > { %3041 = vmatmul.mubr.f32.gmra.mrb[72].mxu1 %v7104_v43 }
 0x425   : > { %3045 = vmatprep.mubr.f32.mxu1 %v6795_v51  ;;  %v7576_v51 = vld [vmem:[#allocation50_spill] sm:$0xff] }
 0x428   : > { %3046 = vmatmul.mubr.f32.gmra.mrb[74].mxu1 %v7108_v62 }
 0x429   : > { %3050 = vmatprep.mubr.f32.mxu1 %v6812_v56  ;;  %v7577_v56 = vld [vmem:[#allocation52_spill] sm:$0xff] }
 0x42c   : > { %3051 = vmatmul.mubr.f32.gmra.mrb[76].mxu1 %v7112_v8 }
 0x42d   : > { %3055 = vmatprep.mubr.f32.mxu1 %v7571_v18  ;;  %v7579_v18 = vld [vmem:[#allocation56_spill] sm:$0xff] }
 0x430   : > { %3056 = vmatmul.mubr.f32.gmra.mrb[78].mxu1 %v7116_v19 }
 0x431   : > { %3060 = vmatprep.mubr.f32.mxu1 %v7572_v4  ;;  %v7580_v4 = vld [vmem:[#allocation57_spill] sm:$0xff] }
 0x434   : > { %3061 = vmatmul.mubr.f32.gmra.mrb[80].mxu1 %v7575_v0  ;;  %v7583_v0 = vmax.f32 %v6875_v52, 0.0  ;;  %v2181_v52 = vld [vmem:[#allocation2 + $0x67] sm:$0xff] }
 0x435   : > { %3065 = vmatprep.mubr.f32.mxu1 %v7573_v47  ;;  %v7581_v47 = vld [vmem:[#allocation58_spill] sm:$0xff] }
 0x436   : > { %v7582_v37 = vmax.f32 %v7581_v47, 0.0  ;;  %v7589_v47 = vld [vmem:[#allocation47_spill] sm:$0xff] }
 0x438   : > { %3066 = vmatmul.mubr.f32.gmra.mrb[82].mxu1 %v7576_v51  ;;  %v2179_v51 = vld [vmem:[#allocation2 + $0x47] sm:$0xff] }
 0x439   : > { %3070 = vmatprep.mubr.f32.mxu1 %v6964_v40 }
 0x43c   : > { %3071 = vmatmul.mubr.f32.gmra.mrb[84].mxu1 %v7577_v56  ;;  %v7584_v56 = vld [vmem:[#allocation42_spill] sm:$0xff] }
 0x43d   : > { %3075 = vmatprep.mubr.f32.mxu1 %v6972_v49 }
 0x440   : > { %3076 = vmatmul.mubr.f32.gmra.mrb[86].mxu1 %v7578_v50  ;;  %v2180_v50 = vld [vmem:[#allocation2 + $0x4f] sm:$0xff] }
 0x441   : > { %3080 = vmatprep.mubr.f32.mxu1 %v6978_v36 }
 0x444   : > { %3081 = vmatmul.mubr.f32.gmra.mrb[88].mxu1 %v7579_v18  ;;  %v7585_v18 = vld [vmem:[#allocation43_spill] sm:$0xff] }
 0x445   : > { %3085 = vmatprep.mubr.f32.mxu1 %v6988_v23 }
 0x448   : > { %3086 = vmatmul.mubr.f32.gmra.mrb[90].mxu1 %v7580_v4  ;;  %v7588_v4 = vld [vmem:[#allocation46_spill] sm:$0xff] }
 0x449   : > { %3090 = vmatprep.mubr.f32.mxu1 %v7131_v42 }
 0x44c   : > { %3091 = vmatmul.mubr.f32.gmra.mrb[92].mxu1 %v7582_v37  ;;  %v7590_v37 = vld [vmem:[#allocation48_spill] sm:$0xff] }
 0x44d   : > { %3095 = vmatprep.mubr.f32.mxu1 %v7136_v35 }
 0x450   : > { %3096 = vmatmul.mubr.f32.gmra.mrb[94].mxu1 %v7583_v0  ;;  %v2187_v0 = vld [vmem:[#allocation2 + $0xc7] sm:$0xff] }
 0x451   : > { %3165 = vmatprep.mubr.f32.mxu1 %v6999_v21  ;;  %v7586_v21 = vld [vmem:[#allocation44_spill] sm:$0xff] }
 0x454   : > { %3166 = vmatmul.mubr.f32.vlgmr.msra.gmra.mrb[32].mxu1 %v2179_v51  ;;  %v2189_v51 = vld [vmem:[#allocation2 + $0xe7] sm:$0xff] }
 0x455   : > { %3170 = vmatprep.mubr.f32.mxu1 %v7007_v45  ;;  %4431 = vmatpush3.bf16.msra.mxu1 %v7574_v28  ;;  %v2182_v45 = vld [vmem:[#allocation2 + $0x6f] sm:$0xff]  ;;  %v7587_v28 = vld [vmem:[#allocation45_spill] sm:$0xff] }
 0x456   : > { %4424 = vmatprep.subr.bf16.mxu1 %v7584_v56 }
 0x458   : > { %3171 = vmatmul.mubr.f32.gmra.mrb[34].mxu1 %v2180_v50  ;;  %v2233_v50 = vld [vmem:[#allocation2 + $0x1a8] sm:$0xff] }
 0x459   : > { %3175 = vmatprep.mubr.f32.mxu1 %v7011_v26  ;;  %4432 = vmatpush3.bf16.msra.mxu1 %v7584_v56  ;;  %v2183_v26 = vld [vmem:[#allocation2 + $0x87] sm:$0xff] }
 0x45a   : > { %4425 = vmatprep.subr.bf16.mxu1 %v7585_v18  ;;  %v2191_v56 = vld [vmem:[#allocation2 + $0x107] sm:$0xff] }
 0x45c   : > { %3176 = vmatmul.mubr.f32.gmra.mrb[36].mxu1 %v2181_v52  ;;  %v2235_v52 = vld [vmem:[#allocation2 + $0x1c8] sm:$0xff] }
 0x45d   : > { %3180 = vmatprep.mubr.f32.mxu1 %v7019_v20  ;;  %4433 = vmatpush3.bf16.msra.mxu1 %v7585_v18  ;;  %v2184_v20 = vld [vmem:[#allocation2 + $0x8f] sm:$0xff] }
 0x45e   : > { %4426 = vmatprep.subr.bf16.mxu1 %v7586_v21  ;;  %v2234_v18 = vld [vmem:[#allocation2 + $0x1b0] sm:$0xff] }
 0x460   : > { %3181 = vmatmul.mubr.f32.gmra.mrb[38].mxu1 %v2182_v45  ;;  %v2237_v45 = vld [vmem:[#allocation2 + $0x1e8] sm:$0xff] }
 0x461   : > { %3185 = vmatprep.mubr.f32.mxu1 %v7023_v27  ;;  %4434 = vmatpush3.bf16.msra.mxu1 %v7586_v21  ;;  %v2185_v27 = vld [vmem:[#allocation2 + $0xa7] sm:$0xff]  ;;  %v2236_v21 = vld [vmem:[#allocation2 + $0x1d0] sm:$0xff] }
 0x462   : > { %4427 = vmatprep.subr.bf16.mxu1 %v7587_v28 }
 0x464   : > { %3186 = vmatmul.mubr.f32.gmra.mrb[40].mxu1 %v2183_v26  ;;  %v2206_v26 = vld [vmem:[#allocation2 + $0x1ef] sm:$0xff] }
 0x465   : > { %3190 = vmatprep.mubr.f32.mxu1 %v7031_v31  ;;  %4435 = vmatpush3.bf16.msra.mxu1 %v7587_v28  ;;  %v2186_v31 = vld [vmem:[#allocation2 + $0xaf] sm:$0xff] }
 0x466   : > { %4428 = vmatprep.subr.bf16.mxu1 %v7588_v4  ;;  %v2238_v28 = vld [vmem:[#allocation2 + $0x1f0] sm:$0xff] }
 0x468   : > { %3191 = vmatmul.mubr.f32.gmra.mrb[42].mxu1 %v2184_v20  ;;  %v2240_v20 = vld [vmem:[#allocation2 + $0x210] sm:$0xff] }
 0x469   : > { %3195 = vmatprep.mubr.f32.mxu1 %v7035_v32  ;;  %4436 = vmatpush3.bf16.msra.mxu1 %v7588_v4  ;;  %v2188_v32 = vld [vmem:[#allocation2 + $0xcf] sm:$0xff] }
 0x46a   : > { %4429 = vmatprep.subr.bf16.mxu1 %v7589_v47  ;;  %v2239_v4 = vld [vmem:[#allocation2 + $0x208] sm:$0xff] }
 0x46c   : > { %3196 = vmatmul.mubr.f32.gmra.mrb[44].mxu1 %v2185_v27  ;;  %v2209_v27 = vld [vmem:[#allocation2 + $0x227] sm:$0xff] }
 0x46d   : > { %3200 = vmatprep.mubr.f32.mxu1 %v7043_v15  ;;  %4437 = vmatpush3.bf16.msra.mxu1 %v7589_v47  ;;  %v2190_v15 = vld [vmem:[#allocation2 + $0xef] sm:$0xff] }
 0x46e   : > { %4430 = vmatprep.subr.bf16.mxu1 %v7590_v37  ;;  %v4972_v47 = vld [vmem:[#allocation2 + $0x8] sm:$0xff] }
 0x470   : > { %3201 = vmatmul.mubr.f32.gmra.mrb[46].mxu1 %v2186_v31  ;;  %v7190_v31 = vld [vmem:[%s7372_s4] ss:$0 sm:$0xff] }
 0x471   : > { %3205 = vmatprep.mubr.f32.mxu1 %v7047_v48  ;;  %4438 = vmatpush3.bf16.msra.mxu1 %v7590_v37  ;;  %v2192_v48 = vld [vmem:[#allocation2 + $0x10f] sm:$0xff] }
 0x472   : > { %v2210_v37 = vld [vmem:[#allocation2 + $0x22f] sm:$0xff] }
 0x474   : > { %3206 = vmatmul.mubr.f32.gmra.mrb[48].mxu1 %v2187_v0  ;;  %v7591_v0 = vld [vmem:[#allocation9_spill] sm:$0xff] }
 0x475   : > { %3210 = vmatprep.mubr.f32.mxu1 %v7055_v59  ;;  %v2193_v59 = vld [vmem:[#allocation2 + $0x127] sm:$0xff] }
 0x478   : > { %3211 = vmatmul.mubr.f32.gmra.mrb[50].mxu1 %v2188_v32 }
 0x479   : > { %3215 = vmatprep.mubr.f32.mxu1 %v7059_v16  ;;  %v2194_v16 = vld [vmem:[#allocation2 + $0x12f] sm:$0xff] }
 0x47c   : > { %3216 = vmatmul.mubr.f32.gmra.mrb[52].mxu1 %v2189_v51 }
 0x47d   : > { %3220 = vmatprep.mubr.f32.mxu1 %v7067_v57  ;;  %v2195_v57 = vld [vmem:[#allocation2 + $0x147] sm:$0xff] }
 0x480   : > { %3221 = vmatmul.mubr.f32.gmra.mrb[54].mxu1 %v2190_v15 }
 0x481   : > { %3225 = vmatprep.mubr.f32.mxu1 %v7071_v33  ;;  %v2196_v33 = vld [vmem:[#allocation2 + $0x14f] sm:$0xff] }
 0x484   : > { %3226 = vmatmul.mubr.f32.gmra.mrb[56].mxu1 %v2191_v56 }
 0x485   : > { %3230 = vmatprep.mubr.f32.mxu1 %v7079_v10  ;;  %v2197_v10 = vld [vmem:[#allocation2 + $0x167] sm:$0xff] }
 0x488   : > { %3231 = vmatmul.mubr.f32.gmra.mrb[58].mxu1 %v2192_v48  ;;  %v7592_v48 = vld [vmem:[#allocation10_spill] sm:$0xff] }
 0x489   : > { %3235 = vmatprep.mubr.f32.mxu1 %v7084_v25  ;;  %v2198_v25 = vld [vmem:[#allocation2 + $0x16f] sm:$0xff] }
 0x48c   : > { %3236 = vmatmul.mubr.f32.gmra.mrb[60].mxu1 %v2193_v59 }
 0x48d   : > { %3240 = vmatprep.mubr.f32.mxu1 %v7092_v1  ;;  %v2199_v1 = vld [vmem:[#allocation2 + $0x187] sm:$0xff] }
 0x490   : > { %3241 = vmatmul.mubr.f32.gmra.mrb[62].mxu1 %v2194_v16 }
 0x491   : > { %3245 = vmatprep.mubr.f32.mxu1 %v7096_v61  ;;  %v2200_v61 = vld [vmem:[#allocation2 + $0x18f] sm:$0xff] }
 0x494   : > { %3246 = vmatmul.mubr.f32.gmra.mrb[64].mxu1 %v2195_v57 }
 0x495   : > { %3250 = vmatprep.mubr.f32.mxu1 %v7100_v54  ;;  %v2201_v54 = vld [vmem:[#allocation2 + $0x1a7] sm:$0xff] }
 0x498   : > { %3251 = vmatmul.mubr.f32.gmra.mrb[66].mxu1 %v2196_v33 }
 0x499   : > { %3255 = vmatprep.mubr.f32.mxu1 %v7104_v43  ;;  %v2202_v43 = vld [vmem:[#allocation2 + $0x1af] sm:$0xff] }
 0x49c   : > { %3256 = vmatmul.mubr.f32.gmra.mrb[68].mxu1 %v2197_v10  ;;  %v7593_v10 = vld [vmem:[#allocation11_spill] sm:$0xff] }
 0x49d   : > { %3260 = vmatprep.mubr.f32.mxu1 %v7108_v62  ;;  %v2203_v62 = vld [vmem:[#allocation2 + $0x1c7] sm:$0xff] }
 0x4a0   : > { %3261 = vmatmul.mubr.f32.gmra.mrb[70].mxu1 %v2198_v25 }
 0x4a1   : > { %3265 = vmatprep.mubr.f32.mxu1 %v7112_v8  ;;  %v2204_v8 = vld [vmem:[#allocation2 + $0x1cf] sm:$0xff] }
 0x4a4   : > { %3266 = vmatmul.mubr.f32.gmra.mrb[72].mxu1 %v2199_v1 }
 0x4a5   : > { %3270 = vmatprep.mubr.f32.mxu1 %v7116_v19  ;;  %v2205_v19 = vld [vmem:[#allocation2 + $0x1e7] sm:$0xff] }
 0x4a8   : > { %3271 = vmatmul.mubr.f32.gmra.mrb[74].mxu1 %v2200_v61 }
 0x4a9   : > { %3275 = vmatprep.mubr.f32.mxu1 %v2233_v50 }
 0x4ac   : > { %3276 = vmatmul.mubr.f32.gmra.mrb[76].mxu1 %v2201_v54  ;;  %v7594_v54 = vld [vmem:[#allocation12_spill] sm:$0xff] }
 0x4ad   : > { %3280 = vmatprep.mubr.f32.mxu1 %v2234_v18 }
 0x4b0   : > { %3281 = vmatmul.mubr.f32.gmra.mrb[78].mxu1 %v2202_v43 }
 0x4b1   : > { %3285 = vmatprep.mubr.f32.mxu1 %v2235_v52 }
 0x4b4   : > { %3286 = vmatmul.mubr.f32.gmra.mrb[80].mxu1 %v2203_v62 }
 0x4b5   : > { %3290 = vmatprep.mubr.f32.mxu1 %v2236_v21  ;;  %v7595_v21 = vld [vmem:[#allocation13_spill] sm:$0xff] }
 0x4b8   : > { %3291 = vmatmul.mubr.f32.gmra.mrb[82].mxu1 %v2204_v8 }
 0x4b9   : > { %3295 = vmatprep.mubr.f32.mxu1 %v2237_v45 }
 0x4bc   : > { %3296 = vmatmul.mubr.f32.gmra.mrb[84].mxu1 %v2205_v19 }
 0x4bd   : > { %3300 = vmatprep.mubr.f32.mxu1 %v2238_v28 }
 0x4c0   : > { %3301 = vmatmul.mubr.f32.gmra.mrb[86].mxu1 %v2206_v26  ;;  %v7596_v26 = vld [vmem:[#allocation14_spill] sm:$0xff] }
 0x4c1   : > { %3305 = vmatprep.mubr.f32.mxu1 %v2239_v4 }
 0x4c4   : > { %3306 = vmatmul.mubr.f32.gmra.mrb[88].mxu1 %v6975_v41  ;;  %v2273_v41 = vld [vmem:[#allocation2 + $0x229] sm:$0xff] }
 0x4c5   : > { %3310 = vmatprep.mubr.f32.mxu1 %v2240_v20 }
 0x4c8   : > { %3311 = vmatmul.mubr.f32.gmra.mrb[90].mxu1 %v6983_v46  ;;  %v2274_v46 = vld [vmem:[#allocation2 + $0x231] sm:$0xff] }
 0x4c9   : > { %3315 = vmatprep.mubr.f32.mxu1 %v4972_v47 }
 0x4cc   : > { %3316 = vmatmul.mubr.f32.gmra.mrb[92].mxu1 %v2209_v27 }
 0x4cd   : > { %3320 = vmatprep.mubr.f32.mxu1 %v4972_v47 }
 0x4d0   : > { %3321 = vmatmul.mubr.f32.gmra.mrb[94].mxu1 %v2210_v37  ;;  %v7597_v37 = vld [vmem:[#allocation15_spill] sm:$0xff] }
 0x4d1   : > { %3963 = vmatprep.mubr.f32.mxu1 %v6964_v40 }
 0x4d4   : > { %3964 = vmatmul.mubr.f32.vlgmr.msra.gmra.mrb[96].mxu1 %v6972_v49 }
 0x4d5   : > { %3966 = vmatprep.mubr.f32.mxu1 %v6978_v36 }
 0x4d8   : > { %3967 = vmatmul.mubr.f32.gmra.mrb[98].mxu1 %v6988_v23 }
 0x4d9   : > { %3969 = vmatprep.mubr.f32.mxu1 %v7131_v42 }
 0x4dc   : > { %3970 = vmatmul.mubr.f32.gmra.mrb[100].mxu1 %v7136_v35 }
 0x4dd   : > { %3972 = vmatprep.mubr.f32.mxu1 %v2273_v41 }
 0x4e0   : > { %3973 = vmatmul.mubr.f32.gmra.mrb[102].mxu1 %v2274_v46 }
 0x527   : > { %v3167_v40 = vpop.f32.mrb[32].mxu1 }
 0x528   : > { %v4471_v49 = vadd.f32 %v7190_v31, %v3167_v40  ;;  %v3169_v36 = vpop.f32.mrb[33].mxu1 }
 0x529   : > { %v7598_v36 = vld [vmem:[#allocation16_spill] sm:$0xff] }
 0x52a   : > { %v3393_v23 = vadd.f32 %v4471_v49, %v6959_v60 }
 0x52b   : > { %v3172_v42 = vpop.f32.mrb[34].mxu1 }
 0x52c   : > { %v3551_v35 = vadd.f32 %v3393_v23, %v7591_v0  ;;  %v4472_v32 = vadd.f32 %v7190_v31, %v3172_v42  ;;  %v3174_v51 = vpop.f32.mrb[35].mxu1 }
 0x52e   : > { %3583 = vst [vmem:[%s7198_s17] sm:$0xff] %v3551_v35  ;;  %v3398_v15 = vadd.f32 %v4472_v32, %v6956_v58  ;;  %v7599_v32 = vld [vmem:[#allocation17_spill] sm:$0xff] }
 0x52f   : > { %v3177_v56 = vpop.f32.mrb[36].mxu1 }
 0x530   : > { %v3552_v59 = vadd.f32 %v3398_v15, %v7592_v48  ;;  %v4473_v60 = vadd.f32 %v7190_v31, %v3177_v56  ;;  %v3179_v16 = vpop.f32.mrb[37].mxu1 }
 0x532   : > { %3584 = vst [vmem:[%s7198_s17 + $0x8] sm:$0xff] %v3552_v59  ;;  %v3403_v57 = vadd.f32 %v4473_v60, %v6969_v53  ;;  %v7600_v59 = vld [vmem:[#allocation18_spill] sm:$0xff] }
 0x533   : > { %v3182_v33 = vpop.f32.mrb[38].mxu1 }
 0x534   : > { %v3553_v25 = vadd.f32 %v3403_v57, %v7593_v10  ;;  %v4474_v1 = vadd.f32 %v7190_v31, %v3182_v33  ;;  %v3184_v61 = vpop.f32.mrb[39].mxu1  ;;  %v7601_v10 = vld [vmem:[#allocation19_spill] sm:$0xff] }
 0x536   : > { %3585 = vst [vmem:[%s7198_s17 + $0x10] sm:$0xff] %v3553_v25  ;;  %v3408_v58 = vadd.f32 %v4474_v1, %v6966_v55 }
 0x537   : > { %v3187_v50 = vpop.f32.mrb[40].mxu1 }
 0x538   : > { %v3554_v18 = vadd.f32 %v3408_v58, %v7594_v54  ;;  %v4475_v43 = vadd.f32 %v7190_v31, %v3187_v50  ;;  %v3189_v52 = vpop.f32.mrb[41].mxu1  ;;  %v7602_v50 = vld [vmem:[#allocation20_spill] sm:$0xff] }
 0x53a   : > { %3586 = vst [vmem:[%s7198_s17 + $0x18] sm:$0xff] %v3554_v18  ;;  %v3413_v53 = vadd.f32 %v4475_v43, %v6985_v9 }
 0x53b   : > { %v3192_v62 = vpop.f32.mrb[42].mxu1 }
 0x53c   : > { %v3555_v8 = vadd.f32 %v3413_v53, %v7595_v21  ;;  %v4476_v45 = vadd.f32 %v7190_v31, %v3192_v62  ;;  %v3194_v19 = vpop.f32.mrb[43].mxu1  ;;  %v7603_v53 = vld [vmem:[#allocation21_spill] sm:$0xff] }
 0x53d   : > { %v7604_v19 = vld [vmem:[#allocation22_spill] sm:$0xff] }
 0x53e   : > { %3587 = vst [vmem:[%s7198_s17 + $0x20] sm:$0xff] %v3555_v8  ;;  %v3418_v55 = vadd.f32 %v4476_v45, %v6980_v24 }
 0x53f   : > { %v3197_v28 = vpop.f32.mrb[44].mxu1 }
 0x540   : > { %v3556_v4 = vadd.f32 %v3418_v55, %v7596_v26  ;;  %v4477_v20 = vadd.f32 %v7190_v31, %v3197_v28  ;;  %v3199_v47 = vpop.f32.mrb[45].mxu1 }
 0x542   : > { %3588 = vst [vmem:[%s7198_s17 + $0x28] sm:$0xff] %v3556_v4  ;;  %v3423_v9 = vadd.f32 %v4477_v20, %v6994_v17  ;;  %v7605_v20 = vld [vmem:[#allocation23_spill] sm:$0xff] }
 0x543   : > { %v3202_v27 = vpop.f32.mrb[46].mxu1 }
 0x544   : > { %v3557_v41 = vadd.f32 %v3423_v9, %v7597_v37  ;;  %v4478_v46 = vadd.f32 %v7190_v31, %v3202_v27  ;;  %v3204_v40 = vpop.f32.mrb[47].mxu1 }
 0x546   : > { %3589 = vst [vmem:[%s7198_s17 + $0x30] sm:$0xff] %v3557_v41  ;;  %v3428_v24 = vadd.f32 %v4478_v46, %v6992_v2  ;;  %v7606_v41 = vld [vmem:[#allocation24_spill] sm:$0xff] }
 0x547   : > { %v3207_v49 = vpop.f32.mrb[48].mxu1 }
 0x548   : > { %v3558_v23 = vadd.f32 %v3428_v24, %v7598_v36  ;;  %v4479_v42 = vadd.f32 %v7190_v31, %v3207_v49  ;;  %v3209_v0 = vpop.f32.mrb[49].mxu1  ;;  %v7607_v36 = vld [vmem:[#allocation25_spill] sm:$0xff] }
 0x54a   : > { %3590 = vst [vmem:[%s7198_s17 + $0x38] sm:$0xff] %v3558_v23  ;;  %v3433_v17 = vadd.f32 %v4479_v42, %v7004_v14 }
 0x54b   : > { %v3212_v35 = vpop.f32.mrb[50].mxu1 }
 0x54c   : > { %v3559_v51 = vadd.f32 %v3433_v17, %v7599_v32  ;;  %v4480_v15 = vadd.f32 %v7190_v31, %v3212_v35  ;;  %v3214_v56 = vpop.f32.mrb[51].mxu1  ;;  %v7608_v35 = vld [vmem:[#allocation26_spill] sm:$0xff] }
 0x54e   : > { %3591 = vst [vmem:[%s7198_s17 + $0x40] sm:$0xff] %v3559_v51  ;;  %v3438_v2 = vadd.f32 %v4480_v15, %v7001_v5 }
 0x54f   : > { %v3217_v48 = vpop.f32.mrb[52].mxu1 }
 0x550   : > { %v3560_v60 = vadd.f32 %v3438_v2, %v7600_v59  ;;  %v4481_v16 = vadd.f32 %v7190_v31, %v3217_v48  ;;  %v3219_v57 = vpop.f32.mrb[53].mxu1  ;;  %v7609_v2 = vld [vmem:[#allocation27_spill] sm:$0xff] }
 0x551   : > { %v7610_v57 = vld [vmem:[#allocation28_spill] sm:$0xff] }
 0x552   : > { %3592 = vst [vmem:[%s7198_s17 + $0x48] sm:$0xff] %v3560_v60  ;;  %v3443_v14 = vadd.f32 %v4481_v16, %v7016_v12 }
 0x553   : > { %v3222_v33 = vpop.f32.mrb[54].mxu1 }
 0x554   : > { %v3561_v25 = vadd.f32 %v3443_v14, %v7601_v10  ;;  %v4482_v1 = vadd.f32 %v7190_v31, %v3222_v33  ;;  %v3224_v61 = vpop.f32.mrb[55].mxu1 }
 0x556   : > { %3593 = vst [vmem:[%s7198_s17 + $0x50] sm:$0xff] %v3561_v25  ;;  %v3448_v5 = vadd.f32 %v4482_v1, %v7013_v63  ;;  %v7611_v1 = vld [vmem:[#allocation29_spill] sm:$0xff] }
 0x557   : > { %v3227_v58 = vpop.f32.mrb[56].mxu1 }
 0x558   : > { %v3562_v54 = vadd.f32 %v3448_v5, %v7602_v50  ;;  %v4483_v18 = vadd.f32 %v7190_v31, %v3227_v58  ;;  %v3229_v43 = vpop.f32.mrb[57].mxu1 }
 0x55a   : > { %3594 = vst [vmem:[%s7198_s17 + $0x58] sm:$0xff] %v3562_v54  ;;  %v3453_v12 = vadd.f32 %v4483_v18, %v7028_v44  ;;  %v7612_v54 = vld [vmem:[#allocation30_spill] sm:$0xff] }
 0x55b   : > { %v3232_v52 = vpop.f32.mrb[58].mxu1 }
 0x55c   : > { %v3563_v62 = vadd.f32 %v3453_v12, %v7603_v53  ;;  %v4484_v21 = vadd.f32 %v7190_v31, %v3232_v52  ;;  %v3234_v8 = vpop.f32.mrb[59].mxu1  ;;  %v7613_v53 = vld [vmem:[#allocation31_spill] sm:$0xff] }
 0x55e   : > { %3595 = vst [vmem:[%s7198_s17 + $0x60] sm:$0xff] %v3563_v62  ;;  %v3458_v63 = vadd.f32 %v4484_v21, %v7025_v22 }
 0x55f   : > { %v3237_v45 = vpop.f32.mrb[60].mxu1 }
 0x560   : > { %v3564_v55 = vadd.f32 %v3458_v63, %v7604_v19  ;;  %v4485_v28 = vadd.f32 %v7190_v31, %v3237_v45  ;;  %v3239_v26 = vpop.f32.mrb[61].mxu1  ;;  %v7614_v45 = vld [vmem:[#allocation32_spill] sm:$0xff] }
 0x562   : > { %3596 = vst [vmem:[%s7198_s17 + $0x68] sm:$0xff] %v3564_v55  ;;  %v3463_v44 = vadd.f32 %v4485_v28, %v7040_v30 }
 0x563   : > { %v3242_v4 = vpop.f32.mrb[62].mxu1 }
 0x564   : > { %v3565_v47 = vadd.f32 %v3463_v44, %v7605_v20  ;;  %v4486_v9 = vadd.f32 %v7190_v31, %v3242_v4  ;;  %v3244_v27 = vpop.f32.mrb[63].mxu1 }
 0x566   : > { %3597 = vst [vmem:[%s7198_s17 + $0x70] sm:$0xff] %v3565_v47  ;;  %v3468_v22 = vadd.f32 %v4486_v9, %v7037_v3 }
 0x567   : > { %v3247_v37 = vpop.f32.mrb[64].mxu1 }
 0x568   : > { %v3566_v46 = vadd.f32 %v3468_v22, %v7606_v41  ;;  %v4487_v40 = vadd.f32 %v7190_v31, %v3247_v37  ;;  %v3249_v24 = vpop.f32.mrb[65].mxu1 }
 0x56a   : > { %3598 = vst [vmem:[%s7198_s17 + $0x78] sm:$0xff] %v3566_v46  ;;  %v3473_v30 = vadd.f32 %v4487_v40, %v7052_v13 }
 0x56b   : > { %v3252_v49 = vpop.f32.mrb[66].mxu1 }
 0x56c   : > { %v3567_v23 = vadd.f32 %v3473_v30, %v7607_v36  ;;  %v4488_v42 = vadd.f32 %v7190_v31, %v3252_v49  ;;  %v3254_v0 = vpop.f32.mrb[67].mxu1 }
 0x56d   : > { %v7615_v0 = vld [vmem:[#allocation34_spill] sm:$0xff] }
 0x56e   : > { %3599 = vst [vmem:[%s7198_s17 + $0x80] sm:$0xff] %v3567_v23  ;;  %v3478_v3 = vadd.f32 %v4488_v42, %v7049_v11 }
 0x56f   : > { %v3257_v17 = vpop.f32.mrb[68].mxu1 }
 0x570   : > { %v3568_v32 = vadd.f32 %v3478_v3, %v7608_v35  ;;  %v4489_v51 = vadd.f32 %v7190_v31, %v3257_v17  ;;  %v3259_v15 = vpop.f32.mrb[69].mxu1  ;;  %v7616_v35 = vld [vmem:[#allocation33_spill] sm:$0xff] }
 0x572   : > { %3600 = vst [vmem:[%s7198_s17 + $0x88] sm:$0xff] %v3568_v32  ;;  %v3483_v13 = vadd.f32 %v4489_v51, %v7064_v39 }
 0x573   : > { %v3262_v56 = vpop.f32.mrb[70].mxu1 }
 0x574   : > { %v3569_v48 = vadd.f32 %v3483_v13, %v7609_v2  ;;  %v4490_v59 = vadd.f32 %v7190_v31, %v3262_v56  ;;  %v3264_v60 = vpop.f32.mrb[71].mxu1 }
 0x576   : > { %3601 = vst [vmem:[%s7198_s17 + $0x90] sm:$0xff] %v3569_v48  ;;  %v3488_v11 = vadd.f32 %v4490_v59, %v7061_v29  ;;  %v7617_v48 = vld [vmem:[#allocation36_spill] sm:$0xff] }
 0x577   : > { %v3267_v16 = vpop.f32.mrb[72].mxu1 }
 0x578   : > { %v3570_v14 = vadd.f32 %v3488_v11, %v7610_v57  ;;  %v4491_v33 = vadd.f32 %v7190_v31, %v3267_v16  ;;  %v3269_v10 = vpop.f32.mrb[73].mxu1  ;;  %v7618_v11 = vld [vmem:[#allocation35_spill] sm:$0xff] }
 0x57a   : > { %3602 = vst [vmem:[%s7198_s17 + $0x98] sm:$0xff] %v3570_v14  ;;  %v3493_v39 = vadd.f32 %v4491_v33, %v7076_v6 }
 0x57b   : > { %v3272_v25 = vpop.f32.mrb[74].mxu1 }
 0x57c   : > { %v3571_v61 = vadd.f32 %v3493_v39, %v7611_v1  ;;  %v4492_v5 = vadd.f32 %v7190_v31, %v3272_v25  ;;  %v3274_v58 = vpop.f32.mrb[75].mxu1  ;;  %v7619_v25 = vld [vmem:[#allocation38_spill] sm:$0xff] }
 0x57e   : > { %3603 = vst [vmem:[%s7198_s17 + $0xa0] sm:$0xff] %v3571_v61  ;;  %v3498_v29 = vadd.f32 %v4492_v5, %v7073_v7  ;;  %v7620_v5 = vld [vmem:[#allocation37_spill] sm:$0xff] }
 0x57f   : > { %v3277_v50 = vpop.f32.mrb[76].mxu1 }
 0x580   : > { %v3572_v18 = vadd.f32 %v3498_v29, %v7612_v54  ;;  %v4493_v43 = vadd.f32 %v7190_v31, %v3277_v50  ;;  %v3279_v12 = vpop.f32.mrb[77].mxu1 }
 0x582   : > { %3604 = vst [vmem:[%s7198_s17 + $0xa8] sm:$0xff] %v3572_v18  ;;  %v3503_v6 = vadd.f32 %v4493_v43, %v7089_v38  ;;  %v7621_v43 = vld [vmem:[#allocation40_spill] sm:$0xff] }
 0x583   : > { %v3282_v52 = vpop.f32.mrb[78].mxu1 }
 0x584   : > { %v3573_v62 = vadd.f32 %v3503_v6, %v7613_v53  ;;  %v4494_v21 = vadd.f32 %v7190_v31, %v3282_v52  ;;  %v3284_v8 = vpop.f32.mrb[79].mxu1 }
 0x586   : > { %3605 = vst [vmem:[%s7198_s17 + $0xb0] sm:$0xff] %v3573_v62  ;;  %v3508_v63 = vadd.f32 %v4494_v21, %v7086_v34 }
 0x587   : > { %v3287_v7 = vpop.f32.mrb[80].mxu1 }
 0x588   : > { %v3574_v19 = vadd.f32 %v3508_v63, %v7614_v45  ;;  %v3289_v55 = vpop.f32.mrb[81].mxu1  ;;  %v4495_v24 = vadd.f32 %v7190_v31, %v3287_v7 }
 0x58a   : > { %3606 = vst [vmem:[%s7198_s17 + $0xb8] sm:$0xff] %v3574_v19 }
 0x58b   : > { %v3292_v28 = vpop.f32.mrb[82].mxu1 }
 0x58c   : > { %v3294_v26 = vpop.f32.mrb[83].mxu1  ;;  %v4496_v40 = vadd.f32 %v7190_v31, %v3292_v28 }
 0x58f   : > { %v3297_v44 = vpop.f32.mrb[84].mxu1 }
 0x590   : > { %v3299_v4 = vpop.f32.mrb[85].mxu1  ;;  %v4497_v17 = vadd.f32 %v7190_v31, %v3297_v44 }
 0x593   : > { %v3302_v20 = vpop.f32.mrb[86].mxu1 }
 0x594   : > { %v3304_v38 = vpop.f32.mrb[87].mxu1  ;;  %v4498_v42 = vadd.f32 %v7190_v31, %v3302_v20 }
 0x597   : > { %v3307_v47 = vpop.f32.mrb[88].mxu1 }
 0x598   : > { %v3309_v9 = vpop.f32.mrb[89].mxu1  ;;  %v4499_v60 = vadd.f32 %v7190_v31, %v3307_v47 }
 0x59b   : > { %v3312_v27 = vpop.f32.mrb[90].mxu1 }
 0x59c   : > { %v3314_v22 = vpop.f32.mrb[91].mxu1  ;;  %v4500_v2 = vadd.f32 %v7190_v31, %v3312_v27 }
 0x59f   : > { %v3317_v37 = vpop.f32.mrb[92].mxu1 }
 0x5a0   : > { %v3319_v41 = vpop.f32.mrb[93].mxu1  ;;  %v4501_v61 = vadd.f32 %v7190_v31, %v3317_v37 }
 0x5a3   : > { %v3322_v46 = vpop.f32.mrb[94].mxu1 }
 0x5a4   : > { %v3324_v34 = vpop.f32.mrb[95].mxu1  ;;  %v4502_v39 = vadd.f32 %v7190_v31, %v3322_v46  ;;  %v7622_v31 = vld [vmem:[#allocation39_spill] sm:$0xff] }
 0x5a7   : > { %v3965_v30 = vpop.f32.mrb[96].mxu1 }
 0x5a8   : > { %v3518_v49 = vadd.f32 %v4496_v40, %v3965_v30  ;;  %v3512_v36 = vpop.f32.mrb[97].mxu1 }
 0x5a9   : > { %v3513_v23 = vadd.f32 %v4495_v24, %v3512_v36 }
 0x5aa   : > { %v3576_v3 = vadd.f32 %v3518_v49, %v7615_v0 }
 0x5ab   : > { %v3575_v32 = vadd.f32 %v3513_v23, %v7616_v35  ;;  %v3968_v51 = vpop.f32.mrb[98].mxu1 }
 0x5ac   : > { %3608 = vst [vmem:[%s7198_s17 + $0xc8] sm:$0xff] %v3576_v3  ;;  %v3528_v15 = vadd.f32 %v4498_v42, %v3968_v51  ;;  %v3522_v13 = vpop.f32.mrb[99].mxu1 }
 0x5ad   : > { %3607 = vst [vmem:[%s7198_s17 + $0xc0] sm:$0xff] %v3575_v32  ;;  %v3523_v56 = vadd.f32 %v4497_v17, %v3522_v13 }
 0x5ae   : > { %v3578_v59 = vadd.f32 %v3528_v15, %v7617_v48 }
 0x5af   : > { %v3577_v16 = vadd.f32 %v3523_v56, %v7618_v11  ;;  %v3971_v57 = vpop.f32.mrb[100].mxu1 }
 0x5b0   : > { %3610 = vst [vmem:[%s7198_s17 + $0xd8] sm:$0xff] %v3578_v59  ;;  %v3538_v14 = vadd.f32 %v4500_v2, %v3971_v57  ;;  %v3532_v33 = vpop.f32.mrb[101].mxu1 }
 0x5b1   : > { %3609 = vst [vmem:[%s7198_s17 + $0xd0] sm:$0xff] %v3577_v16  ;;  %v3533_v10 = vadd.f32 %v4499_v60, %v3532_v33 }
 0x5b2   : > { %v3580_v1 = vadd.f32 %v3538_v14, %v7619_v25 }
 0x5b3   : > { %v3579_v58 = vadd.f32 %v3533_v10, %v7620_v5  ;;  %v3974_v29 = vpop.f32.mrb[102].mxu1 }
 0x5b4   : > { %3612 = vst [vmem:[%s7198_s17 + $0xe8] sm:$0xff] %v3580_v1  ;;  %v3548_v50 = vadd.f32 %v4502_v39, %v3974_v29  ;;  %v3542_v54 = vpop.f32.mrb[103].mxu1 }
 0x5b5   : > { %3611 = vst [vmem:[%s7198_s17 + $0xe0] sm:$0xff] %v3579_v58  ;;  %v3543_v18 = vadd.f32 %v4501_v61, %v3542_v54 }
 0x5b6   : > { %v3582_v12 = vadd.f32 %v3548_v50, %v7621_v43 }
 0x5b7   : > { %v3581_v6 = vadd.f32 %v3543_v18, %v7622_v31 }
 0x5b8   : > { %3614 = vst [vmem:[%s7198_s17 + $0xf8] sm:$0xff] %v3582_v12 }
 0x5b9   : > { %3613 = vst [vmem:[%s7198_s17 + $0xf0] sm:$0xff] %v3581_v6 }
 0x5ba   : > { %5014 = shalt.err (!%p5011_p7)
}
 0x5bb   : > { %s5015_s8 = scalar_lea.hbm %s7318_s9, 4096  ;;  %s5019_s14 = scalar_lea.hbm %s7373_s5, 8192 }
 0x5bc   : > { %p5016_p8 = scmp.ne.s32.totalorder %s7318_s9, %s5015_s8  ;;  %p5020_p1 = scmp.lt.u32.totalorder %s7318_s9, %s7373_s5 }
 0x5bd   : > { %p5021_p0 = scmp.lt.u32.totalorder %s5019_s14, %s5015_s8  ;;  %p5023_p6 = scmp.lt.u32.totalorder %s5015_s8, %s7318_s9 }
 0x5be   : > { %p5017_p11 = pnand %p5016_p8, %p7623_p9 }
 0x5bf   : > { %p5022_p5 = por %p5021_p0, %p5020_p1 }
 0x5c0   : > { %p5018_p13 = pneg %p5017_p11 }
 0x5c1   : > { %p5024_p10 = por %p5023_p6, %p5022_p5 }
 0x5c3   : > { %p5025_p12 = pnand %p5024_p10, %p5018_p13 }
 0x5c5   : > { %5028 = shalt.err (!%p5025_p12)
}
 0x5c6   : > { %s5075_s17 = smov 128   ;;  %s5076_s23 = smov 8  }
 0x5c7   : > { %4892 = dma.vmem_to_hbm [thread:$0]  (%p7623_p9), %s7320_s25, 4096, %s7318_s9, %s7327_s22, %s5075_s17, %s5075_s17, %s5076_s23  }
 0x5c8 PF: > { %p4904_p2 = scmp.ge.s32.totalorder %s5067_s21, 2  ;;  %s3644_s26 = sand.u32 1, %s5055_s18  }
 0x5c9   : > { %p7624_p3 = scmp.ne.s32.totalorder %s7490_s29, 0  ;;  %s3645_s6 = scalar_lea.sflag [#allocation5], %s3644_s26 }
 0x5cb   : > { %p4899_p4 = pnand %p4904_p2, %p7624_p3 }
 0x5cd   : > { %5050 = dma.done.wait (!%p4899_p4), %s3645_s6, 4096  }
 0x5ce   : > { %5052 = vsyncadd (!%p4899_p4), %s3645_s6, 4294963200  ;;  %p16_p7 = scmp.ge.s32.totalorder %s5132_s24, 4   ;;  %s7625_s18 = smov %s5059_s19 }
 0x5cf   : > { %s7626_s19 = smov %s5063_s20  ;;  %s7627_s20 = smov %s5143_s27 }
 0x5d0   : > { %s7628_s21 = smov %s5132_s24  ;;  %18 = sbr.rel (!%p16_p7) target bundleno = 4 (0x4), region = 83 }
 0x5d7   :  { %3650 = vsyncpa [#allocation4], 1 }
 0x5d8   :  { %3652 = vsyncpa [#allocation4 + $0x1], 1 }
 0x5d9   :  { %3653 = vsyncpa [#allocation5], 1 }
 0x5da   :  { %3655 = vsyncpa [#allocation5 + $0x1], 1 }

</bundles_post_ra>
